<compile_context>
chip_gen: v6e
topology: v6e:2x2x1
jax: 0.10.0
libtpu: 0.0.40
codegen_flags: <defaults>
</compile_context>

<pallas_src>
import functools
from collections import namedtuple

import numpy as np
import jax
import jax.numpy as jnp
from jax.experimental import pallas as pl
from jax.experimental.pallas import tpu as pltpu


def _align16(n):
    return ((n + 15) // 16) * 16


# ----------------------------------------------------------------------------
# Init-time builders: fold conv / deconv layers into per-tap (G_j, S_j) with
#   out[co*Ho+oy, ox] = sum_j (G_j @ X @ S_j)[co*Ho+oy, ox]
# where X[ci*Hi+iy, ix] = input[ci, iy, ix]; stride / zero padding /
# output_padding are folded into the 0/1 selection matrices S_j and the
# tap-weight matrices G_j.
# ----------------------------------------------------------------------------
def _conv_gs(w, hi, wi, stride, pad):
    """Conv2d, torch layout (Cout, Cin, kh, kw) -> (g[kw], s[kw], (Ho, Wo))."""
    w = np.asarray(w, np.float32)
    cout, cin, kh, kw = w.shape
    ho = (hi + 2 * pad - kh) // stride + 1
    wo = (wi + 2 * pad - kw) // stride + 1
    oy = np.arange(ho)[:, None, None]
    iy = np.arange(hi)[None, :, None]
    ky = np.arange(kh)[None, None, :]
    mh = (iy == stride * oy + ky - pad).astype(np.float32)          # (Ho, Hi, kh)
    g = np.einsum("ackr,yik->rayci", w, mh).reshape(kw, cout * ho, cin * hi)
    ox = np.arange(wo)[None, None, :]
    ix = np.arange(wi)[None, :, None]
    kx = np.arange(kw)[:, None, None]
    s = (ix == stride * ox + kx - pad).astype(np.float32)           # (kw, Wi, Wo)
    return g, s, (ho, wo)


def _deconv_gs(w, hi, wi, stride, pad, out_pad):
    """ConvTranspose2d, torch layout (Cin, Cout, kh, kw) -> (g, s, (Ho, Wo))."""
    w = np.asarray(w, np.float32)
    cin, cout, kh, kw = w.shape
    ho = (hi - 1) * stride - 2 * pad + kh + out_pad
    wo = (wi - 1) * stride - 2 * pad + kw + out_pad
    oy = np.arange(ho)[:, None, None]
    iy = np.arange(hi)[None, :, None]
    ky = np.arange(kh)[None, None, :]
    mh = (oy == stride * iy + ky - pad).astype(np.float32)          # (Ho, Hi, kh)
    g = np.einsum("cakr,yik->rayci", w, mh).reshape(kw, cout * ho, cin * hi)
    ox = np.arange(wo)[None, None, :]
    ix = np.arange(wi)[None, :, None]
    kx = np.arange(kw)[:, None, None]
    s = (ox == stride * ix + kx - pad).astype(np.float32)           # (kw, Wi, Wo)
    return g, s, (ho, wo)


LayerMeta = namedtuple(
    "LayerMeta",
    "order kw act g_off g_rows g_cols s_offs s_rows s_cols "
    "b_off b_rows b_cols block_rows")


# ----------------------------------------------------------------------------
# Fused Pallas kernel: one grid step == `images_per_block` lane-stacked images'
# full forward pass (conv x3 + relu, embedding, clustering, de-embedding,
# deconv x3).  Everything stays VMEM-resident.
# ----------------------------------------------------------------------------
def _dcec_kernel(x_ref, g_ref, s_ref, bc_ref, recon_ref, small_ref, *,
                 meta, emb_index, nc, centers_off):
    h = x_ref[0].astype(jnp.bfloat16)                 # (Cin*H, ipb*W)
    emb = None
    out = None
    n_layers = len(meta)

    for li, m in enumerate(meta):                     # fully unrolled (8 layers)
        g = g_ref[m.g_off:m.g_off + m.g_rows, :m.g_cols]           # bf16
        b = bc_ref[m.b_off:m.b_off + m.b_rows, :m.b_cols]          # f32

        if m.order == "enc":
            # kw tiny column-gather matmuls, then ONE big-K MXU pass.
            parts = []
            for off in m.s_offs:                      # kw <= 5, unrolled
                s_j = s_ref[off:off + m.s_rows, :m.s_cols]
                parts.append(
                    jnp.dot(h, s_j, preferred_element_type=jnp.float32)
                    .astype(jnp.bfloat16))
            v = parts[0] if len(parts) == 1 else jnp.concatenate(parts, axis=0)
            acc = jnp.dot(g, v, preferred_element_type=jnp.float32)
        else:
            # Decoder order: one stacked-G matmul, then one stacked-S matmul.
            wmat = jnp.dot(g, h, preferred_element_type=jnp.float32)
            blocks = [wmat[j * m.block_rows:(j + 1) * m.block_rows, :]
                      .astype(jnp.bfloat16) for j in range(m.kw)]
            wh = blocks[0] if m.kw == 1 else jnp.concatenate(blocks, axis=1)
            s = s_ref[m.s_offs[0]:m.s_offs[0] + m.s_rows, :m.s_cols]
            acc = jnp.dot(wh, s, preferred_element_type=jnp.float32)

        acc = acc + b
        if m.act:
            acc = jnp.maximum(acc, 0.0)
        if li == emb_index:
            emb = acc                                 # (nc, ipb), f32, pre-relu
        out = acc
        if li + 1 < n_layers:
            h = acc.astype(jnp.bfloat16)

    recon_ref[0] = out                                # (Cout*H, ipb*W)

    # Student-t soft assignment (DEC/DCEC head, alpha=1) -- VPU only, exact.
    mu = bc_ref[centers_off:centers_off + nc, :nc]    # (nc, emb_dim == nc)
    d2 = jnp.zeros_like(emb)                          # (nc, ipb)
    for d in range(nc):                               # unrolled over emb dims
        diff = mu[:, d:d + 1] - emb[d:d + 1, :]       # (nc, 1)-(1, ipb)->(nc, ipb)
        d2 = d2 + diff * diff
    qu = 1.0 / (1.0 + d2)
    q = qu / jnp.sum(qu, axis=0, keepdims=True)
    small_ref[0] = jnp.concatenate([emb, q], axis=0)  # rows 0..nc-1: emb, nc..: q


# ----------------------------------------------------------------------------
# DCEC model
# ----------------------------------------------------------------------------
class DCECPallas:
    def __init__(self, input_shape=(32, 32, 3), filters=(4, 8, 16),
                 num_clusters=10, images_per_block=2,
                 key=jax.random.PRNGKey(42)):
        assert input_shape[0] == input_shape[1]
        self.input_shape = input_shape
        self.filters = filters
        self.num_clusters = num_clusters
        self.ipb = images_per_block
        h = w = input_shape[0]
        cin = input_shape[2]
        f0, f1, f2 = filters
        nc = num_clusters
        ipb = self.ipb

        # Compute_dim (mirrors the PyTorch module)
        nf1 = (h + 4 - 5) // 2 + 1
        nf2 = (nf1 + 4 - 5) // 2 + 1
        nf3 = (nf2 + 0 - 3) // 2 + 1
        self.nf = nf3
        self.fc_dim = nf3 * nf3 * f2

        out_pad_1 = 1 if (h // 2 // 2) % 2 == 0 else 0
        out_pad_2 = 1 if (h // 2) % 2 == 0 else 0
        out_pad_3 = 1 if h % 2 == 0 else 0

        keys = jax.random.split(key, 20)

        def init(k, shape, scale=0.05):
            return scale * jax.random.normal(k, shape, dtype=jnp.float32)

        # torch-layout parameters
        w_conv1 = init(keys[0], (f0, cin, 5, 5)); b_conv1 = init(keys[1], (f0,))
        w_conv2 = init(keys[2], (f1, f0, 5, 5));  b_conv2 = init(keys[3], (f1,))
        w_conv3 = init(keys[4], (f2, f1, 3, 3));  b_conv3 = init(keys[5], (f2,))
        w_emb = init(keys[6], (nc, self.fc_dim)); b_emb = init(keys[7], (nc,))
        w_demb = init(keys[8], (self.fc_dim, nc))
        b_demb = init(keys[9], (self.fc_dim,))
        w_dec1 = init(keys[10], (f2, f1, 3, 3)); b_dec1 = init(keys[11], (f1,))
        w_dec2 = init(keys[12], (f1, f0, 5, 5)); b_dec2 = init(keys[13], (f0,))
        w_dec3 = init(keys[14], (f0, cin, 5, 5)); b_dec3 = init(keys[15], (cin,))
        # TODO(synk): Clustering_Layer source not provided; standard DEC
        # Student-t soft assignment (alpha=1) with (num_clusters, num_clusters)
        # centers assumed (embedding dim == num_clusters in this model).
        centers = init(keys[16], (nc, nc))

        eye = np.eye(ipb, dtype=np.float32)
        layers = []   # dicts: order, kw, act, G, S(list), bias, block_rows

        def add_enc(wt, bias_vec, hi, wi, stride, pad, act):
            g, s, (ho, wo) = _conv_gs(wt, hi, wi, stride, pad)
            kw = g.shape[0]
            bias_plane = np.repeat(np.asarray(bias_vec, np.float32), ho)[:, None]
            layers.append(dict(
                order="enc", kw=kw, act=act,
                G=np.concatenate(list(g), axis=1),          # (CoutHo, kw*CinHi)
                S=[np.kron(eye, s[j]) for j in range(kw)],   # per-tap block-diag
                bias=bias_plane, block_rows=0))
            return ho, wo

        def add_dec(wt, bias_vec, hi, wi, stride, pad, opad, act,
                    bias_plane=None):
            g, s, (ho, wo) = _deconv_gs(wt, hi, wi, stride, pad, opad)
            kw = g.shape[0]
            if bias_plane is None:
                bias_plane = np.repeat(np.asarray(bias_vec, np.float32),
                                       ho)[:, None]
            layers.append(dict(
                order="dec", kw=kw, act=act,
                G=np.concatenate(list(g), axis=0),           # (kw*CoutHo, CinHi)
                S=[np.concatenate([np.kron(eye, s[j]) for j in range(kw)],
                                  axis=0)],                   # (kw*ipb*Wi, ipb*Wo)
                bias=bias_plane, block_rows=g.shape[1]))      # CoutHo
            return ho, wo

        # ---- encoder --------------------------------------------------------
        h1, w1 = add_enc(w_conv1, b_conv1, h,  w,  2, 2, True)
        h2, w2 = add_enc(w_conv2, b_conv2, h1, w1, 2, 2, True)
        h3, w3 = add_enc(w_conv3, b_conv3, h2, w2, 2, 0, True)
        assert (h3, w3) == (nf3, nf3)

        # embedding == stride-1 "conv" whose kernel covers the whole nf3 x nf3 map
        w_emb4 = np.asarray(w_emb, np.float32).reshape(nc, f2, nf3, nf3)
        he, we = add_enc(w_emb4, b_emb, nf3, nf3, 1, 0, False)
        assert (he, we) == (1, 1)
        self._emb_index = len(layers) - 1

        # de-embedding == ConvTranspose from a 1x1 map with an nf3 x nf3 kernel
        w_demb4 = np.transpose(
            np.asarray(w_demb, np.float32).reshape(f2, nf3, nf3, nc),
            (3, 0, 1, 2))                             # (Cin=nc, Cout=f2, kh, kw)
        demb_bias_plane = np.tile(
            np.asarray(b_demb, np.float32).reshape(f2 * nf3, nf3), (1, ipb))
        hd, wd = add_dec(w_demb4, None, 1, 1, 1, 0, 0, True,
                         bias_plane=demb_bias_plane)
        assert (hd, wd) == (nf3, nf3)

        hq, wq = add_dec(w_dec1, b_dec1, nf3, nf3, 2, 0, out_pad_1, True)
        hq, wq = add_dec(w_dec2, b_dec2, hq, wq, 2, 2, out_pad_2, True)
        hq, wq = add_dec(w_dec3, b_dec3, hq, wq, 2, 2, out_pad_3, False)
        assert (hq, wq) == (h, w)

        # ---- pack all weights into 3 lane-padded arrays ---------------------
        def pack(items, dtype):
            cols = max(a.shape[1] for a in items)
            offs, rows = [], 0
            for a in items:
                offs.append(rows)
                rows += _align16(a.shape[0])
            buf = np.zeros((rows, cols), np.float32)
            for a, o in zip(items, offs):
                buf[o:o + a.shape[0], :a.shape[1]] = a
            return jnp.asarray(buf, dtype), offs

        self.g_pack, g_offs = pack([L["G"] for L in layers], jnp.bfloat16)

        s_items, s_idx = [], []
        for L in layers:
            idx = []
            for S in L["S"]:
                idx.append(len(s_items))
                s_items.append(S)
            s_idx.append(idx)
        self.s_pack, s_offs = pack(s_items, jnp.bfloat16)

        bc_items = [L["bias"] for L in layers] + [np.asarray(centers, np.float32)]
        self.bc_pack, bc_offs = pack(bc_items, jnp.float32)
        self.centers_off = bc_offs[-1]

        meta = []
        for li, L in enumerate(layers):
            S0 = L["S"][0]
            meta.append(LayerMeta(
                order=L["order"], kw=L["kw"], act=bool(L["act"]),
                g_off=g_offs[li], g_rows=L["G"].shape[0], g_cols=L["G"].shape[1],
                s_offs=tuple(s_offs[i] for i in s_idx[li]),
                s_rows=S0.shape[0], s_cols=S0.shape[1],
                b_off=bc_offs[li], b_rows=L["bias"].shape[0],
                b_cols=L["bias"].shape[1],
                block_rows=L["block_rows"]))
        self.meta = tuple(meta)

    def __call__(self, x_nchw):
        n, cin, h, w = x_nchw.shape
        assert (h, w, cin) == (self.input_shape[0], self.input_shape[1],
                               self.input_shape[2])
        ipb = self.ipb
        nc = self.num_clusters
        assert n % ipb == 0, "batch must be divisible by images_per_block"
        ng = n // ipb

        # NCHW -> per-group plane (Cin*H, ipb*W): images stacked along lanes.
        xg = (x_nchw.astype(jnp.float32)
              .reshape(ng, ipb, cin, h, w)
              .transpose(0, 2, 3, 1, 4)
              .reshape(ng, cin * h, ipb * w))

        def full(arr):  # whole-array VMEM-resident block, constant index map
            return pl.BlockSpec(arr.shape, lambda i: (0,) * arr.ndim)

        kernel = functools.partial(
            _dcec_kernel, meta=self.meta, emb_index=self._emb_index,
            nc=nc, centers_off=self.centers_off)

        recon_g, small = pl.pallas_call(
            kernel,
            grid=(ng,),
            in_specs=[
                pl.BlockSpec((1, cin * h, ipb * w), lambda i: (i, 0, 0)),
                full(self.g_pack), full(self.s_pack), full(self.bc_pack),
            ],
            out_specs=(
                pl.BlockSpec((1, cin * h, ipb * w), lambda i: (i, 0, 0)),
                pl.BlockSpec((1, 2 * nc, ipb), lambda i: (i, 0, 0)),
            ),
            out_shape=(
                jax.ShapeDtypeStruct((ng, cin * h, ipb * w), jnp.float32),
                jax.ShapeDtypeStruct((ng, 2 * nc, ipb), jnp.float32),
            ),
            compiler_params=pltpu.CompilerParams(
                dimension_semantics=("parallel",)),   # groups shard on v7x TCs
        )(xg, self.g_pack, self.s_pack, self.bc_pack)

        # Un-stack the lane-batched planes back to NCHW / (N, nc).
        recon = (recon_g.reshape(ng, cin, h, ipb, w)
                 .transpose(0, 3, 1, 2, 4)
                 .reshape(n, cin, h, w))
        emb = small[:, :nc, :].transpose(0, 2, 1).reshape(n, nc)
        q = small[:, nc:, :].transpose(0, 2, 1).reshape(n, nc)
        return recon, q, emb


# ----------------------------------------------------------------------------
if __name__ == "__main__":
    model = DCECPallas(input_shape=(32, 32, 3), filters=(4, 8, 16),
                       num_clusters=10, images_per_block=2,
                       key=jax.random.PRNGKey(42))

    x = jax.random.normal(jax.random.PRNGKey(0), (2, 3, 32, 32),
                          dtype=jnp.float32)          # NCHW input

    recon, q, emb = jax.jit(model.__call__)(x)
    jax.block_until_ready((recon, q, emb))

    assert recon.shape == (2, 3, 32, 32), recon.shape
    assert q.shape == (2, 10), q.shape
    assert emb.shape == (2, 10), emb.shape
    assert bool(jnp.all(jnp.isfinite(recon)))
    assert bool(jnp.all(jnp.isfinite(q)))
    assert bool(jnp.allclose(jnp.sum(q, axis=1), 1.0, atol=1e-4))

    print("KERNEL_OK")
</pallas_src>

<mosaic_0001>
module attributes {stable_mosaic.version = 11 : i64} {
  func.func @_dcec_kernel(%arg0: i32, %arg1: memref<1x96x64xf32, #tpu.memory_space<vmem>>, %arg2: memref<1328x480xbf16, #tpu.memory_space<vmem>>, %arg3: memref<864x64xbf16, #tpu.memory_space<vmem>>, %arg4: memref<480x10xf32, #tpu.memory_space<vmem>>, %arg5: memref<1x96x64xf32, #tpu.memory_space<vmem>>, %arg6: memref<1x20x2xf32, #tpu.memory_space<vmem>>) attributes {dimension_semantics = [#tpu.dimension_semantics<parallel>], iteration_bounds = array<i64: 1>, scalar_prefetch = 0 : i64, scratch_operands = 0 : i64, tpu.core_type = #tpu.core_type<tc>, window_params = [{transform_indices = @transform_0, window_bounds = array<i64: 1, 96, 64>}, {pipeline_mode = #tpu.pipeline_mode<synchronous>, transform_indices = @transform_1, window_bounds = array<i64: 1328, 480>}, {pipeline_mode = #tpu.pipeline_mode<synchronous>, transform_indices = @transform_2, window_bounds = array<i64: 864, 64>}, {pipeline_mode = #tpu.pipeline_mode<synchronous>, transform_indices = @transform_3, window_bounds = array<i64: 480, 10>}, {transform_indices = @transform_4, window_bounds = array<i64: 1, 96, 64>}, {transform_indices = @transform_5, window_bounds = array<i64: 1, 20, 2>}]} {
    %c0 = arith.constant 0 : index
    %c0_0 = arith.constant 0 : index
    %c0_1 = arith.constant 0 : index
    %0 = vector.load %arg1[%c0, %c0_0, %c0_1] : memref<1x96x64xf32, #tpu.memory_space<vmem>>, vector<1x96x64xf32>
    %1 = vector.shape_cast %0 : vector<1x96x64xf32> to vector<96x64xf32>
    %2 = arith.truncf %1 : vector<96x64xf32> to vector<96x64xbf16>
    %c0_2 = arith.constant 0 : index
    %c0_3 = arith.constant 0 : index
    %3 = vector.load %arg2[%c0_2, %c0_3] : memref<1328x480xbf16, #tpu.memory_space<vmem>>, vector<64x480xbf16>
    %c0_4 = arith.constant 0 : index
    %c0_5 = arith.constant 0 : index
    %4 = vector.load %arg4[%c0_4, %c0_5] : memref<480x10xf32, #tpu.memory_space<vmem>>, vector<64x1xf32>
    %c0_6 = arith.constant 0 : index
    %c0_7 = arith.constant 0 : index
    %5 = vector.load %arg3[%c0_6, %c0_7] : memref<864x64xbf16, #tpu.memory_space<vmem>>, vector<64x32xbf16>
    %cst = arith.constant dense<0.000000e+00> : vector<96x32xf32>
    %6 = tpu.matmul %2, %5, %cst {dimension_numbers = #tpu.dot_dimension_numbers<[1], [0], [0], [1], [0, 0, 1, 1], [], []>} : vector<96x64xbf16>, vector<64x32xbf16>, vector<96x32xf32> -> vector<96x32xf32>
    %7 = arith.truncf %6 : vector<96x32xf32> to vector<96x32xbf16>
    %c64 = arith.constant 64 : index
    %c0_8 = arith.constant 0 : index
    %8 = vector.load %arg3[%c64, %c0_8] : memref<864x64xbf16, #tpu.memory_space<vmem>>, vector<64x32xbf16>
    %cst_9 = arith.constant dense<0.000000e+00> : vector<96x32xf32>
    %9 = tpu.matmul %2, %8, %cst_9 {dimension_numbers = #tpu.dot_dimension_numbers<[1], [0], [0], [1], [0, 0, 1, 1], [], []>} : vector<96x64xbf16>, vector<64x32xbf16>, vector<96x32xf32> -> vector<96x32xf32>
    %10 = arith.truncf %9 : vector<96x32xf32> to vector<96x32xbf16>
    %c128 = arith.constant 128 : index
    %c0_10 = arith.constant 0 : index
    %11 = vector.load %arg3[%c128, %c0_10] : memref<864x64xbf16, #tpu.memory_space<vmem>>, vector<64x32xbf16>
    %cst_11 = arith.constant dense<0.000000e+00> : vector<96x32xf32>
    %12 = tpu.matmul %2, %11, %cst_11 {dimension_numbers = #tpu.dot_dimension_numbers<[1], [0], [0], [1], [0, 0, 1, 1], [], []>} : vector<96x64xbf16>, vector<64x32xbf16>, vector<96x32xf32> -> vector<96x32xf32>
    %13 = arith.truncf %12 : vector<96x32xf32> to vector<96x32xbf16>
    %c192 = arith.constant 192 : index
    %c0_12 = arith.constant 0 : index
    %14 = vector.load %arg3[%c192, %c0_12] : memref<864x64xbf16, #tpu.memory_space<vmem>>, vector<64x32xbf16>
    %cst_13 = arith.constant dense<0.000000e+00> : vector<96x32xf32>
    %15 = tpu.matmul %2, %14, %cst_13 {dimension_numbers = #tpu.dot_dimension_numbers<[1], [0], [0], [1], [0, 0, 1, 1], [], []>} : vector<96x64xbf16>, vector<64x32xbf16>, vector<96x32xf32> -> vector<96x32xf32>
    %16 = arith.truncf %15 : vector<96x32xf32> to vector<96x32xbf16>
    %c256 = arith.constant 256 : index
    %c0_14 = arith.constant 0 : index
    %17 = vector.load %arg3[%c256, %c0_14] : memref<864x64xbf16, #tpu.memory_space<vmem>>, vector<64x32xbf16>
    %cst_15 = arith.constant dense<0.000000e+00> : vector<96x32xf32>
    %18 = tpu.matmul %2, %17, %cst_15 {dimension_numbers = #tpu.dot_dimension_numbers<[1], [0], [0], [1], [0, 0, 1, 1], [], []>} : vector<96x64xbf16>, vector<64x32xbf16>, vector<96x32xf32> -> vector<96x32xf32>
    %19 = arith.truncf %18 : vector<96x32xf32> to vector<96x32xbf16>
    %20 = tpu.concatenate %7, %10, %13, %16, %19 in 0 : vector<96x32xbf16>, vector<96x32xbf16>, vector<96x32xbf16>, vector<96x32xbf16>, vector<96x32xbf16> -> vector<480x32xbf16>
    %cst_16 = arith.constant dense<0.000000e+00> : vector<64x32xf32>
    %21 = tpu.matmul %3, %20, %cst_16 {dimension_numbers = #tpu.dot_dimension_numbers<[1], [0], [0], [1], [0, 0, 1, 1], [], []>} : vector<64x480xbf16>, vector<480x32xbf16>, vector<64x32xf32> -> vector<64x32xf32>
    %22 = vector.broadcast %4 : vector<64x1xf32> to vector<64x32xf32>
    %23 = arith.addf %21, %22 : vector<64x32xf32>
    %cst_17 = arith.constant 0.000000e+00 : f32
    %24 = vector.broadcast %cst_17 : f32 to vector<64x32xf32>
    %25 = arith.maximumf %23, %24 : vector<64x32xf32>
    %26 = arith.truncf %25 : vector<64x32xf32> to vector<64x32xbf16>
    %c64_18 = arith.constant 64 : index
    %c0_19 = arith.constant 0 : index
    %27 = vector.load %arg2[%c64_18, %c0_19] : memref<1328x480xbf16, #tpu.memory_space<vmem>>, vector<64x320xbf16>
    %c64_20 = arith.constant 64 : index
    %c0_21 = arith.constant 0 : index
    %28 = vector.load %arg4[%c64_20, %c0_21] : memref<480x10xf32, #tpu.memory_space<vmem>>, vector<64x1xf32>
    %c320 = arith.constant 320 : index
    %c0_22 = arith.constant 0 : index
    %29 = vector.load %arg3[%c320, %c0_22] : memref<864x64xbf16, #tpu.memory_space<vmem>>, vector<32x16xbf16>
    %cst_23 = arith.constant dense<0.000000e+00> : vector<64x16xf32>
    %30 = tpu.matmul %26, %29, %cst_23 {dimension_numbers = #tpu.dot_dimension_numbers<[1], [0], [0], [1], [0, 0, 1, 1], [], []>} : vector<64x32xbf16>, vector<32x16xbf16>, vector<64x16xf32> -> vector<64x16xf32>
    %31 = arith.truncf %30 : vector<64x16xf32> to vector<64x16xbf16>
    %c352 = arith.constant 352 : index
    %c0_24 = arith.constant 0 : index
    %32 = vector.load %arg3[%c352, %c0_24] : memref<864x64xbf16, #tpu.memory_space<vmem>>, vector<32x16xbf16>
    %cst_25 = arith.constant dense<0.000000e+00> : vector<64x16xf32>
    %33 = tpu.matmul %26, %32, %cst_25 {dimension_numbers = #tpu.dot_dimension_numbers<[1], [0], [0], [1], [0, 0, 1, 1], [], []>} : vector<64x32xbf16>, vector<32x16xbf16>, vector<64x16xf32> -> vector<64x16xf32>
    %34 = arith.truncf %33 : vector<64x16xf32> to vector<64x16xbf16>
    %c384 = arith.constant 384 : index
    %c0_26 = arith.constant 0 : index
    %35 = vector.load %arg3[%c384, %c0_26] : memref<864x64xbf16, #tpu.memory_space<vmem>>, vector<32x16xbf16>
    %cst_27 = arith.constant dense<0.000000e+00> : vector<64x16xf32>
    %36 = tpu.matmul %26, %35, %cst_27 {dimension_numbers = #tpu.dot_dimension_numbers<[1], [0], [0], [1], [0, 0, 1, 1], [], []>} : vector<64x32xbf16>, vector<32x16xbf16>, vector<64x16xf32> -> vector<64x16xf32>
    %37 = arith.truncf %36 : vector<64x16xf32> to vector<64x16xbf16>
    %c416 = arith.constant 416 : index
    %c0_28 = arith.constant 0 : index
    %38 = vector.load %arg3[%c416, %c0_28] : memref<864x64xbf16, #tpu.memory_space<vmem>>, vector<32x16xbf16>
    %cst_29 = arith.constant dense<0.000000e+00> : vector<64x16xf32>
    %39 = tpu.matmul %26, %38, %cst_29 {dimension_numbers = #tpu.dot_dimension_numbers<[1], [0], [0], [1], [0, 0, 1, 1], [], []>} : vector<64x32xbf16>, vector<32x16xbf16>, vector<64x16xf32> -> vector<64x16xf32>
    %40 = arith.truncf %39 : vector<64x16xf32> to vector<64x16xbf16>
    %c448 = arith.constant 448 : index
    %c0_30 = arith.constant 0 : index
    %41 = vector.load %arg3[%c448, %c0_30] : memref<864x64xbf16, #tpu.memory_space<vmem>>, vector<32x16xbf16>
    %cst_31 = arith.constant dense<0.000000e+00> : vector<64x16xf32>
    %42 = tpu.matmul %26, %41, %cst_31 {dimension_numbers = #tpu.dot_dimension_numbers<[1], [0], [0], [1], [0, 0, 1, 1], [], []>} : vector<64x32xbf16>, vector<32x16xbf16>, vector<64x16xf32> -> vector<64x16xf32>
    %43 = arith.truncf %42 : vector<64x16xf32> to vector<64x16xbf16>
    %44 = tpu.concatenate %31, %34, %37, %40, %43 in 0 : vector<64x16xbf16>, vector<64x16xbf16>, vector<64x16xbf16>, vector<64x16xbf16>, vector<64x16xbf16> -> vector<320x16xbf16>
    %cst_32 = arith.constant dense<0.000000e+00> : vector<64x16xf32>
    %45 = tpu.matmul %27, %44, %cst_32 {dimension_numbers = #tpu.dot_dimension_numbers<[1], [0], [0], [1], [0, 0, 1, 1], [], []>} : vector<64x320xbf16>, vector<320x16xbf16>, vector<64x16xf32> -> vector<64x16xf32>
    %46 = vector.broadcast %28 : vector<64x1xf32> to vector<64x16xf32>
    %47 = arith.addf %45, %46 : vector<64x16xf32>
    %cst_33 = arith.constant 0.000000e+00 : f32
    %48 = vector.broadcast %cst_33 : f32 to vector<64x16xf32>
    %49 = arith.maximumf %47, %48 : vector<64x16xf32>
    %50 = arith.truncf %49 : vector<64x16xf32> to vector<64x16xbf16>
    %c128_34 = arith.constant 128 : index
    %c0_35 = arith.constant 0 : index
    %51 = vector.load %arg2[%c128_34, %c0_35] : memref<1328x480xbf16, #tpu.memory_space<vmem>>, vector<48x192xbf16>
    %c128_36 = arith.constant 128 : index
    %c0_37 = arith.constant 0 : index
    %52 = vector.load %arg4[%c128_36, %c0_37] : memref<480x10xf32, #tpu.memory_space<vmem>>, vector<48x1xf32>
    %c480 = arith.constant 480 : index
    %c0_38 = arith.constant 0 : index
    %53 = vector.load %arg3[%c480, %c0_38] : memref<864x64xbf16, #tpu.memory_space<vmem>>, vector<16x6xbf16>
    %cst_39 = arith.constant dense<0.000000e+00> : vector<64x6xf32>
    %54 = tpu.matmul %50, %53, %cst_39 {dimension_numbers = #tpu.dot_dimension_numbers<[1], [0], [0], [1], [0, 0, 1, 1], [], []>} : vector<64x16xbf16>, vector<16x6xbf16>, vector<64x6xf32> -> vector<64x6xf32>
    %55 = arith.truncf %54 : vector<64x6xf32> to vector<64x6xbf16>
    %c496 = arith.constant 496 : index
    %c0_40 = arith.constant 0 : index
    %56 = vector.load %arg3[%c496, %c0_40] : memref<864x64xbf16, #tpu.memory_space<vmem>>, vector<16x6xbf16>
    %cst_41 = arith.constant dense<0.000000e+00> : vector<64x6xf32>
    %57 = tpu.matmul %50, %56, %cst_41 {dimension_numbers = #tpu.dot_dimension_numbers<[1], [0], [0], [1], [0, 0, 1, 1], [], []>} : vector<64x16xbf16>, vector<16x6xbf16>, vector<64x6xf32> -> vector<64x6xf32>
    %58 = arith.truncf %57 : vector<64x6xf32> to vector<64x6xbf16>
    %c512 = arith.constant 512 : index
    %c0_42 = arith.constant 0 : index
    %59 = vector.load %arg3[%c512, %c0_42] : memref<864x64xbf16, #tpu.memory_space<vmem>>, vector<16x6xbf16>
    %cst_43 = arith.constant dense<0.000000e+00> : vector<64x6xf32>
    %60 = tpu.matmul %50, %59, %cst_43 {dimension_numbers = #tpu.dot_dimension_numbers<[1], [0], [0], [1], [0, 0, 1, 1], [], []>} : vector<64x16xbf16>, vector<16x6xbf16>, vector<64x6xf32> -> vector<64x6xf32>
    %61 = arith.truncf %60 : vector<64x6xf32> to vector<64x6xbf16>
    %62 = tpu.concatenate %55, %58, %61 in 0 : vector<64x6xbf16>, vector<64x6xbf16>, vector<64x6xbf16> -> vector<192x6xbf16>
    %cst_44 = arith.constant dense<0.000000e+00> : vector<48x6xf32>
    %63 = tpu.matmul %51, %62, %cst_44 {dimension_numbers = #tpu.dot_dimension_numbers<[1], [0], [0], [1], [0, 0, 1, 1], [], []>} : vector<48x192xbf16>, vector<192x6xbf16>, vector<48x6xf32> -> vector<48x6xf32>
    %64 = vector.broadcast %52 : vector<48x1xf32> to vector<48x6xf32>
    %65 = arith.addf %63, %64 : vector<48x6xf32>
    %cst_45 = arith.constant 0.000000e+00 : f32
    %66 = vector.broadcast %cst_45 : f32 to vector<48x6xf32>
    %67 = arith.maximumf %65, %66 : vector<48x6xf32>
    %68 = arith.truncf %67 : vector<48x6xf32> to vector<48x6xbf16>
    %c176 = arith.constant 176 : index
    %c0_46 = arith.constant 0 : index
    %69 = vector.load %arg2[%c176, %c0_46] : memref<1328x480xbf16, #tpu.memory_space<vmem>>, vector<10x144xbf16>
    %c176_47 = arith.constant 176 : index
    %c0_48 = arith.constant 0 : index
    %70 = vector.load %arg4[%c176_47, %c0_48] : memref<480x10xf32, #tpu.memory_space<vmem>>, vector<10x1xf32>
    %c528 = arith.constant 528 : index
    %c0_49 = arith.constant 0 : index
    %71 = vector.load %arg3[%c528, %c0_49] : memref<864x64xbf16, #tpu.memory_space<vmem>>, vector<6x2xbf16>
    %cst_50 = arith.constant dense<0.000000e+00> : vector<48x2xf32>
    %72 = tpu.matmul %68, %71, %cst_50 {dimension_numbers = #tpu.dot_dimension_numbers<[1], [0], [0], [1], [0, 0, 1, 1], [], []>} : vector<48x6xbf16>, vector<6x2xbf16>, vector<48x2xf32> -> vector<48x2xf32>
    %73 = arith.truncf %72 : vector<48x2xf32> to vector<48x2xbf16>
    %c544 = arith.constant 544 : index
    %c0_51 = arith.constant 0 : index
    %74 = vector.load %arg3[%c544, %c0_51] : memref<864x64xbf16, #tpu.memory_space<vmem>>, vector<6x2xbf16>
    %cst_52 = arith.constant dense<0.000000e+00> : vector<48x2xf32>
    %75 = tpu.matmul %68, %74, %cst_52 {dimension_numbers = #tpu.dot_dimension_numbers<[1], [0], [0], [1], [0, 0, 1, 1], [], []>} : vector<48x6xbf16>, vector<6x2xbf16>, vector<48x2xf32> -> vector<48x2xf32>
    %76 = arith.truncf %75 : vector<48x2xf32> to vector<48x2xbf16>
    %c560 = arith.constant 560 : index
    %c0_53 = arith.constant 0 : index
    %77 = vector.load %arg3[%c560, %c0_53] : memref<864x64xbf16, #tpu.memory_space<vmem>>, vector<6x2xbf16>
    %cst_54 = arith.constant dense<0.000000e+00> : vector<48x2xf32>
    %78 = tpu.matmul %68, %77, %cst_54 {dimension_numbers = #tpu.dot_dimension_numbers<[1], [0], [0], [1], [0, 0, 1, 1], [], []>} : vector<48x6xbf16>, vector<6x2xbf16>, vector<48x2xf32> -> vector<48x2xf32>
    %79 = arith.truncf %78 : vector<48x2xf32> to vector<48x2xbf16>
    %80 = tpu.concatenate %73, %76, %79 in 0 : vector<48x2xbf16>, vector<48x2xbf16>, vector<48x2xbf16> -> vector<144x2xbf16>
    %cst_55 = arith.constant dense<0.000000e+00> : vector<10x2xf32>
    %81 = tpu.matmul %69, %80, %cst_55 {dimension_numbers = #tpu.dot_dimension_numbers<[1], [0], [0], [1], [0, 0, 1, 1], [], []>} : vector<10x144xbf16>, vector<144x2xbf16>, vector<10x2xf32> -> vector<10x2xf32>
    %82 = vector.broadcast %70 : vector<10x1xf32> to vector<10x2xf32>
    %83 = arith.addf %81, %82 : vector<10x2xf32>
    %84 = arith.truncf %83 : vector<10x2xf32> to vector<10x2xbf16>
    %c192_56 = arith.constant 192 : index
    %c0_57 = arith.constant 0 : index
    %85 = vector.load %arg2[%c192_56, %c0_57] : memref<1328x480xbf16, #tpu.memory_space<vmem>>, vector<144x10xbf16>
    %c192_58 = arith.constant 192 : index
    %c0_59 = arith.constant 0 : index
    %86 = vector.load %arg4[%c192_58, %c0_59] : memref<480x10xf32, #tpu.memory_space<vmem>>, vector<48x6xf32>
    %cst_60 = arith.constant dense<0.000000e+00> : vector<144x2xf32>
    %87 = tpu.matmul %85, %84, %cst_60 {dimension_numbers = #tpu.dot_dimension_numbers<[1], [0], [0], [1], [0, 0, 1, 1], [], []>} : vector<144x10xbf16>, vector<10x2xbf16>, vector<144x2xf32> -> vector<144x2xf32>
    %88 = vector.extract_strided_slice %87 {offsets = [0, 0], sizes = [48, 2], strides = [1, 1]} : vector<144x2xf32> to vector<48x2xf32>
    %89 = arith.truncf %88 : vector<48x2xf32> to vector<48x2xbf16>
    %90 = vector.extract_strided_slice %87 {offsets = [48, 0], sizes = [48, 2], strides = [1, 1]} : vector<144x2xf32> to vector<48x2xf32>
    %91 = arith.truncf %90 : vector<48x2xf32> to vector<48x2xbf16>
    %92 = vector.extract_strided_slice %87 {offsets = [96, 0], sizes = [48, 2], strides = [1, 1]} : vector<144x2xf32> to vector<48x2xf32>
    %93 = arith.truncf %92 : vector<48x2xf32> to vector<48x2xbf16>
    %94 = tpu.concatenate %89, %91, %93 in 1 : vector<48x2xbf16>, vector<48x2xbf16>, vector<48x2xbf16> -> vector<48x6xbf16>
    %c576 = arith.constant 576 : index
    %c0_61 = arith.constant 0 : index
    %95 = vector.load %arg3[%c576, %c0_61] : memref<864x64xbf16, #tpu.memory_space<vmem>>, vector<6x6xbf16>
    %cst_62 = arith.constant dense<0.000000e+00> : vector<48x6xf32>
    %96 = tpu.matmul %94, %95, %cst_62 {dimension_numbers = #tpu.dot_dimension_numbers<[1], [0], [0], [1], [0, 0, 1, 1], [], []>} : vector<48x6xbf16>, vector<6x6xbf16>, vector<48x6xf32> -> vector<48x6xf32>
    %97 = arith.addf %96, %86 : vector<48x6xf32>
    %cst_63 = arith.constant 0.000000e+00 : f32
    %98 = vector.broadcast %cst_63 : f32 to vector<48x6xf32>
    %99 = arith.maximumf %97, %98 : vector<48x6xf32>
    %100 = arith.truncf %99 : vector<48x6xf32> to vector<48x6xbf16>
    %c336 = arith.constant 336 : index
    %c0_64 = arith.constant 0 : index
    %101 = vector.load %arg2[%c336, %c0_64] : memref<1328x480xbf16, #tpu.memory_space<vmem>>, vector<192x48xbf16>
    %c240 = arith.constant 240 : index
    %c0_65 = arith.constant 0 : index
    %102 = vector.load %arg4[%c240, %c0_65] : memref<480x10xf32, #tpu.memory_space<vmem>>, vector<64x1xf32>
    %cst_66 = arith.constant dense<0.000000e+00> : vector<192x6xf32>
    %103 = tpu.matmul %101, %100, %cst_66 {dimension_numbers = #tpu.dot_dimension_numbers<[1], [0], [0], [1], [0, 0, 1, 1], [], []>} : vector<192x48xbf16>, vector<48x6xbf16>, vector<192x6xf32> -> vector<192x6xf32>
    %104 = vector.extract_strided_slice %103 {offsets = [0, 0], sizes = [64, 6], strides = [1, 1]} : vector<192x6xf32> to vector<64x6xf32>
    %105 = arith.truncf %104 : vector<64x6xf32> to vector<64x6xbf16>
    %106 = vector.extract_strided_slice %103 {offsets = [64, 0], sizes = [64, 6], strides = [1, 1]} : vector<192x6xf32> to vector<64x6xf32>
    %107 = arith.truncf %106 : vector<64x6xf32> to vector<64x6xbf16>
    %108 = vector.extract_strided_slice %103 {offsets = [128, 0], sizes = [64, 6], strides = [1, 1]} : vector<192x6xf32> to vector<64x6xf32>
    %109 = arith.truncf %108 : vector<64x6xf32> to vector<64x6xbf16>
    %110 = tpu.concatenate %105, %107, %109 in 1 : vector<64x6xbf16>, vector<64x6xbf16>, vector<64x6xbf16> -> vector<64x18xbf16>
    %c592 = arith.constant 592 : index
    %c0_67 = arith.constant 0 : index
    %111 = vector.load %arg3[%c592, %c0_67] : memref<864x64xbf16, #tpu.memory_space<vmem>>, vector<18x16xbf16>
    %cst_68 = arith.constant dense<0.000000e+00> : vector<64x16xf32>
    %112 = tpu.matmul %110, %111, %cst_68 {dimension_numbers = #tpu.dot_dimension_numbers<[1], [0], [0], [1], [0, 0, 1, 1], [], []>} : vector<64x18xbf16>, vector<18x16xbf16>, vector<64x16xf32> -> vector<64x16xf32>
    %113 = vector.broadcast %102 : vector<64x1xf32> to vector<64x16xf32>
    %114 = arith.addf %112, %113 : vector<64x16xf32>
    %cst_69 = arith.constant 0.000000e+00 : f32
    %115 = vector.broadcast %cst_69 : f32 to vector<64x16xf32>
    %116 = arith.maximumf %114, %115 : vector<64x16xf32>
    %117 = arith.truncf %116 : vector<64x16xf32> to vector<64x16xbf16>
    %c528_70 = arith.constant 528 : index
    %c0_71 = arith.constant 0 : index
    %118 = vector.load %arg2[%c528_70, %c0_71] : memref<1328x480xbf16, #tpu.memory_space<vmem>>, vector<320x64xbf16>
    %c304 = arith.constant 304 : index
    %c0_72 = arith.constant 0 : index
    %119 = vector.load %arg4[%c304, %c0_72] : memref<480x10xf32, #tpu.memory_space<vmem>>, vector<64x1xf32>
    %cst_73 = arith.constant dense<0.000000e+00> : vector<320x16xf32>
    %120 = tpu.matmul %118, %117, %cst_73 {dimension_numbers = #tpu.dot_dimension_numbers<[1], [0], [0], [1], [0, 0, 1, 1], [], []>} : vector<320x64xbf16>, vector<64x16xbf16>, vector<320x16xf32> -> vector<320x16xf32>
    %121 = vector.extract_strided_slice %120 {offsets = [0, 0], sizes = [64, 16], strides = [1, 1]} : vector<320x16xf32> to vector<64x16xf32>
    %122 = arith.truncf %121 : vector<64x16xf32> to vector<64x16xbf16>
    %123 = vector.extract_strided_slice %120 {offsets = [64, 0], sizes = [64, 16], strides = [1, 1]} : vector<320x16xf32> to vector<64x16xf32>
    %124 = arith.truncf %123 : vector<64x16xf32> to vector<64x16xbf16>
    %125 = vector.extract_strided_slice %120 {offsets = [128, 0], sizes = [64, 16], strides = [1, 1]} : vector<320x16xf32> to vector<64x16xf32>
    %126 = arith.truncf %125 : vector<64x16xf32> to vector<64x16xbf16>
    %127 = vector.extract_strided_slice %120 {offsets = [192, 0], sizes = [64, 16], strides = [1, 1]} : vector<320x16xf32> to vector<64x16xf32>
    %128 = arith.truncf %127 : vector<64x16xf32> to vector<64x16xbf16>
    %129 = vector.extract_strided_slice %120 {offsets = [256, 0], sizes = [64, 16], strides = [1, 1]} : vector<320x16xf32> to vector<64x16xf32>
    %130 = arith.truncf %129 : vector<64x16xf32> to vector<64x16xbf16>
    %131 = tpu.concatenate %122, %124, %126, %128, %130 in 1 : vector<64x16xbf16>, vector<64x16xbf16>, vector<64x16xbf16>, vector<64x16xbf16>, vector<64x16xbf16> -> vector<64x80xbf16>
    %c624 = arith.constant 624 : index
    %c0_74 = arith.constant 0 : index
    %132 = vector.load %arg3[%c624, %c0_74] : memref<864x64xbf16, #tpu.memory_space<vmem>>, vector<80x32xbf16>
    %cst_75 = arith.constant dense<0.000000e+00> : vector<64x32xf32>
    %133 = tpu.matmul %131, %132, %cst_75 {dimension_numbers = #tpu.dot_dimension_numbers<[1], [0], [0], [1], [0, 0, 1, 1], [], []>} : vector<64x80xbf16>, vector<80x32xbf16>, vector<64x32xf32> -> vector<64x32xf32>
    %134 = vector.broadcast %119 : vector<64x1xf32> to vector<64x32xf32>
    %135 = arith.addf %133, %134 : vector<64x32xf32>
    %cst_76 = arith.constant 0.000000e+00 : f32
    %136 = vector.broadcast %cst_76 : f32 to vector<64x32xf32>
    %137 = arith.maximumf %135, %136 : vector<64x32xf32>
    %138 = arith.truncf %137 : vector<64x32xf32> to vector<64x32xbf16>
    %c848 = arith.constant 848 : index
    %c0_77 = arith.constant 0 : index
    %139 = vector.load %arg2[%c848, %c0_77] : memref<1328x480xbf16, #tpu.memory_space<vmem>>, vector<480x64xbf16>
    %c368 = arith.constant 368 : index
    %c0_78 = arith.constant 0 : index
    %140 = vector.load %arg4[%c368, %c0_78] : memref<480x10xf32, #tpu.memory_space<vmem>>, vector<96x1xf32>
    %cst_79 = arith.constant dense<0.000000e+00> : vector<480x32xf32>
    %141 = tpu.matmul %139, %138, %cst_79 {dimension_numbers = #tpu.dot_dimension_numbers<[1], [0], [0], [1], [0, 0, 1, 1], [], []>} : vector<480x64xbf16>, vector<64x32xbf16>, vector<480x32xf32> -> vector<480x32xf32>
    %142 = vector.extract_strided_slice %141 {offsets = [0, 0], sizes = [96, 32], strides = [1, 1]} : vector<480x32xf32> to vector<96x32xf32>
    %143 = arith.truncf %142 : vector<96x32xf32> to vector<96x32xbf16>
    %144 = vector.extract_strided_slice %141 {offsets = [96, 0], sizes = [96, 32], strides = [1, 1]} : vector<480x32xf32> to vector<96x32xf32>
    %145 = arith.truncf %144 : vector<96x32xf32> to vector<96x32xbf16>
    %146 = vector.extract_strided_slice %141 {offsets = [192, 0], sizes = [96, 32], strides = [1, 1]} : vector<480x32xf32> to vector<96x32xf32>
    %147 = arith.truncf %146 : vector<96x32xf32> to vector<96x32xbf16>
    %148 = vector.extract_strided_slice %141 {offsets = [288, 0], sizes = [96, 32], strides = [1, 1]} : vector<480x32xf32> to vector<96x32xf32>
    %149 = arith.truncf %148 : vector<96x32xf32> to vector<96x32xbf16>
    %150 = vector.extract_strided_slice %141 {offsets = [384, 0], sizes = [96, 32], strides = [1, 1]} : vector<480x32xf32> to vector<96x32xf32>
    %151 = arith.truncf %150 : vector<96x32xf32> to vector<96x32xbf16>
    %152 = tpu.concatenate %143, %145, %147, %149, %151 in 1 : vector<96x32xbf16>, vector<96x32xbf16>, vector<96x32xbf16>, vector<96x32xbf16>, vector<96x32xbf16> -> vector<96x160xbf16>
    %c704 = arith.constant 704 : index
    %c0_80 = arith.constant 0 : index
    %153 = vector.load %arg3[%c704, %c0_80] : memref<864x64xbf16, #tpu.memory_space<vmem>>, vector<160x64xbf16>
    %cst_81 = arith.constant dense<0.000000e+00> : vector<96x64xf32>
    %154 = tpu.matmul %152, %153, %cst_81 {dimension_numbers = #tpu.dot_dimension_numbers<[1], [0], [0], [1], [0, 0, 1, 1], [], []>} : vector<96x160xbf16>, vector<160x64xbf16>, vector<96x64xf32> -> vector<96x64xf32>
    %155 = vector.broadcast %140 : vector<96x1xf32> to vector<96x64xf32>
    %156 = arith.addf %154, %155 : vector<96x64xf32>
    %c0_82 = arith.constant 0 : index
    %c0_83 = arith.constant 0 : index
    %c0_84 = arith.constant 0 : index
    %157 = vector.load %arg5[%c0_82, %c0_83, %c0_84] : memref<1x96x64xf32, #tpu.memory_space<vmem>>, vector<1x96x64xf32>
    %158 = vector.shape_cast %157 : vector<1x96x64xf32> to vector<96x64xf32>
    %159 = vector.shape_cast %156 : vector<96x64xf32> to vector<1x96x64xf32>
    tpu.vector_store %arg5[%c0_82, %c0_83, %c0_84], %159 {strides = array<i32>} : memref<1x96x64xf32, #tpu.memory_space<vmem>>, vector<1x96x64xf32>,
    %c464 = arith.constant 464 : index
    %c0_85 = arith.constant 0 : index
    %160 = vector.load %arg4[%c464, %c0_85] : memref<480x10xf32, #tpu.memory_space<vmem>>, vector<10x10xf32>
    %cst_86 = arith.constant 0.000000e+00 : f32
    %161 = vector.broadcast %cst_86 : f32 to vector<10x2xf32>
    %162 = vector.extract_strided_slice %160 {offsets = [0, 0], sizes = [10, 1], strides = [1, 1]} : vector<10x10xf32> to vector<10x1xf32>
    %163 = vector.extract_strided_slice %83 {offsets = [0, 0], sizes = [1, 2], strides = [1, 1]} : vector<10x2xf32> to vector<1x2xf32>
    %164 = vector.broadcast %162 : vector<10x1xf32> to vector<10x2xf32>
    %165 = vector.broadcast %163 : vector<1x2xf32> to vector<10x2xf32>
    %166 = arith.subf %164, %165 : vector<10x2xf32>
    %167 = arith.mulf %166, %166 : vector<10x2xf32>
    %168 = arith.addf %161, %167 : vector<10x2xf32>
    %169 = vector.extract_strided_slice %160 {offsets = [0, 1], sizes = [10, 1], strides = [1, 1]} : vector<10x10xf32> to vector<10x1xf32>
    %170 = vector.extract_strided_slice %83 {offsets = [1, 0], sizes = [1, 2], strides = [1, 1]} : vector<10x2xf32> to vector<1x2xf32>
    %171 = vector.broadcast %169 : vector<10x1xf32> to vector<10x2xf32>
    %172 = vector.broadcast %170 : vector<1x2xf32> to vector<10x2xf32>
    %173 = arith.subf %171, %172 : vector<10x2xf32>
    %174 = arith.mulf %173, %173 : vector<10x2xf32>
    %175 = arith.addf %168, %174 : vector<10x2xf32>
    %176 = vector.extract_strided_slice %160 {offsets = [0, 2], sizes = [10, 1], strides = [1, 1]} : vector<10x10xf32> to vector<10x1xf32>
    %177 = vector.extract_strided_slice %83 {offsets = [2, 0], sizes = [1, 2], strides = [1, 1]} : vector<10x2xf32> to vector<1x2xf32>
    %178 = vector.broadcast %176 : vector<10x1xf32> to vector<10x2xf32>
    %179 = vector.broadcast %177 : vector<1x2xf32> to vector<10x2xf32>
    %180 = arith.subf %178, %179 : vector<10x2xf32>
    %181 = arith.mulf %180, %180 : vector<10x2xf32>
    %182 = arith.addf %175, %181 : vector<10x2xf32>
    %183 = vector.extract_strided_slice %160 {offsets = [0, 3], sizes = [10, 1], strides = [1, 1]} : vector<10x10xf32> to vector<10x1xf32>
    %184 = vector.extract_strided_slice %83 {offsets = [3, 0], sizes = [1, 2], strides = [1, 1]} : vector<10x2xf32> to vector<1x2xf32>
    %185 = vector.broadcast %183 : vector<10x1xf32> to vector<10x2xf32>
    %186 = vector.broadcast %184 : vector<1x2xf32> to vector<10x2xf32>
    %187 = arith.subf %185, %186 : vector<10x2xf32>
    %188 = arith.mulf %187, %187 : vector<10x2xf32>
    %189 = arith.addf %182, %188 : vector<10x2xf32>
    %190 = vector.extract_strided_slice %160 {offsets = [0, 4], sizes = [10, 1], strides = [1, 1]} : vector<10x10xf32> to vector<10x1xf32>
    %191 = vector.extract_strided_slice %83 {offsets = [4, 0], sizes = [1, 2], strides = [1, 1]} : vector<10x2xf32> to vector<1x2xf32>
    %192 = vector.broadcast %190 : vector<10x1xf32> to vector<10x2xf32>
    %193 = vector.broadcast %191 : vector<1x2xf32> to vector<10x2xf32>
    %194 = arith.subf %192, %193 : vector<10x2xf32>
    %195 = arith.mulf %194, %194 : vector<10x2xf32>
    %196 = arith.addf %189, %195 : vector<10x2xf32>
    %197 = vector.extract_strided_slice %160 {offsets = [0, 5], sizes = [10, 1], strides = [1, 1]} : vector<10x10xf32> to vector<10x1xf32>
    %198 = vector.extract_strided_slice %83 {offsets = [5, 0], sizes = [1, 2], strides = [1, 1]} : vector<10x2xf32> to vector<1x2xf32>
    %199 = vector.broadcast %197 : vector<10x1xf32> to vector<10x2xf32>
    %200 = vector.broadcast %198 : vector<1x2xf32> to vector<10x2xf32>
    %201 = arith.subf %199, %200 : vector<10x2xf32>
    %202 = arith.mulf %201, %201 : vector<10x2xf32>
    %203 = arith.addf %196, %202 : vector<10x2xf32>
    %204 = vector.extract_strided_slice %160 {offsets = [0, 6], sizes = [10, 1], strides = [1, 1]} : vector<10x10xf32> to vector<10x1xf32>
    %205 = vector.extract_strided_slice %83 {offsets = [6, 0], sizes = [1, 2], strides = [1, 1]} : vector<10x2xf32> to vector<1x2xf32>
    %206 = vector.broadcast %204 : vector<10x1xf32> to vector<10x2xf32>
    %207 = vector.broadcast %205 : vector<1x2xf32> to vector<10x2xf32>
    %208 = arith.subf %206, %207 : vector<10x2xf32>
    %209 = arith.mulf %208, %208 : vector<10x2xf32>
    %210 = arith.addf %203, %209 : vector<10x2xf32>
    %211 = vector.extract_strided_slice %160 {offsets = [0, 7], sizes = [10, 1], strides = [1, 1]} : vector<10x10xf32> to vector<10x1xf32>
    %212 = vector.extract_strided_slice %83 {offsets = [7, 0], sizes = [1, 2], strides = [1, 1]} : vector<10x2xf32> to vector<1x2xf32>
    %213 = vector.broadcast %211 : vector<10x1xf32> to vector<10x2xf32>
    %214 = vector.broadcast %212 : vector<1x2xf32> to vector<10x2xf32>
    %215 = arith.subf %213, %214 : vector<10x2xf32>
    %216 = arith.mulf %215, %215 : vector<10x2xf32>
    %217 = arith.addf %210, %216 : vector<10x2xf32>
    %218 = vector.extract_strided_slice %160 {offsets = [0, 8], sizes = [10, 1], strides = [1, 1]} : vector<10x10xf32> to vector<10x1xf32>
    %219 = vector.extract_strided_slice %83 {offsets = [8, 0], sizes = [1, 2], strides = [1, 1]} : vector<10x2xf32> to vector<1x2xf32>
    %220 = vector.broadcast %218 : vector<10x1xf32> to vector<10x2xf32>
    %221 = vector.broadcast %219 : vector<1x2xf32> to vector<10x2xf32>
    %222 = arith.subf %220, %221 : vector<10x2xf32>
    %223 = arith.mulf %222, %222 : vector<10x2xf32>
    %224 = arith.addf %217, %223 : vector<10x2xf32>
    %225 = vector.extract_strided_slice %160 {offsets = [0, 9], sizes = [10, 1], strides = [1, 1]} : vector<10x10xf32> to vector<10x1xf32>
    %226 = vector.extract_strided_slice %83 {offsets = [9, 0], sizes = [1, 2], strides = [1, 1]} : vector<10x2xf32> to vector<1x2xf32>
    %227 = vector.broadcast %225 : vector<10x1xf32> to vector<10x2xf32>
    %228 = vector.broadcast %226 : vector<1x2xf32> to vector<10x2xf32>
    %229 = arith.subf %227, %228 : vector<10x2xf32>
    %230 = arith.mulf %229, %229 : vector<10x2xf32>
    %231 = arith.addf %224, %230 : vector<10x2xf32>
    %cst_87 = arith.constant 1.000000e+00 : f32
    %232 = vector.broadcast %cst_87 : f32 to vector<10x2xf32>
    %233 = arith.addf %232, %231 : vector<10x2xf32>
    %cst_88 = arith.constant 1.000000e+00 : f32
    %234 = vector.broadcast %cst_88 : f32 to vector<10x2xf32>
    %235 = arith.divf %234, %233 : vector<10x2xf32>
    %cst_89 = arith.constant dense<0.000000e+00> : vector<2xf32>
    %236 = vector.multi_reduction <add>, %235, %cst_89 [0] : vector<10x2xf32> to vector<2xf32>
    %237 = vector.shape_cast %236 : vector<2xf32> to vector<1x2xf32>
    %238 = vector.broadcast %237 : vector<1x2xf32> to vector<10x2xf32>
    %239 = arith.divf %235, %238 : vector<10x2xf32>
    %240 = tpu.concatenate %83, %239 in 0 : vector<10x2xf32>, vector<10x2xf32> -> vector<20x2xf32>
    %c0_90 = arith.constant 0 : index
    %c0_91 = arith.constant 0 : index
    %c0_92 = arith.constant 0 : index
    %241 = vector.load %arg6[%c0_90, %c0_91, %c0_92] : memref<1x20x2xf32, #tpu.memory_space<vmem>>, vector<1x20x2xf32>
    %242 = vector.shape_cast %241 : vector<1x20x2xf32> to vector<20x2xf32>
    %243 = vector.shape_cast %240 : vector<20x2xf32> to vector<1x20x2xf32>
    tpu.vector_store %arg6[%c0_90, %c0_91, %c0_92], %243 {strides = array<i32>} : memref<1x20x2xf32, #tpu.memory_space<vmem>>, vector<1x20x2xf32>,
    return
  }
  func.func @transform_0(%arg0: i32) -> (i32, i32, i32) {
    %c0_i32 = arith.constant 0 : i32
    %c0_i32_0 = arith.constant 0 : i32
    %c0_i32_1 = arith.constant 0 : i32
    return %arg0, %c0_i32, %c0_i32_0 : i32, i32, i32
  }
  func.func @transform_1(%arg0: i32) -> (i32, i32) {
    %c0_i32 = arith.constant 0 : i32
    %c0_i32_0 = arith.constant 0 : i32
    %c0_i32_1 = arith.constant 0 : i32
    return %c0_i32, %c0_i32_0 : i32, i32
  }
  func.func @transform_2(%arg0: i32) -> (i32, i32) {
    %c0_i32 = arith.constant 0 : i32
    %c0_i32_0 = arith.constant 0 : i32
    %c0_i32_1 = arith.constant 0 : i32
    return %c0_i32, %c0_i32_0 : i32, i32
  }
  func.func @transform_3(%arg0: i32) -> (i32, i32) {
    %c0_i32 = arith.constant 0 : i32
    %c0_i32_0 = arith.constant 0 : i32
    %c0_i32_1 = arith.constant 0 : i32
    return %c0_i32, %c0_i32_0 : i32, i32
  }
  func.func @transform_4(%arg0: i32) -> (i32, i32, i32) {
    %c0_i32 = arith.constant 0 : i32
    %c0_i32_0 = arith.constant 0 : i32
    %c0_i32_1 = arith.constant 0 : i32
    return %arg0, %c0_i32, %c0_i32_0 : i32, i32, i32
  }
  func.func @transform_5(%arg0: i32) -> (i32, i32, i32) {
    %c0_i32 = arith.constant 0 : i32
    %c0_i32_0 = arith.constant 0 : i32
    %c0_i32_1 = arith.constant 0 : i32
    return %arg0, %c0_i32, %c0_i32_0 : i32, i32, i32
  }
}

</mosaic_0001>

<bundles_post_ra>
// kernel: a_call__.1
= control target key start
LH: loop header
LB: loop body
LE: loop exit
PB: predicated region body
PF: predicated region fallthrough
CT: control target
= control target key end

     0   :  { %11 = vsyncpa [#allocation3], 0  ;;  %s7260_s0 = inlined_call_operand.vmem [shape: f32[1,96,64], index: 0, kind: input, shape index: {}]   ;;  %s7261_s1 = inlined_call_operand.hbm [shape: bf16[1328,480], index: 1, kind: input, shape index: {}]   ;;  %s7262_s2 = inlined_call_operand.hbm [shape: bf16[864,64], index: 2, kind: input, shape index: {}]   ;;  %s7263_s3 = inlined_call_operand.hbm [shape: f32[480,10], index: 3, kind: input, shape index: {}]   ;;  %s7264_s4 = inlined_call_operand.vmem [shape: f32[1,96,64], index: 4, kind: output, shape index: {0}]   ;;  %s7265_s5 = inlined_call_operand.vmem [shape: f32[1,20,2], index: 5, kind: output, shape index: {1}]  }
   0x1   :  { %12 = vsyncpa [#allocation5], 0  ;;  %s6411_s18 = smov [#allocation4]  }
   0x2   :  { %s32_s19 = sshll.u32 %s6411_s18, 4  ;;  %s33_s19 = int_to_ptr.vmem [resolvable:$true] %s32_s19 }
   0x3   :  { %s6355_s20 = scalar_lea.vmem %s33_s19, 6912  ;;  %p6360_p1 = scmp.lt.s32.totalorder %s33_s19, %s33_s19 }
   0x4   :  { %p6356_p0 = scmp.ne.s32.totalorder %s33_s19, %s6355_s20  ;;  %p6361_p2 = scmp.lt.s32.totalorder %s6355_s20, %s6355_s20 }
   0x6   :  { %p6362_p3 = por %p6361_p2, %p6360_p1 }
   0x8   :  { %p6363_p4 = pnand %p6362_p3, %p6356_p0 }
   0xa   :  { %6366 = shalt.err (!%p6363_p4)
}
   0xb   :  { %s6412_s21 = smov 64   ;;  %s6413_s22 = smov 4  }
   0xc   :  { %38 = dma.hbm_to_vmem [thread:$0]  %s7262_s2, 6912, %s33_s19, [#allocation5], %s6412_s21, %s6412_s21, %s6413_s22  }
   0xd   :  { %s6414_s25 = smov [#allocation2]  }
   0xe   :  { %s20_s26 = sshll.u32 %s6414_s25, 4  ;;  %s21_s26 = int_to_ptr.vmem [resolvable:$true] %s20_s26 }
   0xf   :  { %s6375_s27 = scalar_lea.vmem %s21_s26, 42496  ;;  %p6380_p6 = scmp.lt.s32.totalorder %s21_s26, %s21_s26 }
  0x10   :  { %p6376_p5 = scmp.ne.s32.totalorder %s21_s26, %s6375_s27  ;;  %p6381_p7 = scmp.lt.s32.totalorder %s6375_s27, %s6375_s27 }
  0x12   :  { %p6382_p8 = por %p6381_p7, %p6380_p6 }
  0x14   :  { %p6383_p9 = pnand %p6382_p8, %p6376_p5 }
  0x16   :  { %6386 = shalt.err (!%p6383_p9)
}
  0x17   :  { %s6415_s28 = smov 256   ;;  %s6416_s29 = smov 16  }
  0x18   :  { %26 = dma.hbm_to_vmem [thread:$0]  %s7261_s1, 42496, %s21_s26, [#allocation3], %s6415_s28, %s6415_s28, %s6416_s29  }
  0x19   :  { %s6417_s7 = smov [#allocation6]  }
  0x1a   :  { %s44_s8 = sshll.u32 %s6417_s7, 4  ;;  %s45_s8 = int_to_ptr.vmem [resolvable:$true] %s44_s8 }
  0x1b   :  { %s6395_s2 = scalar_lea.vmem %s45_s8, 7680  ;;  %p6400_p11 = scmp.lt.s32.totalorder %s45_s8, %s45_s8 }
  0x1c   :  { %p6396_p10 = scmp.ne.s32.totalorder %s45_s8, %s6395_s2  ;;  %p6401_p12 = scmp.lt.s32.totalorder %s6395_s2, %s6395_s2 }
  0x1e   :  { %p6402_p13 = por %p6401_p12, %p6400_p11 }
  0x20   :  { %p6403_p0 = pnand %p6402_p13, %p6396_p10 }
  0x22   :  { %6406 = shalt.err (!%p6403_p0)
}
  0x23   :  { %s6418_s9 = smov 128   ;;  %s6419_s10 = smov 8  }
  0x24   :  { %50 = dma.hbm_to_vmem [thread:$0]  %s7263_s3, 7680, %s45_s8, [#allocation5], %s6418_s9, %s6418_s9, %s6419_s10  }
  0x25   :  { %6407 = dma.done.wait [#allocation3], 42496  }
  0x26   :  { %6408 = vsyncadd [#allocation3], 4294924800 }
  0x27   :  { %6409 = dma.done.wait [#allocation5], 14592  }
  0x28   :  { %6410 = vsyncadd [#allocation5], 4294952704  ;;  %v6168_v0 = vld [vmem:[#allocation4 + $0x18] sm:$0xff]   ;;  %v6170_v2 = vld [vmem:[#allocation4 + $0x10] sm:$0xff]   ;;  %vm135_vm0 = vcmask 523264   ;;  %v6420_v38 = vmov 0  }
  0x29   :  { %v6169_v1 = vld [vmem:[#allocation4 + $0x38] sm:$0xff]   ;;  %5636 = vmatprep.subr.bf16.mxu0 %v6168_v0  ;;  %v6171_v3 = vld [vmem:[#allocation4 + $0x30] sm:$0xff]   ;;  %v6172_v4 = vld [vmem:[#allocation4 + $0x8] sm:$0xff]   ;;  %6148 = vset.pattern.permute.xlu0 %v6420_v38  ;;  %vm833_vm1 = vcmask 785408   ;;  %vm1028_vm2 = vcmask 261120   ;;  %vm1724_vm3 = vcmask 130048  }
  0x2a   :  { %6112 = vmatprep.subr.bf16.mxu1 %v6169_v1  ;;  %5637 = vmatpush3.bf16.msra.mxu0 %v6168_v0  ;;  %v6173_v5 = vld [vmem:[#allocation4 + $0x28] sm:$0xff]   ;;  %v6174_v6 = vld [vmem:[#allocation4] sm:$0xff]   ;;  %v63_v14 = vld [vmem:[%s7260_s0 + $0x10] sm:$0xff]  ;;  %vm2107_vm4 = vcmask 1042432   ;;  %vm6422_vm5 = vmmov 0   ;;  %vm2097_vm6 = vcmask 48128  }
  0x2b   :  { %6116 = vmatpush3.bf16.msra.mxu1 %v6169_v1  ;;  %5638 = vmatprep.subr.bf16.mxu0 %v6170_v2  ;;  %v61_v7 = vld [vmem:[%s7260_s0] sm:$0xff]  ;;  %v62_v8 = vld [vmem:[%s7260_s0 + $0x8] sm:$0xff]  ;;  %v64_v15 = vld [vmem:[%s7260_s0 + $0x18] sm:$0xff]  ;;  %vm2596_vm7 = vcmask 15360   ;;  %vm2460_vm8 = vcmask 1044480   ;;  %vm2432_vm9 = vcmask 80896  }
  0x2c   :  { %6113 = vmatprep.subr.bf16.mxu1 %v6171_v3  ;;  %v65_v9 = vld [vmem:[%s7260_s0 + $0x20] sm:$0xff]  ;;  %v6490_v11 = vpack.c.bf16 %v62_v8, %v61_v7  ;;  %v66_v12 = vld [vmem:[%s7260_s0 + $0x28] sm:$0xff]  ;;  %v67_v16 = vld [vmem:[%s7260_s0 + $0x30] sm:$0xff]  ;;  %v6519_v21 = vpack.c.bf16 %v64_v15, %v63_v14  ;;  %6149 = vset.pattern.permute.xlu1 %v6420_v38  ;;  %s6423_s1 = smov 2   ;;  %vm2606_vm10 = vcmask 31744   ;;  %vm2781_vm11 = vcmask 392192  }
  0x2d   :  { %v6175_v10 = vld [vmem:[#allocation4 + $0x20] sm:$0xff]   ;;  %v6495_v13 = vpack.c.bf16 %v66_v12, %v65_v9  ;;  %v68_v17 = vld [vmem:[%s7260_s0 + $0x38] sm:$0xff]  ;;  %v70_v20 = vld [vmem:[%s7260_s0 + $0x48] sm:$0xff]  ;;  %vm3065_vm12 = vcmask 1040384   ;;  %s6425_s3 = smov 12   ;;  %vm2995_vm13 = vcmask 97280  }
  0x2e   :  { %5639 = vmatpush3.bf16.msra.mxu0 %v6170_v2  ;;  %5644 = vmatprep.mubr.msk.bf16.mxu0 %vm135_vm0, %v6490_v11  ;;  %v6176_v18 = vld [vmem:[#allocation4 + $0x78] sm:$0xff]   ;;  %v69_v19 = vld [vmem:[%s7260_s0 + $0x40] sm:$0xff]  ;;  %v6521_v22 = vpack.c.bf16 %v68_v17, %v67_v16  ;;  %v6177_v24 = vld [vmem:[#allocation4 + $0x70] sm:$0xff]   ;;  %vm3056_vm14 = vcmask 146432   ;;  %s6426_s13 = smov 32   ;;  %vm3731_vm15 = vcmask 654336  }
  0x2f   :  { %6117 = vmatpush3.bf16.msra.mxu1 %v6171_v3  ;;  %5640 = vmatprep.subr.bf16.mxu0 %v6172_v4  ;;  %v6523_v23 = vpack.c.bf16 %v70_v20, %v69_v19  ;;  %v71_v25 = vld [vmem:[%s7260_s0 + $0x50] sm:$0xff]  ;;  %v72_v26 = vld [vmem:[%s7260_s0 + $0x58] sm:$0xff]  ;;  %v6178_v27 = vld [vmem:[#allocation4 + $0x68] sm:$0xff]   ;;  %s6428_s14 = smov 96  }
  0x30   :  { %6114 = vmatprep.subr.bf16.mxu1 %v6173_v5  ;;  %5668 = vmatprep.mubr.msk.bf16.mxu1 %vm135_vm0, %v6495_v13  ;;  %v78_v28 = vpack.c.bf16 %v72_v26, %v71_v25  ;;  %v6179_v29 = vld [vmem:[#allocation4 + $0x60] sm:$0xff]   ;;  %v6180_v30 = vld [vmem:[#allocation4 + $0x58] sm:$0xff]   ;;  %v6181_v31 = vld [vmem:[#allocation4 + $0x50] sm:$0xff]  }
  0x31   :  { %v6182_v32 = vld [vmem:[#allocation4 + $0x48] sm:$0xff]   ;;  %v6183_v33 = vld [vmem:[#allocation4 + $0x40] sm:$0xff]   ;;  %v6184_v34 = vld [vmem:[#allocation4 + $0x98] sm:$0xff]  }
  0x32   :  { %5641 = vmatpush3.bf16.msra.mxu0 %v6172_v4  ;;  %v6185_v35 = vld [vmem:[#allocation4 + $0x90] sm:$0xff]   ;;  %v6186_v36 = vld [vmem:[#allocation4 + $0x88] sm:$0xff]   ;;  %v6187_v37 = vld [vmem:[#allocation4 + $0x80] sm:$0xff]  }
  0x33   :  { %6118 = vmatpush3.bf16.msra.mxu1 %v6173_v5  ;;  %5642 = vmatprep.subr.bf16.mxu0 %v6174_v6  ;;  %v6190_v39 = vld [vmem:[#allocation2 + $0x4] ss:$16 sps:$4 sm:$0xff]   ;;  %v6199_v40 = vld [vmem:[#allocation2 + $0xc] ss:$16 sps:$4 sm:$0xff]  }
  0x34   :  { %6115 = vmatprep.subr.bf16.mxu1 %v6175_v10  ;;  %v95_v50 = vld [vmem:[#allocation6] sm:$0xff]  ;;  %v97_v51 = vld [vmem:[#allocation6 + $0x10] sm:$0xff]  ;;  %v96_v54 = vld [vmem:[#allocation6 + $0x8] sm:$0xff] }
  0x35   :  { %719 = vperm.xlu0 %6148, %v95_v50   ;;  %729 = vperm.xlu1 %6149, %v97_v51   ;;  %v98_v55 = vld [vmem:[#allocation6 + $0x18] sm:$0xff]  ;;  %v99_v60 = vld [vmem:[#allocation6 + $0x20] sm:$0xff]  ;;  %v100_v61 = vld [vmem:[#allocation6 + $0x28] sm:$0xff] }
  0x36   :  { %5643 = vmatpush3.bf16.msra.mxu0 %v6174_v6  ;;  %v101_v2 = vld [vmem:[#allocation6 + $0x30] sm:$0xff]  ;;  %v1004_v8 = vld [vmem:[#allocation6 + $0x40] sm:$0xff]  ;;  %v1005_v9 = vld [vmem:[#allocation6 + $0x48] sm:$0xff] }
  0x37   :  { %6119 = vmatpush3.bf16.msra.mxu1 %v6175_v10  ;;  %5656 = vmatprep.subr.bf16.mxu0 %v6169_v1  ;;  %v1007_v14 = vld [vmem:[#allocation6 + $0x58] sm:$0xff]  ;;  %v1009_v19 = vld [vmem:[#allocation6 + $0x68] sm:$0xff]  ;;  %v1714_v50 = vld [vmem:[#allocation6 + $0xa0] sm:$0xff] }
  0x38   :  { %5696 = vmatprep.subr.bf16.mxu1 %v6176_v18  ;;  %v1715_v51 = vld [vmem:[#allocation6 + $0xa8] sm:$0xff] }
  0x39   :  { %5645 = vmatmul.mubr.msk.bf16.vlgmr.msra.gmra.mxu0 %vm135_vm0, %v6519_v21  ;;  %724 = vperm.xlu0 %6148, %v96_v54  }
  0x3a   :  { %5669 = vmatmul.mubr.msk.bf16.vlgmr.msra.gmra.mxu1 %vm135_vm0, %v6521_v22  ;;  %5648 = vmatprep.mubr.msk.bf16.mxu0 %vm135_vm0, %v6495_v13 }
  0x3b   :  { %5697 = vmatpush3.bf16.msra.mxu1 %v6176_v18  ;;  %5672 = vmatprep.mubr.msk.bf16.mxu1 %vm135_vm0, %v6523_v23  ;;  %v1008_v18 = vld [vmem:[#allocation6 + $0x60] sm:$0xff] }
  0x3c   :  { %5698 = vmatprep.subr.bf16.mxu1 %v6177_v24  ;;  %5657 = vmatpush3.bf16.msra.mxu0 %v6169_v1 }
  0x3d   :  { %5658 = vmatprep.subr.bf16.mxu0 %v6171_v3  ;;  %734 = vperm.xlu1 %6149, %v98_v55  }
  0x3e   :  { %739 = vperm.xlu0 %6148, %v99_v60  }
  0x3f   :  { %5699 = vmatpush3.bf16.msra.mxu1 %v6177_v24  ;;  %v1011_v24 = vld [vmem:[#allocation6 + $0x78] sm:$0xff] }
  0x40   :  { %5700 = vmatprep.subr.bf16.mxu1 %v6178_v27  ;;  %5659 = vmatpush3.bf16.msra.mxu0 %v6171_v3  ;;  %v102_v3 = vld [vmem:[#allocation6 + $0x38] sm:$0xff] }
  0x41   :  { %5649 = vmatmul.mubr.msk.bf16.gmra.mxu0 %vm135_vm0, %v6521_v22  ;;  %5660 = vmatprep.subr.bf16.mxu0 %v6173_v5 }
  0x42   :  { %5673 = vmatmul.mubr.msk.bf16.gmra.mxu1 %vm135_vm0, %v78_v28  ;;  %5652 = vmatprep.mubr.msk.bf16.mxu0 %vm135_vm0, %v6523_v23 }
  0x43   :  { %5701 = vmatpush3.bf16.msra.mxu1 %v6178_v27  ;;  %5704 = vmatprep.mubr.msk.bf16.mxu1 %vm135_vm0, %v6490_v11 }
  0x44   :  { %5702 = vmatprep.subr.bf16.mxu1 %v6179_v29  ;;  %5661 = vmatpush3.bf16.msra.mxu0 %v6173_v5 }
  0x45   :  { %5662 = vmatprep.subr.bf16.mxu0 %v6175_v10  ;;  %744 = vperm.xlu1 %6149, %v100_v61   ;;  %v2094_v61 = vld [vmem:[#allocation6 + $0xb0] sm:$0xff] }
  0x46   :  { %749 = vperm.xlu0 %6148, %v101_v2   ;;  %v2095_v2 = vld [vmem:[#allocation6 + $0xb8] sm:$0x3] }
  0x47   :  { %5703 = vmatpush3.bf16.msra.mxu1 %v6179_v29  ;;  %v1711_v29 = vld [vmem:[#allocation6 + $0x88] sm:$0xff] }
  0x48   :  { %5663 = vmatpush3.bf16.msra.mxu0 %v6175_v10 }
  0x49   :  { %5653 = vmatmul.mubr.msk.bf16.gmra.mxu0 %vm135_vm0, %v78_v28  ;;  %5676 = vmatprep.subr.bf16.mxu0 %v6180_v30 }
  0x4a   :  { %5705 = vmatmul.mubr.msk.bf16.vlgmr.msra.gmra.mxu1 %vm135_vm0, %v6519_v21  ;;  %5664 = vmatprep.mubr.msk.bf16.mxu0 %vm135_vm0, %v6490_v11 }
  0x4b   :  { %5708 = vmatprep.mubr.msk.bf16.mxu1 %vm135_vm0, %v6495_v13  ;;  %754 = vperm.xlu1 %6149, %v102_v3  }
  0x4c   :  { %1452 = vperm.xlu0 %6148, %v1004_v8  }
  0x4f   :  { %1457 = vperm.xlu1 %6149, %v1005_v9  }
  0x51   :  { %5665 = vmatmul.mubr.msk.bf16.vlgmr.msra.gmra.mxu0 %vm135_vm0, %v6519_v21 }
  0x52   :  { %5677 = vmatpush3.bf16.msra.mxu0 %v6180_v30  ;;  %5709 = vmatmul.mubr.msk.bf16.gmra.mxu1 %vm135_vm0, %v6521_v22 }
  0x53   :  { %5678 = vmatprep.subr.bf16.mxu0 %v6181_v31  ;;  %5712 = vmatprep.mubr.msk.bf16.mxu1 %vm135_vm0, %v6523_v23 }
  0x54   :  { %5684 = vmatprep.mubr.msk.bf16.mxu0 %vm135_vm0, %v6490_v11  ;;  %1467 = vperm.xlu1 %6149, %v1007_v14  }
  0x56   :  { %5679 = vmatpush3.bf16.msra.mxu0 %v6181_v31 }
  0x57   :  { %5680 = vmatprep.subr.bf16.mxu0 %v6182_v32 }
  0x58   :  { %1477 = vperm.xlu1 %6149, %v1009_v19  }
  0x5a   :  { %5681 = vmatpush3.bf16.msra.mxu0 %v6182_v32  ;;  %5713 = vmatmul.mubr.msk.bf16.gmra.mxu1 %vm135_vm0, %v78_v28 }
  0x5b   :  { %5682 = vmatprep.subr.bf16.mxu0 %v6183_v33  ;;  %878 = vmatprep.mubr.bf16.mxu1 %v6190_v39 }
  0x5c   :  { %1487 = vperm.xlu1 %6149, %v1011_v24  }
  0x5e   :  { %5683 = vmatpush3.bf16.msra.mxu0 %v6183_v33 }
  0x5f   :  { %5716 = vmatprep.subr.bf16.mxu0 %v6184_v34 }
  0x60   :  { %1967 = vperm.xlu1 %6149, %v1711_v29  }
  0x61   :  { %5685 = vmatmul.mubr.msk.bf16.vlgmr.msra.gmra.mxu0 %vm135_vm0, %v6519_v21 }
  0x62   :  { %5688 = vmatprep.mubr.msk.bf16.mxu0 %vm135_vm0, %v6495_v13  ;;  %5717 = vmatpush3.bf16.msra.mxu0 %v6184_v34 }
  0x63   :  { %5718 = vmatprep.subr.bf16.mxu0 %v6185_v35 }
  0x66   :  { %5719 = vmatpush3.bf16.msra.mxu0 %v6185_v35 }
  0x67   :  { %5720 = vmatprep.subr.bf16.mxu0 %v6186_v36 }
  0x69   :  { %5689 = vmatmul.mubr.msk.bf16.gmra.mxu0 %vm135_vm0, %v6521_v22 }
  0x6a   :  { %5692 = vmatprep.mubr.msk.bf16.mxu0 %vm135_vm0, %v6523_v23  ;;  %5721 = vmatpush3.bf16.msra.mxu0 %v6186_v36  ;;  %v1712_v36 = vld [vmem:[#allocation6 + $0x90] sm:$0xff] }
  0x6b   :  { %5722 = vmatprep.subr.bf16.mxu0 %v6187_v37 }
  0x6e   :  { %5723 = vmatpush3.bf16.msra.mxu0 %v6187_v37  ;;  %v1713_v37 = vld [vmem:[#allocation6 + $0x98] sm:$0xff] }
  0x6f   :  { %911 = vmatprep.subr.bf16.mxu0 %v6420_v38  ;;  %1977 = vperm.xlu1 %6149, %v1713_v37   ;;  %v6205_v37 = vld [vmem:[#allocation2 + $0x28] ss:$16 sps:$4 sm:$0xff]  }
  0x71   :  { %5693 = vmatmul.mubr.msk.bf16.gmra.mxu0 %vm135_vm0, %v78_v28 }
  0x72   :  { %5724 = vmatprep.mubr.msk.bf16.mxu0 %vm135_vm0, %v6490_v11 }
  0x73   :  { %1987 = vperm.xlu1 %6149, %v1715_v51   ;;  %v6211_v51 = vld [vmem:[#allocation2 + $0x68] ss:$16 sps:$4 sm:$0xff]  }
  0x77   :  { %2306 = vperm.xlu1 %6149, %v2095_v2   ;;  %v6686_v2 = vld [vmem:[#allocation4 + $0xb8] sm:$0xff]  }
  0x79   :  { %5725 = vmatmul.mubr.msk.bf16.vlgmr.msra.gmra.mxu0 %vm135_vm0, %v6519_v21 }
  0x7a   :  { %5728 = vmatprep.mubr.msk.bf16.mxu0 %vm135_vm0, %v6495_v13  ;;  %v1006_v13 = vld [vmem:[#allocation6 + $0x50] sm:$0xff] }
  0x7b   :  { %1462 = vperm.xlu0 %6148, %v1006_v13  }
  0x7f   :  { %1472 = vperm.xlu0 %6148, %v1008_v18  }
  0x81   :  { %5729 = vmatmul.mubr.msk.bf16.gmra.mxu0 %vm135_vm0, %v6521_v22 }
  0x82   :  { %5732 = vmatprep.mubr.msk.bf16.mxu0 %vm135_vm0, %v6523_v23  ;;  %v1010_v23 = vld [vmem:[#allocation6 + $0x70] sm:$0xff] }
  0x83   :  { %1482 = vperm.xlu0 %6148, %v1010_v23  }
  0x89   :  { %5733 = vmatmul.mubr.msk.bf16.gmra.mxu0 %vm135_vm0, %v78_v28  ;;  %v1710_v28 = vld [vmem:[#allocation6 + $0x80] sm:$0xff] }
  0x8a   :  { %5077 = vmatprep.mubr.msk.bf16.mxu0 %vm833_vm1, %v6199_v40  ;;  %1962 = vperm.xlu0 %6148, %v1710_v28  }
  0x8e   :  { %1972 = vperm.xlu0 %6148, %v1712_v36   ;;  %v6203_v36 = vld [vmem:[#allocation2 + $0x2c] ss:$16 sps:$4 sm:$0xff]  }
  0x92   :  { %1982 = vperm.xlu0 %6148, %v1714_v50   ;;  %v6209_v50 = vld [vmem:[#allocation2 + $0x6c] ss:$16 sps:$4 sm:$0xff]  }
  0x96   :  { %2301 = vperm.xlu0 %6148, %v2094_v61   ;;  %v6215_v61 = vld [vmem:[#allocation4 + $0xd0] sm:$0xff]  }
  0xf9   :  { %v6586_v41 = vpop.f32.mrf.mxu0 }
  0xfa   :  { %v6588_v42 = vpop.f32.mrf.mxu1 }
  0xfb   :  { %v6590_v43 = vpop.f32.mrf.mxu0 }
  0xfc   :  { %v6592_v44 = vpop.f32.mrf.mxu1 }
  0xfd   :  { %v6594_v45 = vpop.f32.mrf.mxu0 }
  0xfe   :  { %v236_v46 = vpack.c.bf16 %v6594_v45, %v6586_v41  ;;  %v6598_v47 = vpop.f32.mrf.mxu1  ;;  %v6193_v41 = vld [vmem:[#allocation2 + $0x20] ss:$16 sps:$4 sm:$0xff]   ;;  %v6194_v45 = vld [vmem:[#allocation2 + $0x44] ss:$16 sps:$4 sm:$0xff]  }
  0xff   :  { %v357_v48 = vpack.c.bf16 %v6598_v47, %v6588_v42  ;;  %v6602_v49 = vpop.f32.mrf.mxu0 }
 0x100   :  { %v6604_v52 = vpop.f32.mrf.mxu1 }
 0x101   :  { %v6606_v53 = vpop.f32.mrf.mxu0 }
 0x102   :  { %v6608_v56 = vpop.f32.mrf.mxu1 }
 0x103   :  { %v6610_v57 = vpop.f32.mrf.mxu0 }
 0x104   :  { %v6612_v58 = vpop.f32.mrf.mxu1 }
 0x105   :  { %v6614_v59 = vpop.f32.mrf.mxu0 }
 0x106   :  { %v6616_v62 = vpop.f32.mrf.mxu1 }
 0x107   :  { %v6618_v63 = vpop.f32.mrf.mxu0  ;;  %v359_v28 = vpack.c.bf16 %v6616_v62, %v6608_v56 }
 0x108   :  { %v6620_v0 = vpop.f32.mrf.mxu1 }
 0x109   :  { %v6622_v1 = vpop.f32.mrf.mxu0 }
 0x10a   :  { %v6624_v4 = vpop.f32.mrf.mxu1 }
 0x10b   :  { %v6626_v5 = vpop.f32.mrf.mxu0 }
 0x10c   :  { %v6628_v6 = vpop.f32.mrf.mxu1 }
 0x10d   :  { %v6630_v7 = vpop.f32.mrf.mxu0 }
 0x10e   :  { %v6632_v10 = vpop.f32.mrf.mxu1 }
 0x10f   :  { %v6634_v11 = vpop.f32.mrf.mxu0  ;;  %v593_v14 = vpack.c.bf16 %v6632_v10, %v6624_v4  ;;  %v240_v10 = vpack.c.bf16 %v6630_v7, %v6622_v1  ;;  %v238_v1 = vpack.c.bf16 %v6614_v59, %v6606_v53  ;;  %v356_v53 = vpack.c.bf16 %v6604_v52, %v6592_v44 }
 0x110   :  { %v6636_v12 = vpop.f32.mrf.mxu1 }
 0x111   :  { %v6638_v16 = vpop.f32.mrf.mxu0 }
 0x112   :  { %v5710_v15 = vpop.f32.mrf.mxu1 }
 0x113   :  { %v6640_v21 = vpop.f32.mrf.mxu0 }
 0x114   :  { %v561_v17 = vpop.f32.mrf.mxu1 }
 0x115   :  { %v5667_v26 = vpop.f32.mrf.mxu0 }
 0x116   :  { %v5711_v20 = vpop.f32.mrf.mxu1 }
 0x117   :  { %v310_v31 = vpop.f32.mrf.mxu0  ;;  %v595_v54 = vpack.c.bf16 %v5711_v20, %v5710_v15  ;;  %v355_v15 = vpack.c.bf16 %v5667_v26, %v6638_v16 }
 0x118   :  { %v564_v22 = vpop.f32.mrf.mxu1 }
 0x119   :  { %v594_v3 = vpack.c.bf16 %v564_v22, %v561_v17  ;;  %v592_v17 = vpack.c.bf16 %v6636_v12, %v6628_v6  ;;  %v354_v22 = vpack.c.bf16 %v310_v31, %v6640_v21  ;;  %v239_v6 = vpack.c.bf16 %v6634_v11, %v6626_v5 }
 0x11a   :  { %v5714_v25 = vpop.f32.mrf.mxu1  ;;  %v237_v5 = vpack.c.bf16 %v6618_v63, %v6610_v57  ;;  %v235_v57 = vpack.c.bf16 %v6602_v49, %v6590_v43  ;;  %v6188_v63 = vld [vmem:[#allocation2] ss:$16 sps:$4 sm:$0xff]   ;;  %v6200_v49 = vld [vmem:[#allocation2 + $0x64] ss:$16 sps:$4 sm:$0xff]  }
 0x11c   :  { %v577_v27 = vpop.f32.mrf.mxu1 }
 0x11e   :  { %v5715_v30 = vpop.f32.mrf.mxu1 }
 0x11f   :  { %v597_v32 = vpack.c.bf16 %v5715_v30, %v5714_v25  ;;  %v358_v30 = vpack.c.bf16 %v6620_v0, %v6612_v58 }
 0x120   :  { %v580_v33 = vpop.f32.mrf.mxu1 }
 0x121   :  { %v5686_v34 = vpop.f32.mrf.mxu0  ;;  %912 = vmatpush1.bf16.msra.mxu0 %v597_v32  ;;  %v596_v35 = vpack.c.bf16 %v580_v33, %v577_v27  ;;  %v6191_v32 = vld [vmem:[#allocation2 + $0x24] ss:$16 sps:$4 sm:$0xff]  }
 0x122   :  { %913 = vmatprep.subr.bf16.mxu0 %v6420_v38 }
 0x123   :  { %v426_v39 = vpop.f32.mrf.mxu0 }
 0x125   :  { %v5687_v40 = vpop.f32.mrf.mxu0  ;;  %914 = vmatpush1.bf16.msra.mxu0 %v596_v35  ;;  %v6202_v35 = vld [vmem:[#allocation2 + $0x60] ss:$16 sps:$4 sm:$0xff]  }
 0x126   :  { %915 = vmatprep.subr.bf16.mxu0 %v6420_v38  ;;  %v474_v24 = vpack.c.bf16 %v5687_v40, %v5686_v34  ;;  %v6197_v34 = vld [vmem:[#allocation2 + $0x8] ss:$16 sps:$4 sm:$0xff]  }
 0x127   :  { %v429_v55 = vpop.f32.mrf.mxu0  ;;  %v6208_v40 = vld [vmem:[#allocation2 + $0x48] ss:$16 sps:$4 sm:$0xff]  }
 0x128   :  { %v473_v26 = vpack.c.bf16 %v429_v55, %v426_v39  ;;  %v6206_v39 = vld [vmem:[#allocation2 + $0x4c] ss:$16 sps:$4 sm:$0xff]  }
 0x129   :  { %v5690_v60 = vpop.f32.mrf.mxu0  ;;  %916 = vmatpush1.bf16.msra.mxu0 %v595_v54  ;;  %v6212_v54 = vld [vmem:[#allocation4 + $0xa8] sm:$0xff]   ;;  %v6213_v55 = vld [vmem:[#allocation4 + $0xd8] sm:$0xff]  }
 0x12a   :  { %917 = vmatprep.subr.bf16.mxu0 %v6420_v38 }
 0x12b   :  { %v442_v8 = vpop.f32.mrf.mxu0 }
 0x12d   :  { %v5691_v9 = vpop.f32.mrf.mxu0  ;;  %918 = vmatpush1.bf16.msra.mxu0 %v594_v3 }
 0x12e   :  { %v476_v13 = vpack.c.bf16 %v5691_v9, %v5690_v60  ;;  %919 = vmatprep.subr.bf16.mxu0 %v6420_v38  ;;  %v6214_v60 = vld [vmem:[#allocation4 + $0xa0] sm:$0xff]  }
 0x12f   :  { %v445_v18 = vpop.f32.mrf.mxu0 }
 0x130   :  { %v475_v19 = vpack.c.bf16 %v445_v18, %v442_v8  ;;  %5389 = vmatprep.subr.bf16.mxu1 %v476_v13 }
 0x131   :  { %v5694_v20 = vpop.f32.mrf.mxu0  ;;  %5390 = vmatpush3.bf16.msra.mxu1 %v355_v15  ;;  %920 = vmatpush1.bf16.msra.mxu0 %v593_v14 }
 0x132   :  { %5391 = vmatprep.subr.bf16.mxu1 %v475_v19  ;;  %921 = vmatprep.subr.bf16.mxu0 %v6420_v38 }
 0x133   :  { %v458_v23 = vpop.f32.mrf.mxu0 }
 0x135   :  { %v5695_v25 = vpop.f32.mrf.mxu0  ;;  %5392 = vmatpush3.bf16.msra.mxu1 %v354_v22  ;;  %922 = vmatpush1.bf16.msra.mxu0 %v592_v17  ;;  %v720_v17 = vpop.permute.xlu0 %719 }
 0x136   :  { %v478_v4 = vpack.c.bf16 %v5695_v25, %v5694_v20  ;;  %5393 = vmatprep.subr.bf16.mxu1 %v474_v24  ;;  %923 = vmatprep.subr.bf16.mxu0 %v6420_v38 }
 0x137   :  { %v461_v16 = vpop.f32.mrf.mxu0 }
 0x138   :  { %v477_v12 = vpack.c.bf16 %v461_v16, %v458_v23 }
 0x139   :  { %v5726_v27 = vpop.f32.mrf.mxu0  ;;  %5394 = vmatpush3.bf16.msra.mxu1 %v240_v10  ;;  %924 = vmatpush1.bf16.msra.mxu0 %v478_v4  ;;  %v725_v16 = vpop.permute.xlu0 %724 }
 0x13a   :  { %5395 = vmatprep.subr.bf16.mxu1 %v473_v26  ;;  %925 = vmatprep.subr.bf16.mxu0 %v6420_v38 }
 0x13b   :  { %v664_v21 = vpop.f32.mrf.mxu0 }
 0x13d   :  { %v5727_v29 = vpop.f32.mrf.mxu0  ;;  %5396 = vmatpush3.bf16.msra.mxu1 %v239_v6  ;;  %926 = vmatpush1.bf16.msra.mxu0 %v477_v12 }
 0x13e   :  { %5397 = vmatprep.subr.bf16.mxu1 %v359_v28  ;;  %931 = vmatprep.subr.bf16.mxu0 %v6420_v38  ;;  %v712_v52 = vpack.c.bf16 %v5727_v29, %v5726_v27  ;;  %v730_v27 = vpop.permute.xlu1 %729 }
 0x13f   :  { %v667_v7 = vpop.f32.mrf.mxu0 }
 0x140   :  { %v711_v33 = vpack.c.bf16 %v667_v7, %v664_v21 }
 0x141   :  { %v5730_v31 = vpop.f32.mrf.mxu0  ;;  %5398 = vmatpush3.bf16.msra.mxu1 %v238_v1 }
 0x142   :  { %5399 = vmatprep.subr.bf16.mxu1 %v358_v30 }
 0x143   :  { %v680_v56 = vpop.f32.mrf.mxu0 }
 0x145   :  { %v5731_v62 = vpop.f32.mrf.mxu0  ;;  %5400 = vmatpush3.bf16.msra.mxu1 %v237_v5 }
 0x146   :  { %5401 = vmatprep.subr.bf16.mxu1 %v357_v48  ;;  %v6196_v48 = vld [vmem:[#allocation2 + $0x40] ss:$16 sps:$4 sm:$0xff]  }
 0x147   :  { %v683_v11 = vpop.f32.mrf.mxu0 }
 0x148   :  { %v713_v43 = vpack.c.bf16 %v683_v11, %v680_v56 }
 0x149   :  { %v5734_v59 = vpop.f32.mrf.mxu0  ;;  %5402 = vmatpush3.bf16.msra.mxu1 %v236_v46  ;;  %v714_v46 = vpack.c.bf16 %v5731_v62, %v5730_v31 }
 0x14a   :  { %5403 = vmatprep.subr.bf16.mxu1 %v356_v53 }
 0x14b   :  { %v696_v58 = vpop.f32.mrf.mxu0 }
 0x14d   :  { %v5735_v0 = vpop.f32.mrf.mxu0  ;;  %5404 = vmatpush3.bf16.msra.mxu1 %v235_v57 }
 0x14e   :  { %v716_v42 = vpack.c.bf16 %v5735_v0, %v5734_v59  ;;  %5736 = vmatprep.subr.bf16.mxu1 %v6212_v54  ;;  %v735_v59 = vpop.permute.xlu1 %734 }
 0x14f   :  { %v699_v47 = vpop.f32.mrf.mxu0 }
 0x150   :  { %932 = vmatpush2.bf16.msra.mxu0 %v716_v42  ;;  %879 = vmatmul.mubr.bf16.vlgmr.msra.gmra.mxu1 %v6188_v63  ;;  %v715_v44 = vpack.c.bf16 %v699_v47, %v696_v58 }
 0x151   :  { %933 = vmatprep.subr.bf16.mxu0 %v6420_v38  ;;  %886 = vmatprep.mubr.bf16.mxu1 %v6191_v32 }
 0x152   :  { %5737 = vmatpush3.bf16.msra.mxu1 %v6212_v54 }
 0x153   :  { %5738 = vmatprep.subr.bf16.mxu1 %v6214_v60 }
 0x154   :  { %934 = vmatpush2.bf16.msra.mxu0 %v715_v44 }
 0x155   :  { %935 = vmatprep.subr.bf16.mxu0 %v6420_v38 }
 0x156   :  { %5739 = vmatpush3.bf16.msra.mxu1 %v6214_v60 }
 0x157   :  { %5748 = vmatprep.subr.bf16.mxu1 %v6686_v2 }
 0x158   :  { %936 = vmatpush2.bf16.msra.mxu0 %v714_v46  ;;  %887 = vmatmul.mubr.bf16.gmra.mxu1 %v6193_v41  ;;  %v740_v41 = vpop.permute.xlu0 %739 }
 0x159   :  { %937 = vmatprep.subr.bf16.mxu0 %v6420_v38  ;;  %894 = vmatprep.mubr.bf16.mxu1 %v6194_v45 }
 0x15c   :  { %938 = vmatpush2.bf16.msra.mxu0 %v713_v43 }
 0x15d   :  { %939 = vmatprep.subr.bf16.mxu0 %v6420_v38 }
 0x160   :  { %940 = vmatpush2.bf16.msra.mxu0 %v712_v52  ;;  %895 = vmatmul.mubr.bf16.gmra.mxu1 %v6196_v48 }
 0x161   :  { %941 = vmatprep.subr.bf16.mxu0 %v6420_v38  ;;  %902 = vmatprep.mubr.bf16.mxu1 %v6200_v49 }
 0x164   :  { %942 = vmatpush2.bf16.msra.mxu0 %v711_v33 }
 0x165   :  { %5772 = vmatprep.subr.bf16.mxu0 %v6213_v55 }
 0x167   :  { %944 = vmatmul.mubr.bf16.vlgmr.msra.gmra.mxu0 %v6197_v34  ;;  %v6217_v34 = vld [vmem:[#allocation4 + $0xb0] sm:$0xff]  }
 0x168   :  { %903 = vmatmul.mubr.bf16.gmra.mxu1 %v6202_v35  ;;  %5078 = vmatprep.mubr.msk.bf16.mxu0 %vm833_vm1, %v6203_v36  ;;  %v745_v35 = vpop.permute.xlu1 %744 }
 0x169   :  { %5773 = vmatpush3.bf16.msra.mxu0 %v6213_v55  ;;  %v6218_v55 = vld [vmem:[#allocation4 + $0xc8] sm:$0xff]  }
 0x16a   :  { %5774 = vmatprep.subr.bf16.mxu0 %v6215_v61 }
 0x16d   :  { %5775 = vmatpush3.bf16.msra.mxu0 %v6215_v61 }
 0x16f   :  { %952 = vmatmul.mubr.bf16.gmra.mxu0 %v6205_v37 }
 0x170   :  { %5079 = vmatprep.mubr.msk.bf16.mxu0 %vm833_vm1, %v6206_v39 }
 0x177   :  { %960 = vmatmul.mubr.bf16.gmra.mxu0 %v6208_v40 }
 0x178   :  { %5080 = vmatprep.mubr.msk.bf16.mxu0 %vm833_vm1, %v6209_v50 }
 0x17f   :  { %968 = vmatmul.mubr.bf16.gmra.mxu0 %v6211_v51 }
 0x210   :  { %v5405_v3 = vpop.f32.mrf.mxu1 }
 0x212   :  { %v5406_v8 = vpop.f32.mrf.mxu1 }
 0x213   :  { %v5407_v23 = vadd.f32 %v5406_v8, %v5405_v3 }
 0x214   :  { %v5408_v9 = vpop.f32.mrf.mxu1 }
 0x215   :  { %v881_v10 = vadd.f32 %v5407_v23, %v720_v17 }
 0x216   :  { %v5409_v13 = vpop.f32.mrf.mxu1 }
 0x217   :  { %v5410_v24 = vadd.f32 %v5409_v13, %v5408_v9  ;;  %v750_v9 = vpop.permute.xlu0 %749 }
 0x218   :  { %v5411_v14 = vpop.f32.mrf.mxu1 }
 0x219   :  { %v884_v12 = vadd.f32 %v5410_v24, %v725_v16  ;;  %v6220_v16 = vld [vmem:[#allocation4 + $0xe8] sm:$0xff]  }
 0x21a   :  { %v5412_v15 = vpop.f32.mrf.mxu1 }
 0x21b   :  { %v5413_v29 = vadd.f32 %v5412_v15, %v5411_v14 }
 0x21c   :  { %v5414_v18 = vpop.f32.mrf.mxu1 }
 0x21d   :  { %v889_v53 = vadd.f32 %v5413_v29, %v730_v27  ;;  %v6224_v27 = vld [vmem:[#allocation2 + $0x84] ss:$16 sps:$4 sm:$0xff]  }
 0x21e   :  { %v5415_v19 = vpop.f32.mrf.mxu1 }
 0x21f   :  { %v5416_v30 = vadd.f32 %v5415_v19, %v5414_v18  ;;  %v755_v18 = vpop.permute.xlu1 %754 }
 0x220   :  { %v5417_v20 = vpop.f32.mrf.mxu1 }
 0x221   :  { %v892_v63 = vadd.f32 %v5416_v30, %v735_v59 }
 0x222   :  { %v5418_v22 = vpop.f32.mrf.mxu1 }
 0x223   :  { %v5419_v42 = vadd.f32 %v5418_v22, %v5417_v20 }
 0x224   :  { %v5420_v4 = vpop.f32.mrf.mxu1 }
 0x225   :  { %v897_v33 = vadd.f32 %v5419_v42, %v740_v41 }
 0x226   :  { %v5421_v21 = vpop.f32.mrf.mxu1 }
 0x227   :  { %v945_v25 = vpop.f32.mrf.mxu0  ;;  %v5422_v45 = vadd.f32 %v5421_v21, %v5420_v4 }
 0x228   :  { %v946_v6 = vadd.f32 %v945_v25, %v881_v10  ;;  %v5423_v56 = vpop.f32.mrf.mxu1  ;;  %v6219_v10 = vld [vmem:[#allocation4 + $0xc0] sm:$0xff]  }
 0x229   :  { %v947_v26 = vpop.f32.mrf.mxu0  ;;  %v900_v39 = vadd.f32 %v5422_v45, %v745_v35 }
 0x22a   :  { %v976_v31 = vmax.f32 %v946_v6, 0.0  ;;  %v5424_v0 = vpop.f32.mrf.mxu1  ;;  %v6221_v26 = vld [vmem:[#allocation4 + $0xe0] sm:$0xff]   ;;  %v6230_v6 = vld [vmem:[#allocation2 + $0x88] ss:$16 sps:$4 sm:$0xff]  }
 0x22b   :  { %v948_v28 = vpop.f32.mrf.mxu0  ;;  %v5425_v51 = vadd.f32 %v5424_v0, %v5423_v56 }
 0x22c   :  { %v949_v1 = vadd.f32 %v948_v28, %v884_v12  ;;  %v5426_v48 = vpop.f32.mrf.mxu1 }
 0x22d   :  { %v950_v7 = vpop.f32.mrf.mxu0  ;;  %v905_v15 = vadd.f32 %v5425_v51, %v750_v9 }
 0x22e   :  { %v977_v5 = vmax.f32 %v949_v1, 0.0  ;;  %v5427_v40 = vpop.f32.mrf.mxu1 }
 0x22f   :  { %v953_v62 = vpop.f32.mrf.mxu0  ;;  %v5428_v61 = vadd.f32 %v5427_v40, %v5426_v48 }
 0x230   :  { %v6689_v11 = vpack.c.bf16 %v977_v5, %v976_v31  ;;  %v954_v58 = vadd.f32 %v953_v62, %v889_v53 }
 0x231   :  { %v955_v57 = vpop.f32.mrf.mxu0 }
 0x232   :  { %5740 = vmatprep.mubr.msk.bf16.mxu1 %vm1028_vm2, %v6689_v11  ;;  %5776 = vmatprep.mubr.msk.bf16.mxu0 %vm1028_vm2, %v6689_v11  ;;  %v978_v46 = vmax.f32 %v954_v58, 0.0 }
 0x233   :  { %v956_v32 = vpop.f32.mrf.mxu0 }
 0x234   :  { %v957_v47 = vadd.f32 %v956_v32, %v892_v63 }
 0x235   :  { %v958_v44 = vpop.f32.mrf.mxu0 }
 0x236   :  { %v979_v43 = vmax.f32 %v957_v47, 0.0 }
 0x237   :  { %v961_v49 = vpop.f32.mrf.mxu0 }
 0x238   :  { %v985_v52 = vpack.c.bf16 %v979_v43, %v978_v46  ;;  %v962_v37 = vadd.f32 %v961_v49, %v897_v33 }
 0x239   :  { %v963_v36 = vpop.f32.mrf.mxu0 }
 0x23a   :  { %5741 = vmatmul.mubr.msk.bf16.vlgmr.msra.gmra.mxu1 %vm1028_vm2, %v985_v52  ;;  %5777 = vmatmul.mubr.msk.bf16.vlgmr.msra.gmra.mxu0 %vm1028_vm2, %v985_v52  ;;  %v980_v3 = vmax.f32 %v962_v37, 0.0 }
 0x23b   :  { %v964_v50 = vpop.f32.mrf.mxu0  ;;  %5749 = vmatpush3.bf16.msra.mxu1 %v6686_v2  ;;  %v908_v2 = vadd.f32 %v5428_v61, %v755_v18 }
 0x23c   :  { %v965_v54 = vadd.f32 %v964_v50, %v900_v39  ;;  %5750 = vmatprep.subr.bf16.mxu1 %v6217_v34 }
 0x23d   :  { %v966_v60 = vpop.f32.mrf.mxu0 }
 0x23e   :  { %v981_v8 = vmax.f32 %v965_v54, 0.0 }
 0x23f   :  { %v969_v13 = vpop.f32.mrf.mxu0  ;;  %5751 = vmatpush3.bf16.msra.mxu1 %v6217_v34 }
 0x240   :  { %v986_v14 = vpack.c.bf16 %v981_v8, %v980_v3  ;;  %5760 = vmatprep.subr.bf16.mxu1 %v6218_v55  ;;  %v970_v20 = vadd.f32 %v969_v13, %v905_v15 }
 0x241   :  { %v971_v19 = vpop.f32.mrf.mxu0 }
 0x242   :  { %5744 = vmatprep.mubr.msk.bf16.mxu1 %vm1028_vm2, %v986_v14  ;;  %5780 = vmatprep.mubr.msk.bf16.mxu0 %vm1028_vm2, %v986_v14  ;;  %v982_v24 = vmax.f32 %v970_v20, 0.0 }
 0x243   :  { %v972_v17 = vpop.f32.mrf.mxu0 }
 0x244   :  { %v973_v22 = vadd.f32 %v972_v17, %v908_v2 }
 0x245   :  { %v974_v23 = vpop.f32.mrf.mxu0 }
 0x246   :  { %v983_v25 = vmax.f32 %v973_v22, 0.0  ;;  %v6222_v23 = vld [vmem:[#allocation2 + $0x80] ss:$16 sps:$4 sm:$0xff]  }
 0x248   :  { %v987_v4 = vpack.c.bf16 %v983_v25, %v982_v24  ;;  %v6225_v25 = vld [vmem:[#allocation2 + $0xa4] ss:$16 sps:$4 sm:$0xff]  }
 0x24a   :  { %5745 = vmatmul.mubr.msk.bf16.gmra.mxu1 %vm1028_vm2, %v987_v4  ;;  %5781 = vmatmul.mubr.msk.bf16.gmra.mxu0 %vm1028_vm2, %v987_v4 }
 0x24b   :  { %5752 = vmatprep.mubr.msk.bf16.mxu1 %vm1028_vm2, %v6689_v11  ;;  %1594 = vmatprep.mubr.bf16.mxu0 %v6224_v27  ;;  %v6227_v27 = vld [vmem:[#allocation2 + $0xa0] ss:$16 sps:$4 sm:$0xff]  }
 0x252   :  { %5753 = vmatmul.mubr.msk.bf16.vlgmr.msra.gmra.mxu1 %vm1028_vm2, %v985_v52 }
 0x253   :  { %5756 = vmatprep.mubr.msk.bf16.mxu1 %vm1028_vm2, %v986_v14  ;;  %5761 = vmatpush3.bf16.msra.mxu1 %v6218_v55 }
 0x254   :  { %5762 = vmatprep.subr.bf16.mxu1 %v6219_v10 }
 0x257   :  { %5763 = vmatpush3.bf16.msra.mxu1 %v6219_v10 }
 0x258   :  { %5784 = vmatprep.subr.bf16.mxu1 %v6220_v16 }
 0x25a   :  { %5757 = vmatmul.mubr.msk.bf16.gmra.mxu1 %vm1028_vm2, %v987_v4 }
 0x25b   :  { %5764 = vmatprep.mubr.msk.bf16.mxu1 %vm1028_vm2, %v6689_v11 }
 0x262   :  { %5765 = vmatmul.mubr.msk.bf16.vlgmr.msra.gmra.mxu1 %vm1028_vm2, %v985_v52 }
 0x263   :  { %5768 = vmatprep.mubr.msk.bf16.mxu1 %vm1028_vm2, %v986_v14  ;;  %5785 = vmatpush3.bf16.msra.mxu1 %v6220_v16 }
 0x264   :  { %5786 = vmatprep.subr.bf16.mxu1 %v6221_v26 }
 0x267   :  { %5787 = vmatpush3.bf16.msra.mxu1 %v6221_v26 }
 0x26a   :  { %5769 = vmatmul.mubr.msk.bf16.gmra.mxu1 %vm1028_vm2, %v987_v4 }
 0x26b   :  { %5788 = vmatprep.mubr.msk.bf16.mxu1 %vm1028_vm2, %v6689_v11 }
 0x272   :  { %5789 = vmatmul.mubr.msk.bf16.vlgmr.msra.gmra.mxu1 %vm1028_vm2, %v985_v52 }
 0x273   :  { %5792 = vmatprep.mubr.msk.bf16.mxu1 %vm1028_vm2, %v986_v14 }
 0x27a   :  { %5793 = vmatmul.mubr.msk.bf16.gmra.mxu1 %vm1028_vm2, %v987_v4 }
 0x27b   :  { %5804 = vmatprep.mubr.msk.bf16.mxu1 %vm135_vm0, %v6230_v6  ;;  %v6228_v6 = vld [vmem:[#allocation2 + $0xc4] ss:$16 sps:$4 sm:$0xff]  }
 0x2fa   :  { %v6718_v12 = vpop.f32.mrf.mxu1  ;;  %v5778_v21 = vpop.f32.mrf.mxu0 }
 0x2fc   :  { %v6720_v28 = vpop.f32.mrf.mxu1  ;;  %v1330_v29 = vpop.f32.mrf.mxu0 }
 0x2fe   :  { %v5743_v1 = vpop.f32.mrf.mxu1  ;;  %v5779_v7 = vpop.f32.mrf.mxu0 }
 0x2ff   :  { %v1362_v33 = vpack.c.bf16 %v5779_v7, %v5778_v21  ;;  %v1107_v18 = vpack.c.bf16 %v5743_v1, %v6718_v12  ;;  %v6231_v21 = vld [vmem:[#allocation2 + $0xc0] ss:$16 sps:$4 sm:$0xff]   ;;  %v6235_v1 = vld [vmem:[#allocation2 + $0xc8] ss:$16 sps:$4 sm:$0xff]  }
 0x300   :  { %v6722_v30 = vpop.f32.mrf.mxu1  ;;  %v1333_v31 = vpop.f32.mrf.mxu0  ;;  %v6236_v7 = vld [vmem:[#allocation2 + $0xe0] ss:$16 sps:$4 sm:$0xff]  }
 0x301   :  { %v1361_v37 = vpack.c.bf16 %v1333_v31, %v1330_v29  ;;  %v1106_v17 = vpack.c.bf16 %v6722_v30, %v6720_v28  ;;  %v6232_v28 = vld [vmem:[#allocation2 + $0xa8] ss:$16 sps:$4 sm:$0xff]   ;;  %v6233_v29 = vld [vmem:[#allocation2 + $0xe4] ss:$16 sps:$4 sm:$0xff]  }
 0x302   :  { %v6237_v30 = vld [vmem:[#allocation2 + $0xe8] ss:$16 sps:$4 sm:$0xff]   ;;  %v6238_v31 = vld [vmem:[#allocation4 + $0xf0] sm:$0xff]  }
 0x30a   :  { %v5746_v5 = vpop.f32.mrf.mxu1  ;;  %v5782_v56 = vpop.f32.mrf.mxu0 }
 0x30c   :  { %v1091_v62 = vpop.f32.mrf.mxu1  ;;  %v1346_v11 = vpop.f32.mrf.mxu0 }
 0x30e   :  { %v5747_v53 = vpop.f32.mrf.mxu1  ;;  %v5783_v59 = vpop.f32.mrf.mxu0 }
 0x30f   :  { %v1364_v57 = vpack.c.bf16 %v5783_v59, %v5782_v56  ;;  %v1109_v60 = vpack.c.bf16 %v5747_v53, %v5746_v5  ;;  %v6239_v5 = vld [vmem:[#allocation4 + $0x100] sm:$0xff]   ;;  %v6730_v56 = vld [vmem:[#allocation4 + $0xf8] sm:$0xff]  }
 0x310   :  { %v1094_v58 = vpop.f32.mrf.mxu1  ;;  %v1349_v41 = vpop.f32.mrf.mxu0 }
 0x311   :  { %5459 = vmatprep.subr.bf16.mxu0 %v1364_v57  ;;  %v1363_v43 = vpack.c.bf16 %v1349_v41, %v1346_v11  ;;  %v1108_v9 = vpack.c.bf16 %v1094_v58, %v1091_v62  ;;  %v1453_v58 = vpop.permute.xlu0 %1452 }
 0x312   :  { %v5754_v63 = vpop.f32.mrf.mxu1 }
 0x314   :  { %v1160_v0 = vpop.f32.mrf.mxu1 }
 0x316   :  { %v5755_v32 = vpop.f32.mrf.mxu1 }
 0x317   :  { %v1192_v36 = vpack.c.bf16 %v5755_v32, %v5754_v63 }
 0x318   :  { %v1163_v42 = vpop.f32.mrf.mxu1 }
 0x319   :  { %v1191_v50 = vpack.c.bf16 %v1163_v42, %v1160_v0  ;;  %v1458_v0 = vpop.permute.xlu1 %1457 }
 0x31a   :  { %v5758_v47 = vpop.f32.mrf.mxu1 }
 0x31c   :  { %v1176_v44 = vpop.f32.mrf.mxu1 }
 0x31e   :  { %v5759_v45 = vpop.f32.mrf.mxu1 }
 0x31f   :  { %v1194_v46 = vpack.c.bf16 %v5759_v45, %v5758_v47  ;;  %v1463_v47 = vpop.permute.xlu0 %1462 }
 0x320   :  { %v1179_v48 = vpop.f32.mrf.mxu1 }
 0x321   :  { %5460 = vmatpush3.bf16.msra.mxu0 %v1194_v46  ;;  %v1193_v52 = vpack.c.bf16 %v1179_v48, %v1176_v44  ;;  %v1468_v48 = vpop.permute.xlu1 %1467 }
 0x322   :  { %v5766_v49 = vpop.f32.mrf.mxu1  ;;  %5461 = vmatprep.subr.bf16.mxu0 %v1363_v43 }
 0x324   :  { %v1245_v34 = vpop.f32.mrf.mxu1 }
 0x325   :  { %5462 = vmatpush3.bf16.msra.mxu0 %v1193_v52 }
 0x326   :  { %v5767_v35 = vpop.f32.mrf.mxu1  ;;  %5463 = vmatprep.subr.bf16.mxu0 %v1362_v33 }
 0x327   :  { %v1277_v14 = vpack.c.bf16 %v5767_v35, %v5766_v49 }
 0x328   :  { %v1248_v39 = vpop.f32.mrf.mxu1 }
 0x329   :  { %5464 = vmatpush3.bf16.msra.mxu0 %v1192_v36  ;;  %v1276_v20 = vpack.c.bf16 %v1248_v39, %v1245_v34 }
 0x32a   :  { %v5770_v40 = vpop.f32.mrf.mxu1  ;;  %5465 = vmatprep.subr.bf16.mxu0 %v1361_v37 }
 0x32c   :  { %v1261_v51 = vpop.f32.mrf.mxu1 }
 0x32d   :  { %5466 = vmatpush3.bf16.msra.mxu0 %v1191_v50 }
 0x32e   :  { %v5771_v54 = vpop.f32.mrf.mxu1 }
 0x32f   :  { %v1279_v55 = vpack.c.bf16 %v5771_v54, %v5770_v40  ;;  %v1473_v40 = vpop.permute.xlu0 %1472 }
 0x330   :  { %v1264_v61 = vpop.f32.mrf.mxu1 }
 0x331   :  { %v1278_v3 = vpack.c.bf16 %v1264_v61, %v1261_v51  ;;  %5467 = vmatprep.subr.bf16.mxu0 %v1279_v55 }
 0x332   :  { %v5790_v8 = vpop.f32.mrf.mxu1  ;;  %5468 = vmatpush3.bf16.msra.mxu0 %v1109_v60 }
 0x333   :  { %5469 = vmatprep.subr.bf16.mxu0 %v1278_v3 }
 0x334   :  { %v1415_v13 = vpop.f32.mrf.mxu1 }
 0x336   :  { %v5791_v15 = vpop.f32.mrf.mxu1  ;;  %5470 = vmatpush3.bf16.msra.mxu0 %v1108_v9 }
 0x337   :  { %5471 = vmatprep.subr.bf16.mxu0 %v1277_v14  ;;  %v1447_v26 = vpack.c.bf16 %v5791_v15, %v5790_v8  ;;  %v1478_v15 = vpop.permute.xlu1 %1477 }
 0x338   :  { %v1418_v19 = vpop.f32.mrf.mxu1 }
 0x339   :  { %v1446_v12 = vpack.c.bf16 %v1418_v19, %v1415_v13 }
 0x33a   :  { %v5794_v2 = vpop.f32.mrf.mxu1  ;;  %5472 = vmatpush3.bf16.msra.mxu0 %v1107_v18 }
 0x33b   :  { %5473 = vmatprep.subr.bf16.mxu0 %v1276_v20 }
 0x33c   :  { %v1431_v22 = vpop.f32.mrf.mxu1 }
 0x33e   :  { %v5795_v24 = vpop.f32.mrf.mxu1  ;;  %5474 = vmatpush3.bf16.msra.mxu0 %v1106_v17 }
 0x33f   :  { %v1449_v4 = vpack.c.bf16 %v5795_v24, %v5794_v2  ;;  %5832 = vmatprep.subr.bf16.mxu0 %v6239_v5 }
 0x340   :  { %v1434_v10 = vpop.f32.mrf.mxu1 }
 0x341   :  { %v1448_v16 = vpack.c.bf16 %v1434_v10, %v1431_v22  ;;  %1595 = vmatmul.mubr.bf16.vlgmr.msra.gmra.mxu0 %v6222_v23  ;;  %5796 = vmatprep.subr.bf16.mxu1 %v1449_v4  ;;  %v1483_v23 = vpop.permute.xlu0 %1482 }
 0x342   :  { %5797 = vmatpush3.bf16.msra.mxu1 %v1449_v4  ;;  %1602 = vmatprep.mubr.bf16.mxu0 %v6225_v25 }
 0x343   :  { %5798 = vmatprep.subr.bf16.mxu1 %v1448_v16  ;;  %5833 = vmatpush3.bf16.msra.mxu0 %v6239_v5 }
 0x346   :  { %5799 = vmatpush3.bf16.msra.mxu1 %v1448_v16 }
 0x347   :  { %5800 = vmatprep.subr.bf16.mxu1 %v1447_v26 }
 0x349   :  { %1603 = vmatmul.mubr.bf16.gmra.mxu0 %v6227_v27 }
 0x34a   :  { %5801 = vmatpush3.bf16.msra.mxu1 %v1447_v26  ;;  %1610 = vmatprep.mubr.bf16.mxu0 %v6228_v6 }
 0x34b   :  { %5802 = vmatprep.subr.bf16.mxu1 %v1446_v12 }
 0x34e   :  { %5803 = vmatpush3.bf16.msra.mxu1 %v1446_v12 }
 0x34f   :  { %5812 = vmatprep.subr.bf16.mxu1 %v6238_v31 }
 0x351   :  { %1611 = vmatmul.mubr.bf16.gmra.mxu0 %v6231_v21  ;;  %5805 = vmatmul.mubr.msk.bf16.vlgmr.msra.gmra.mxu1 %vm135_vm0, %v6232_v28 }
 0x352   :  { %1618 = vmatprep.mubr.bf16.mxu0 %v6233_v29  ;;  %5808 = vmatprep.mubr.msk.bf16.mxu1 %vm135_vm0, %v6235_v1 }
 0x353   :  { %5813 = vmatpush3.bf16.msra.mxu1 %v6238_v31 }
 0x354   :  { %5822 = vmatprep.subr.bf16.mxu1 %v6730_v56 }
 0x359   :  { %1619 = vmatmul.mubr.bf16.gmra.mxu0 %v6236_v7  ;;  %5809 = vmatmul.mubr.msk.bf16.gmra.mxu1 %vm135_vm0, %v6237_v30  ;;  %v1488_v7 = vpop.permute.xlu1 %1487 }
 0x401   :  { %v5475_v62 = vpop.f32.mrf.mxu0 }
 0x403   :  { %v5476_v11 = vpop.f32.mrf.mxu0 }
 0x404   :  { %v5477_v44 = vadd.f32 %v5476_v11, %v5475_v62 }
 0x405   :  { %v5478_v53 = vpop.f32.mrf.mxu0 }
 0x406   :  { %v1597_v34 = vadd.f32 %v5477_v44, %v1453_v58 }
 0x407   :  { %v5479_v59 = vpop.f32.mrf.mxu0 }
 0x408   :  { %v5480_v49 = vadd.f32 %v5479_v59, %v5478_v53 }
 0x409   :  { %v5481_v57 = vpop.f32.mrf.mxu0 }
 0x40a   :  { %v1600_v54 = vadd.f32 %v5480_v49, %v1458_v0 }
 0x40b   :  { %v5482_v63 = vpop.f32.mrf.mxu0 }
 0x40c   :  { %v5483_v45 = vadd.f32 %v5482_v63, %v5481_v57 }
 0x40d   :  { %v5484_v32 = vpop.f32.mrf.mxu0 }
 0x40e   :  { %v1605_v36 = vadd.f32 %v5483_v45, %v1463_v47 }
 0x40f   :  { %v5485_v42 = vpop.f32.mrf.mxu0 }
 0x410   :  { %v5486_v41 = vadd.f32 %v5485_v42, %v5484_v32 }
 0x411   :  { %v5487_v46 = vpop.f32.mrf.mxu0  ;;  %v5806_v43 = vpop.f32.mrf.mxu1 }
 0x412   :  { %v1608_v35 = vadd.f32 %v5486_v41, %v1468_v48  ;;  %v1670_v55 = vadd.f32 %v5806_v43, %v1605_v36 }
 0x413   :  { %v5488_v52 = vpop.f32.mrf.mxu0  ;;  %v1661_v33 = vpop.f32.mrf.mxu1 }
 0x414   :  { %v1662_v50 = vadd.f32 %v1661_v33, %v1597_v34  ;;  %v5489_v3 = vadd.f32 %v5488_v52, %v5487_v46  ;;  %v1694_v2 = vmax.f32 %v1670_v55, 0.0 }
 0x415   :  { %v5490_v37 = vpop.f32.mrf.mxu0  ;;  %v5807_v39 = vpop.f32.mrf.mxu1 }
 0x416   :  { %v1673_v51 = vadd.f32 %v5807_v39, %v1608_v35  ;;  %v1692_v18 = vmax.f32 %v1662_v50, 0.0  ;;  %v1613_v4 = vadd.f32 %v5489_v3, %v1473_v40 }
 0x417   :  { %v5491_v60 = vpop.f32.mrf.mxu0  ;;  %v1664_v61 = vpop.f32.mrf.mxu1 }
 0x418   :  { %v1665_v8 = vadd.f32 %v1664_v61, %v1600_v54  ;;  %v1695_v9 = vmax.f32 %v1673_v51, 0.0  ;;  %v5492_v19 = vadd.f32 %v5491_v60, %v5490_v37 }
 0x419   :  { %v5493_v13 = vpop.f32.mrf.mxu0  ;;  %v5810_v14 = vpop.f32.mrf.mxu1 }
 0x41a   :  { %v1693_v20 = vmax.f32 %v1665_v8, 0.0  ;;  %v1701_v10 = vpack.c.bf16 %v1695_v9, %v1694_v2  ;;  %v1616_v12 = vadd.f32 %v5492_v19, %v1478_v15 }
 0x41b   :  { %v5494_v17 = vpop.f32.mrf.mxu0  ;;  %v1677_v22 = vpop.f32.mrf.mxu1 }
 0x41c   :  { %v1700_v24 = vpack.c.bf16 %v1693_v20, %v1692_v18  ;;  %v5495_v25 = vadd.f32 %v5494_v17, %v5493_v13  ;;  %v1678_v6 = vadd.f32 %v1677_v22, %v1613_v4  ;;  %v6241_v17 = vld [vmem:[#allocation2 + $0x100] ss:$16 sps:$4 sm:$0xff]   ;;  %v6244_v22 = vld [vmem:[#allocation2 + $0x124] ss:$16 sps:$4 sm:$0xff]   ;;  %v2096_v4 = vld [vmem:[#allocation4 + $0x108] sm:$0x7] }
 0x41d   :  { %v5496_v16 = vpop.f32.mrf.mxu0  ;;  %v5811_v26 = vpop.f32.mrf.mxu1 }
 0x41e   :  { %v1621_v27 = vadd.f32 %v5495_v25, %v1483_v23  ;;  %5814 = vmatprep.mubr.msk.bf16.mxu1 %vm1724_vm3, %v1700_v24  ;;  %5834 = vmatprep.mubr.msk.bf16.mxu0 %vm1724_vm3, %v1700_v24  ;;  %v1696_v31 = vmax.f32 %v1678_v6, 0.0  ;;  %v6246_v23 = vld [vmem:[#allocation2 + $0x120] ss:$16 sps:$4 sm:$0xff]  }
 0x41f   :  { %v5497_v21 = vpop.f32.mrf.mxu0  ;;  %v1680_v28 = vpop.f32.mrf.mxu1  ;;  %5815 = vmatmul.mubr.msk.bf16.vlgmr.msra.gmra.mxu1 %vm1724_vm3, %v1701_v10  ;;  %5835 = vmatmul.mubr.msk.bf16.vlgmr.msra.gmra.mxu0 %vm1724_vm3, %v1701_v10  ;;  %v6249_v25 = vld [vmem:[#allocation2 + $0x140] ss:$16 sps:$4 sm:$0xff]  }
 0x420   :  { %v5498_v29 = vadd.f32 %v5497_v21, %v5496_v16  ;;  %v1681_v1 = vadd.f32 %v1680_v28, %v1616_v12  ;;  %5823 = vmatpush3.bf16.msra.mxu1 %v6730_v56  ;;  %v1686_v30 = vadd.f32 %v5810_v14, %v1621_v27  ;;  %v6243_v56 = vld [vmem:[#allocation2 + $0x104] ss:$16 sps:$4 sm:$0xff]   ;;  %v6421_v16 = vmov 0.0   ;;  %v1963_v12 = vpop.permute.xlu0 %1962 }
 0x421   :  { %2026 = vmatprep.subr.bf16.mxu1 %v6420_v38  ;;  %5842 = vmatprep.subr.bf16.mxu0 %v6421_v16 }
 0x422   :  { %v1624_v5 = vadd.f32 %v5498_v29, %v1488_v7  ;;  %v1697_v62 = vmax.f32 %v1681_v1, 0.0  ;;  %v1698_v59 = vmax.f32 %v1686_v30, 0.0  ;;  %v1968_v29 = vpop.permute.xlu1 %1967 }
 0x424   :  { %v1689_v11 = vadd.f32 %v5811_v26, %v1624_v5  ;;  %v1702_v53 = vpack.c.bf16 %v1697_v62, %v1696_v31  ;;  %v2109_v26 = vsel %vm2107_vm4, %v2096_v4, 0  ;;  %v2171_v62 = vld [vmem:[#allocation4 + $0x110] sm:$0x7] }
 0x425   :  { %5843 = vmatpush3.bf16.msra.mxu0 %v2109_v26 }
 0x426   :  { %v1699_v57 = vmax.f32 %v1689_v11, 0.0  ;;  %5818 = vmatprep.mubr.msk.bf16.mxu1 %vm1724_vm3, %v1702_v53  ;;  %5838 = vmatprep.mubr.msk.bf16.mxu0 %vm1724_vm3, %v1702_v53 }
 0x427   :  { %5856 = vmatprep.subr.bf16.mxu0 %v6421_v16 }
 0x428   :  { %v1703_v58 = vpack.c.bf16 %v1699_v57, %v1698_v59  ;;  %v1973_v59 = vpop.permute.xlu0 %1972 }
 0x42a   :  { %5819 = vmatmul.mubr.msk.bf16.gmra.mxu1 %vm1724_vm3, %v1703_v58  ;;  %5839 = vmatmul.mubr.msk.bf16.gmra.mxu0 %vm1724_vm3, %v1703_v58 }
 0x42b   :  { %5824 = vmatprep.mubr.msk.bf16.mxu1 %vm1724_vm3, %v1700_v24  ;;  %v6247_v24 = vld [vmem:[#allocation2 + $0x144] ss:$16 sps:$4 sm:$0xff]   ;;  %5844 = vmatprep.mubr.msk.bf16.mxu0 %vm6422_vm5, %v6421_v16 }
 0x432   :  { %5825 = vmatmul.mubr.msk.bf16.vlgmr.msra.gmra.mxu1 %vm1724_vm3, %v1701_v10  ;;  %v2235_v10 = vld [vmem:[#allocation4 + $0x118] sm:$0x7] }
 0x433   :  { %5828 = vmatprep.mubr.msk.bf16.mxu1 %vm1724_vm3, %v1702_v53  ;;  %v2237_v27 = vsel %vm2107_vm4, %v2235_v10, 0 }
 0x43a   :  { %5829 = vmatmul.mubr.msk.bf16.gmra.mxu1 %vm1724_vm3, %v1703_v58  ;;  %v2173_v58 = vsel %vm2107_vm4, %v2171_v62, 0 }
 0x43b   :  { %5148 = vmatprep.mubr.msk.bf16.mxu1 %vm135_vm0, %v6243_v56 }
 0x4df   :  { %v5816_v63 = vpop.f32.mrf.mxu1  ;;  %v5836_v39 = vpop.f32.mrf.mxu0 }
 0x4e1   :  { %v1771_v0 = vpop.f32.mrf.mxu1  ;;  %v1925_v50 = vpop.f32.mrf.mxu0 }
 0x4e3   :  { %v5817_v32 = vpop.f32.mrf.mxu1  ;;  %v5837_v54 = vpop.f32.mrf.mxu0 }
 0x4e4   :  { %v1803_v8 = vpack.c.bf16 %v5817_v32, %v5816_v63  ;;  %v1957_v20 = vpack.c.bf16 %v5837_v54, %v5836_v39  ;;  %v1978_v63 = vpop.permute.xlu1 %1977  ;;  %v6252_v39 = vld [vmem:[#allocation2 + $0x164] ss:$16 sps:$4 sm:$0x1f]  }
 0x4e5   :  { %v1774_v42 = vpop.f32.mrf.mxu1  ;;  %v1928_v60 = vpop.f32.mrf.mxu0 }
 0x4e6   :  { %v1802_v13 = vpack.c.bf16 %v1774_v42, %v1771_v0  ;;  %v1956_v2 = vpack.c.bf16 %v1928_v60, %v1925_v50 }
 0x4ea   :  { %v5820_v47 = vpop.f32.mrf.mxu1  ;;  %v5840_v3 = vpop.f32.mrf.mxu0 }
 0x4ec   :  { %v1787_v44 = vpop.f32.mrf.mxu1  ;;  %v1941_v9 = vpop.f32.mrf.mxu0 }
 0x4ee   :  { %v5821_v41 = vpop.f32.mrf.mxu1  ;;  %v5841_v14 = vpop.f32.mrf.mxu0 }
 0x4ef   :  { %v1805_v55 = vpack.c.bf16 %v5821_v41, %v5820_v47  ;;  %v1959_v15 = vpack.c.bf16 %v5841_v14, %v5840_v3 }
 0x4f0   :  { %v1790_v45 = vpop.f32.mrf.mxu1  ;;  %v1944_v18 = vpop.f32.mrf.mxu0 }
 0x4f1   :  { %v1804_v61 = vpack.c.bf16 %v1790_v45, %v1787_v44  ;;  %v1958_v19 = vpack.c.bf16 %v1944_v18, %v1941_v9 }
 0x4f2   :  { %v5826_v46 = vpop.f32.mrf.mxu1 }
 0x4f4   :  { %v1848_v43 = vpop.f32.mrf.mxu1 }
 0x4f6   :  { %v5827_v48 = vpop.f32.mrf.mxu1 }
 0x4f7   :  { %v1880_v40 = vpack.c.bf16 %v5827_v48, %v5826_v46  ;;  %v1983_v46 = vpop.permute.xlu0 %1982 }
 0x4f8   :  { %v1851_v49 = vpop.f32.mrf.mxu1 }
 0x4f9   :  { %v1879_v51 = vpack.c.bf16 %v1851_v49, %v1848_v43  ;;  %v1988_v49 = vpop.permute.xlu1 %1987 }
 0x4fa   :  { %v5830_v52 = vpop.f32.mrf.mxu1 }
 0x4fc   :  { %v1864_v33 = vpop.f32.mrf.mxu1 }
 0x4fe   :  { %v5831_v34 = vpop.f32.mrf.mxu1 }
 0x4ff   :  { %v1882_v35 = vpack.c.bf16 %v5831_v34, %v5830_v52 }
 0x500   :  { %v1867_v36 = vpop.f32.mrf.mxu1 }
 0x501   :  { %2027 = vmatpush1.bf16.msra.mxu1 %v1882_v35  ;;  %v1881_v37 = vpack.c.bf16 %v1867_v36, %v1864_v33 }
 0x502   :  { %2028 = vmatprep.subr.bf16.mxu1 %v6420_v38 }
 0x505   :  { %2029 = vmatpush1.bf16.msra.mxu1 %v1881_v37 }
 0x506   :  { %2030 = vmatprep.subr.bf16.mxu1 %v6420_v38 }
 0x509   :  { %2031 = vmatpush1.bf16.msra.mxu1 %v1880_v40 }
 0x50a   :  { %2032 = vmatprep.subr.bf16.mxu1 %v6420_v38 }
 0x50d   :  { %2033 = vmatpush1.bf16.msra.mxu1 %v1879_v51 }
 0x50e   :  { %2034 = vmatprep.subr.bf16.mxu1 %v6420_v38 }
 0x511   :  { %2035 = vmatpush1.bf16.msra.mxu1 %v1805_v55 }
 0x512   :  { %2036 = vmatprep.subr.bf16.mxu1 %v6420_v38 }
 0x515   :  { %2037 = vmatpush1.bf16.msra.mxu1 %v1804_v61 }
 0x516   :  { %2038 = vmatprep.subr.bf16.mxu1 %v6420_v38 }
 0x519   :  { %2039 = vmatpush1.bf16.msra.mxu1 %v1803_v8 }
 0x51a   :  { %2040 = vmatprep.subr.bf16.mxu1 %v6420_v38 }
 0x51d   :  { %2041 = vmatpush1.bf16.msra.mxu1 %v1802_v13 }
 0x51e   :  { %2050 = vmatprep.subr.bf16.mxu1 %v6420_v38 }
 0x521   :  { %2051 = vmatpush2.bf16.msra.mxu1 %v1959_v15 }
 0x522   :  { %2052 = vmatprep.subr.bf16.mxu1 %v6420_v38 }
 0x525   :  { %2053 = vmatpush2.bf16.msra.mxu1 %v1958_v19 }
 0x526   :  { %2054 = vmatprep.subr.bf16.mxu1 %v6420_v38 }
 0x529   :  { %2055 = vmatpush2.bf16.msra.mxu1 %v1957_v20 }
 0x52a   :  { %2056 = vmatprep.subr.bf16.mxu1 %v6420_v38 }
 0x52d   :  { %2057 = vmatpush2.bf16.msra.mxu1 %v1956_v2 }
 0x52e   :  { %5870 = vmatprep.subr.bf16.mxu1 %v6421_v16 }
 0x530   :  { %2059 = vmatmul.mubr.bf16.vlgmr.msra.gmra.mxu1 %v6241_v17 }
 0x531   :  { %5149 = vmatprep.mubr.msk.bf16.mxu1 %vm135_vm0, %v6244_v22  ;;  %5871 = vmatpush3.bf16.msra.mxu1 %v2237_v27 }
 0x532   :  { %5884 = vmatprep.subr.bf16.mxu1 %v6421_v16 }
 0x538   :  { %2067 = vmatmul.mubr.bf16.gmra.mxu1 %v6246_v23 }
 0x539   :  { %5150 = vmatprep.mubr.msk.bf16.mxu1 %vm135_vm0, %v6247_v24 }
 0x540   :  { %2075 = vmatmul.mubr.bf16.gmra.mxu1 %v6249_v25 }
 0x541   :  { %5872 = vmatprep.mubr.msk.bf16.mxu1 %vm6422_vm5, %v6421_v16 }
 0x5f0   :  { %v2060_v6 = vpop.f32.mrf.mxu1 }
 0x5f1   :  { %v2061_v28 = vadd.f32 %v2060_v6, %v1963_v12 }
 0x5f2   :  { %v2062_v21 = vpop.f32.mrf.mxu1 }
 0x5f3   :  { %v2083_v31 = vmax.f32 %v2061_v28, 0.0 }
 0x5f4   :  { %v2063_v1 = vpop.f32.mrf.mxu1 }
 0x5f5   :  { %v2064_v7 = vadd.f32 %v2063_v1, %v1968_v29 }
 0x5f6   :  { %v2065_v30 = vpop.f32.mrf.mxu1 }
 0x5f7   :  { %v2084_v5 = vmax.f32 %v2064_v7, 0.0 }
 0x5f8   :  { %v2068_v11 = vpop.f32.mrf.mxu1 }
 0x5f9   :  { %v2089_v53 = vpack.c.bf16 %v2084_v5, %v2083_v31  ;;  %v2069_v56 = vadd.f32 %v2068_v11, %v1973_v59 }
 0x5fa   :  { %v2070_v57 = vpop.f32.mrf.mxu1 }
 0x5fb   :  { %5845 = vmatmul.mubr.msk.bf16.vlgmr.msra.gmra.mxu0 %vm2097_vm6, %v2089_v53  ;;  %5873 = vmatmul.mubr.msk.bf16.vlgmr.msra.gmra.mxu1 %vm2097_vm6, %v2089_v53  ;;  %v2085_v47 = vmax.f32 %v2069_v56, 0.0 }
 0x5fc   :  { %v2071_v0 = vpop.f32.mrf.mxu1  ;;  %5848 = vmatprep.mubr.msk.bf16.mxu0 %vm6422_vm5, %v6421_v16  ;;  %5876 = vmatprep.mubr.msk.bf16.mxu1 %vm6422_vm5, %v6421_v16 }
 0x5fd   :  { %v2072_v32 = vadd.f32 %v2071_v0, %v1978_v63  ;;  %5857 = vmatpush3.bf16.msra.mxu0 %v2173_v58 }
 0x5fe   :  { %v2073_v42 = vpop.f32.mrf.mxu1  ;;  %2321 = vmatprep.subr.bf16.mxu0 %v6420_v38 }
 0x5ff   :  { %v2086_v44 = vmax.f32 %v2072_v32, 0.0  ;;  %v6250_v32 = vld [vmem:[#allocation2 + $0x160] ss:$16 sps:$4 sm:$0x1f]   ;;  %v2302_v42 = vpop.permute.xlu0 %2301 }
 0x600   :  { %v2076_v41 = vpop.f32.mrf.mxu1 }
 0x601   :  { %v2090_v45 = vpack.c.bf16 %v2086_v44, %v2085_v47  ;;  %v2077_v48 = vadd.f32 %v2076_v41, %v1983_v46 }
 0x602   :  { %v2078_v43 = vpop.f32.mrf.mxu1 }
 0x603   :  { %5849 = vmatmul.mubr.msk.bf16.gmra.mxu0 %vm2097_vm6, %v2090_v45  ;;  %5877 = vmatmul.mubr.msk.bf16.gmra.mxu1 %vm2097_vm6, %v2090_v45  ;;  %v2087_v35 = vmax.f32 %v2077_v48, 0.0 }
 0x604   :  { %v2079_v52 = vpop.f32.mrf.mxu1  ;;  %5852 = vmatprep.mubr.msk.bf16.mxu0 %vm6422_vm5, %v6421_v16  ;;  %5880 = vmatprep.mubr.msk.bf16.mxu1 %vm6422_vm5, %v6421_v16 }
 0x605   :  { %v2080_v33 = vadd.f32 %v2079_v52, %v1988_v49 }
 0x606   :  { %v2081_v34 = vpop.f32.mrf.mxu1 }
 0x607   :  { %v2088_v36 = vmax.f32 %v2080_v33, 0.0  ;;  %v6253_v33 = vld [vmem:[#allocation2 + $0x180] ss:$16 sps:$4 sm:$0xff]  }
 0x608   :  { %v6254_v34 = vld [vmem:[#allocation2 + $0x1a0] ss:$16 sps:$4 sm:$0xff]  }
 0x609   :  { %v2091_v37 = vpack.c.bf16 %v2088_v36, %v2087_v35  ;;  %v6255_v35 = vld [vmem:[#allocation2 + $0x1c0] ss:$16 sps:$4 sm:$0xff]  }
 0x60a   :  { %v6256_v36 = vld [vmem:[#allocation2 + $0x1e0] ss:$16 sps:$4 sm:$0xff]  }
 0x60b   :  { %5853 = vmatmul.mubr.msk.bf16.gmra.mxu0 %vm2097_vm6, %v2091_v37  ;;  %5881 = vmatmul.mubr.msk.bf16.gmra.mxu1 %vm2097_vm6, %v2091_v37 }
 0x60c   :  { %5858 = vmatprep.mubr.msk.bf16.mxu0 %vm6422_vm5, %v6421_v16  ;;  %5886 = vmatprep.mubr.msk.bf16.mxu1 %vm6422_vm5, %v6421_v16 }
 0x613   :  { %5859 = vmatmul.mubr.msk.bf16.vlgmr.msra.gmra.mxu0 %vm2097_vm6, %v2089_v53 }
 0x614   :  { %5862 = vmatprep.mubr.msk.bf16.mxu0 %vm6422_vm5, %v6421_v16 }
 0x61b   :  { %5863 = vmatmul.mubr.msk.bf16.gmra.mxu0 %vm2097_vm6, %v2090_v45  ;;  %v2307_v45 = vpop.permute.xlu1 %2306 }
 0x61c   :  { %5866 = vmatprep.mubr.msk.bf16.mxu0 %vm6422_vm5, %v6421_v16 }
 0x623   :  { %5867 = vmatmul.mubr.msk.bf16.gmra.mxu0 %vm2097_vm6, %v2091_v37  ;;  %v6257_v37 = vld [vmem:[#allocation2 + $0x200] ss:$16 sps:$4 sm:$0xff]  }
 0x624   :  { %5162 = vmatprep.mubr.msk.bf16.mxu0 %vm1724_vm3, %v6252_v39  ;;  %v6258_v39 = vld [vmem:[#allocation2 + $0x220] ss:$16 sps:$4 sm:$0xff]  }
 0x6bb   :  { %v2145_v40 = vpop.f32.mrf.mxu0  ;;  %v2273_v50 = vpop.f32.mrf.mxu1 }
 0x6bd   :  { %v5846_v51 = vpop.f32.mrf.mxu0  ;;  %v5874_v54 = vpop.f32.mrf.mxu1 }
 0x6be   :  { %v6261_v51 = vld [vmem:[#allocation2 + $0x280] ss:$16 sps:$4 sm:$0xff]  }
 0x6bf   :  { %v2148_v55 = vpop.f32.mrf.mxu0  ;;  %v2276_v60 = vpop.f32.mrf.mxu1 }
 0x6c0   :  { %v2296_v23 = vpack.c.bf16 %v2276_v60, %v2273_v50  ;;  %v2168_v63 = vpack.c.bf16 %v2148_v55, %v2145_v40  ;;  %v6259_v40 = vld [vmem:[#allocation2 + $0x240] ss:$16 sps:$4 sm:$0xff]  }
 0x6c1   :  { %v5847_v61 = vpop.f32.mrf.mxu0  ;;  %v5875_v3 = vpop.f32.mrf.mxu1  ;;  %v6260_v50 = vld [vmem:[#allocation2 + $0x260] ss:$16 sps:$4 sm:$0xff]  }
 0x6c3   :  { %v2153_v8 = vpop.f32.mrf.mxu0  ;;  %v2281_v9 = vpop.f32.mrf.mxu1 }
 0x6c5   :  { %v5850_v13 = vpop.f32.mrf.mxu0  ;;  %v5878_v14 = vpop.f32.mrf.mxu1 }
 0x6c7   :  { %v2156_v15 = vpop.f32.mrf.mxu0  ;;  %v2284_v18 = vpop.f32.mrf.mxu1 }
 0x6c8   :  { %v2297_v19 = vpack.c.bf16 %v2284_v18, %v2281_v9  ;;  %v2169_v56 = vpack.c.bf16 %v2156_v15, %v2153_v8 }
 0x6c9   :  { %v5851_v20 = vpop.f32.mrf.mxu0  ;;  %v5879_v2 = vpop.f32.mrf.mxu1 }
 0x6ca   :  { %2322 = vmatpush1.bf16.msra.mxu0 %v2297_v19 }
 0x6cb   :  { %v2161_v17 = vpop.f32.mrf.mxu0  ;;  %v2289_v22 = vpop.f32.mrf.mxu1  ;;  %2323 = vmatprep.subr.bf16.mxu0 %v6420_v38 }
 0x6cd   :  { %v5854_v24 = vpop.f32.mrf.mxu0  ;;  %v5882_v25 = vpop.f32.mrf.mxu1 }
 0x6ce   :  { %2324 = vmatpush1.bf16.msra.mxu0 %v2296_v23 }
 0x6cf   :  { %v2164_v4 = vpop.f32.mrf.mxu0  ;;  %v2292_v10 = vpop.f32.mrf.mxu1  ;;  %2325 = vmatprep.subr.bf16.mxu0 %v6420_v38 }
 0x6d0   :  { %v2170_v58 = vpack.c.bf16 %v2164_v4, %v2161_v17  ;;  %v2298_v0 = vpack.c.bf16 %v2292_v10, %v2289_v22 }
 0x6d1   :  { %v5855_v26 = vpop.f32.mrf.mxu0  ;;  %v5883_v27 = vpop.f32.mrf.mxu1 }
 0x6d2   :  { %v2613_v27 = vld [vmem:[#allocation4 + $0x120] sm:$0x7] }
 0x6d3   :  { %v2209_v6 = vpop.f32.mrf.mxu0 }
 0x6d5   :  { %v5860_v12 = vpop.f32.mrf.mxu0 }
 0x6d7   :  { %v2212_v21 = vpop.f32.mrf.mxu0 }
 0x6d8   :  { %v2232_v57 = vpack.c.bf16 %v2212_v21, %v2209_v6  ;;  %v2621_v6 = vsel %vm2107_vm4, %v2613_v27, 0 }
 0x6d9   :  { %v5861_v28 = vpop.f32.mrf.mxu0 }
 0x6db   :  { %v2217_v29 = vpop.f32.mrf.mxu0 }
 0x6dd   :  { %v5864_v1 = vpop.f32.mrf.mxu0 }
 0x6df   :  { %v2220_v7 = vpop.f32.mrf.mxu0 }
 0x6e0   :  { %v2233_v59 = vpack.c.bf16 %v2220_v7, %v2217_v29 }
 0x6e1   :  { %v5865_v30 = vpop.f32.mrf.mxu0 }
 0x6e3   :  { %v2225_v31 = vpop.f32.mrf.mxu0 }
 0x6e5   :  { %v5868_v5 = vpop.f32.mrf.mxu0 }
 0x6e7   :  { %v2228_v62 = vpop.f32.mrf.mxu0 }
 0x6e8   :  { %v2234_v11 = vpack.c.bf16 %v2228_v62, %v2225_v31 }
 0x6e9   :  { %v5869_v53 = vpop.f32.mrf.mxu0 }
 0x6ea   :  { %2326 = vmatpush1.bf16.msra.mxu0 %v2234_v11 }
 0x6eb   :  { %2327 = vmatprep.subr.bf16.mxu0 %v6420_v38 }
 0x6ee   :  { %2328 = vmatpush1.bf16.msra.mxu0 %v2233_v59 }
 0x6ef   :  { %2329 = vmatprep.subr.bf16.mxu0 %v6420_v38 }
 0x6f2   :  { %2330 = vmatpush1.bf16.msra.mxu0 %v2232_v57 }
 0x6f3   :  { %2331 = vmatprep.subr.bf16.mxu0 %v6420_v38 }
 0x6f6   :  { %2332 = vmatpush1.bf16.msra.mxu0 %v2170_v58 }
 0x6f7   :  { %2333 = vmatprep.subr.bf16.mxu0 %v6420_v38 }
 0x6fa   :  { %2334 = vmatpush1.bf16.msra.mxu0 %v2169_v56 }
 0x6fb   :  { %2335 = vmatprep.subr.bf16.mxu0 %v6420_v38 }
 0x6fe   :  { %2336 = vmatpush1.bf16.msra.mxu0 %v2168_v63 }
 0x6ff   :  { %2351 = vmatprep.subr.bf16.mxu0 %v6420_v38 }
 0x702   :  { %2352 = vmatpush2.bf16.msra.mxu0 %v2298_v0 }
 0x703   :  { %5922 = vmatprep.subr.bf16.mxu0 %v6421_v16 }
 0x705   :  { %2354 = vmatmul.mubr.bf16.vlgmr.msra.gmra.mxu0 %v6250_v32 }
 0x706   :  { %5924 = vmatprep.mubr.msk.bf16.mxu0 %vm6422_vm5, %v6421_v16  ;;  %5923 = vmatpush3.bf16.msra.mxu0 %v2621_v6 }
 0x7c5   :  { %v2355_v47 = vpop.f32.mrf.mxu0 }
 0x7c6   :  { %v6810_v44 = vadd.f32 %v2355_v47, %v2302_v42 }
 0x7c7   :  { %v2357_v41 = vpop.f32.mrf.mxu0 }
 0x7c8   :  { %4997 = vst.msk [vmem:[%s7265_s5] sm:$0xff] %vm2596_vm7, %v6810_v44 }
 0x7c9   :  { %v2358_v46 = vpop.f32.mrf.mxu0 }
 0x7ca   :  { %v6817_v43 = vadd.f32 %v2358_v46, %v2307_v45 }
 0x7cb   :  { %v2360_v48 = vpop.f32.mrf.mxu0 }
 0x7cc   :  { %v2362_v49 = vpack.c.bf16 %v6817_v43, %v6810_v44 }
 0x7ce   :  { %v2462_v52 = vsel %vm2460_vm8, %v2362_v49, 0 }
 0x7cf   :  { %5885 = vmatpush3.bf16.msra.mxu1 %v2462_v52 }
 0x7d2   :  { %5887 = vmatmul.mubr.msk.bf16.vlgmr.msra.gmra.mxu1 %vm2432_vm9, %v6253_v33 }
 0x7d3   :  { %5890 = vmatprep.mubr.msk.bf16.mxu1 %vm6422_vm5, %v6421_v16 }
 0x7da   :  { %5891 = vmatmul.mubr.msk.bf16.gmra.mxu1 %vm2432_vm9, %v6254_v34 }
 0x7db   :  { %5894 = vmatprep.mubr.msk.bf16.mxu1 %vm6422_vm5, %v6421_v16 }
 0x7e2   :  { %5895 = vmatmul.mubr.msk.bf16.gmra.mxu1 %vm2432_vm9, %v6255_v35 }
 0x7e3   :  { %5898 = vmatprep.mubr.msk.bf16.mxu1 %vm6422_vm5, %v6421_v16 }
 0x7ea   :  { %5899 = vmatmul.mubr.msk.bf16.gmra.mxu1 %vm2432_vm9, %v6256_v36 }
 0x7eb   :  { %5902 = vmatprep.mubr.msk.bf16.mxu1 %vm6422_vm5, %v6421_v16 }
 0x7f2   :  { %5903 = vmatmul.mubr.msk.bf16.gmra.mxu1 %vm2432_vm9, %v6257_v37 }
 0x7f3   :  { %5906 = vmatprep.mubr.msk.bf16.mxu1 %vm6422_vm5, %v6421_v16 }
 0x7fa   :  { %5907 = vmatmul.mubr.msk.bf16.gmra.mxu1 %vm2432_vm9, %v6258_v39 }
 0x7fb   :  { %5910 = vmatprep.mubr.msk.bf16.mxu1 %vm6422_vm5, %v6421_v16 }
 0x802   :  { %5911 = vmatmul.mubr.msk.bf16.gmra.mxu1 %vm2432_vm9, %v6259_v40 }
 0x803   :  { %5914 = vmatprep.mubr.msk.bf16.mxu1 %vm6422_vm5, %v6421_v16 }
 0x80a   :  { %5915 = vmatmul.mubr.msk.bf16.gmra.mxu1 %vm2432_vm9, %v6260_v50 }
 0x80b   :  { %5918 = vmatprep.mubr.msk.bf16.mxu1 %vm6422_vm5, %v6421_v16 }
 0x812   :  { %5919 = vmatmul.mubr.msk.bf16.gmra.mxu1 %vm2432_vm9, %v6261_v51  ;;  %v6262_v51 = vld [vmem:[#allocation2 + $0x2a0] ss:$16 sps:$4 sm:$0xff]  }
 0x892   :  { %v2498_v54 = vpop.f32.mrf.mxu1 }
 0x894   :  { %v5888_v55 = vpop.f32.mrf.mxu1 }
 0x896   :  { %v2501_v60 = vpop.f32.mrf.mxu1 }
 0x897   :  { %v2569_v61 = vpack.c.bf16 %v2501_v60, %v2498_v54 }
 0x898   :  { %v5889_v3 = vpop.f32.mrf.mxu1 }
 0x89a   :  { %v2506_v8 = vpop.f32.mrf.mxu1 }
 0x89c   :  { %v5892_v9 = vpop.f32.mrf.mxu1 }
 0x89e   :  { %v2509_v13 = vpop.f32.mrf.mxu1 }
 0x89f   :  { %v2570_v14 = vpack.c.bf16 %v2509_v13, %v2506_v8 }
 0x8a0   :  { %v5893_v15 = vpop.f32.mrf.mxu1 }
 0x8a2   :  { %v2514_v18 = vpop.f32.mrf.mxu1 }
 0x8a4   :  { %v5896_v19 = vpop.f32.mrf.mxu1 }
 0x8a6   :  { %v2517_v20 = vpop.f32.mrf.mxu1 }
 0x8a7   :  { %v2571_v2 = vpack.c.bf16 %v2517_v20, %v2514_v18  ;;  %v2383_v18 = vld [vmem:[#allocation6 + $0xd0] sm:$0xff]  ;;  %v2386_v20 = vld [vmem:[#allocation6 + $0xe8] sm:$0xff] }
 0x8a8   :  { %v5897_v17 = vpop.f32.mrf.mxu1 }
 0x8aa   :  { %v2522_v22 = vpop.f32.mrf.mxu1 }
 0x8ac   :  { %v5900_v23 = vpop.f32.mrf.mxu1 }
 0x8ae   :  { %v2525_v24 = vpop.f32.mrf.mxu1 }
 0x8af   :  { %v2572_v25 = vpack.c.bf16 %v2525_v24, %v2522_v22  ;;  %v2382_v22 = vld [vmem:[#allocation6 + $0xc8] sm:$0xff] }
 0x8b0   :  { %v5901_v4 = vpop.f32.mrf.mxu1 }
 0x8b1   :  { %2581 = vrot.lane.b32.xlu0 %v2572_v25, %s6423_s1  ;;  %v2381_v4 = vld [vmem:[#allocation6 + $0xc0] sm:$0xff] }
 0x8b2   :  { %v2530_v10 = vpop.f32.mrf.mxu1 }
 0x8b4   :  { %v5904_v26 = vpop.f32.mrf.mxu1 }
 0x8b6   :  { %v2533_v12 = vpop.f32.mrf.mxu1 }
 0x8b7   :  { %v2573_v21 = vpack.c.bf16 %v2533_v12, %v2530_v10 }
 0x8b8   :  { %v5905_v28 = vpop.f32.mrf.mxu1 }
 0x8b9   :  { %2583 = vrot.lane.b32.xlu0 %v2573_v21, %s6423_s1 }
 0x8ba   :  { %v2538_v29 = vpop.f32.mrf.mxu1 }
 0x8bc   :  { %v5908_v1 = vpop.f32.mrf.mxu1 }
 0x8be   :  { %v2541_v7 = vpop.f32.mrf.mxu1 }
 0x8bf   :  { %v2574_v30 = vpack.c.bf16 %v2541_v7, %v2538_v29 }
 0x8c0   :  { %v5909_v31 = vpop.f32.mrf.mxu1 }
 0x8c1   :  { %2585 = vrot.lane.b32.xlu0 %v2574_v30, %s6423_s1 }
 0x8c2   :  { %v2546_v5 = vpop.f32.mrf.mxu1 }
 0x8c4   :  { %v5912_v62 = vpop.f32.mrf.mxu1 }
 0x8c5   :  { %v6264_v62 = vld [vmem:[#allocation2 + $0x2e0] ss:$16 sps:$4 sm:$0xff]  }
 0x8c6   :  { %v2549_v11 = vpop.f32.mrf.mxu1 }
 0x8c7   :  { %v2575_v53 = vpack.c.bf16 %v2549_v11, %v2546_v5  ;;  %v6263_v5 = vld [vmem:[#allocation2 + $0x2c0] ss:$16 sps:$4 sm:$0xff]  }
 0x8c8   :  { %v5913_v59 = vpop.f32.mrf.mxu1  ;;  %v6265_v11 = vld [vmem:[#allocation2 + $0x300] ss:$16 sps:$4 sm:$0xff]  }
 0x8c9   :  { %2590 = vrot.lane.b32.xlu1 %v2575_v53, %s6413_s22  ;;  %v6266_v53 = vld [vmem:[#allocation2 + $0x320] ss:$16 sps:$4 sm:$0xff]  }
 0x8ca   :  { %v2554_v57 = vpop.f32.mrf.mxu1  ;;  %v6267_v59 = vld [vmem:[#allocation2 + $0x340] ss:$16 sps:$4 sm:$0xff]  }
 0x8cc   :  { %v5916_v58 = vpop.f32.mrf.mxu1 }
 0x8cd   :  { %v6269_v58 = vld [vmem:[#allocation2 + $0x380] ss:$16 sps:$4 sm:$0xff]  }
 0x8ce   :  { %v2557_v56 = vpop.f32.mrf.mxu1 }
 0x8cf   :  { %v2576_v63 = vpack.c.bf16 %v2557_v56, %v2554_v57  ;;  %v6268_v57 = vld [vmem:[#allocation2 + $0x360] ss:$16 sps:$4 sm:$0xff]  }
 0x8d0   :  { %v5917_v0 = vpop.f32.mrf.mxu1  ;;  %v6270_v56 = vld [vmem:[#allocation2 + $0x3a0] ss:$16 sps:$4 sm:$0xff]  }
 0x8d1   :  { %2592 = vrot.lane.b32.xlu1 %v2576_v63, %s6413_s22  ;;  %v6271_v63 = vld [vmem:[#allocation2 + $0x3c0] ss:$16 sps:$4 sm:$0xff]  }
 0x8d2   :  { %v2562_v32 = vpop.f32.mrf.mxu1  ;;  %v6272_v0 = vld [vmem:[#allocation2 + $0x3e0] ss:$16 sps:$4 sm:$0xff]  }
 0x8d4   :  { %v5920_v42 = vpop.f32.mrf.mxu1 }
 0x8d5   :  { %v6274_v42 = vld [vmem:[#allocation4 + $0x130] ss:$0 sps:$4 sm:$0x11]  }
 0x8d6   :  { %v2565_v47 = vpop.f32.mrf.mxu1  ;;  %6120 = vmatprep.subr.msk.bf16.mxu1 %vm3065_vm12, %v6274_v42 }
 0x8d7   :  { %v2577_v41 = vpack.c.bf16 %v2565_v47, %v2562_v32  ;;  %v6273_v32 = vld [vmem:[#allocation2 + $0x400] ss:$16 sps:$4 sm:$0xff]   ;;  %v3067_v47 = vsel %vm3065_vm12, %v6274_v42, 0 }
 0x8d8   :  { %v5921_v45 = vpop.f32.mrf.mxu1  ;;  %5967 = vmatpush3.bf16.msra.mxu1 %v3067_v47 }
 0x8d9   :  { %2594 = vrot.lane.b32.xlu1 %v2577_v41, %s6413_s22  ;;  %s6424_s22 = smov 6  }
 0x923   :  { %v2582_v46 = vpop.permute.xlu0 %2581 }
 0x924   :  { %v2599_v48 = vsel %vm2596_vm7, %v2569_v61, %v2582_v46 }
 0x92b   :  { %v2584_v33 = vpop.permute.xlu0 %2583 }
 0x92c   :  { %v2602_v34 = vsel %vm2596_vm7, %v2570_v14, %v2584_v33  ;;  %v2385_v14 = vld [vmem:[#allocation6 + $0xe0] sm:$0xff] }
 0x933   :  { %v2586_v37 = vpop.permute.xlu0 %2585 }
 0x934   :  { %v2605_v39 = vsel %vm2596_vm7, %v2571_v2, %v2586_v37 }
 0x93b   :  { %v2591_v49 = vpop.permute.xlu1 %2590 }
 0x93c   :  { %v2608_v52 = vsel %vm2606_vm10, %v2599_v48, %v2591_v49 }
 0x93d   :  { %5925 = vmatmul.mubr.msk.bf16.vlgmr.msra.gmra.mxu0 %vm2097_vm6, %v2608_v52 }
 0x93e   :  { %5928 = vmatprep.mubr.msk.bf16.mxu0 %vm6422_vm5, %v6421_v16 }
 0x943   :  { %v2593_v35 = vpop.permute.xlu1 %2592 }
 0x944   :  { %v2610_v36 = vsel %vm2606_vm10, %v2602_v34, %v2593_v35 }
 0x945   :  { %5929 = vmatmul.mubr.msk.bf16.gmra.mxu0 %vm2097_vm6, %v2610_v36 }
 0x946   :  { %5932 = vmatprep.mubr.msk.bf16.mxu0 %vm6422_vm5, %v6421_v16  ;;  %v2384_v16 = vld [vmem:[#allocation6 + $0xd8] sm:$0xff] }
 0x94b   :  { %v2595_v40 = vpop.permute.xlu1 %2594 }
 0x94c   :  { %v2612_v50 = vsel %vm2606_vm10, %v2605_v39, %v2595_v40 }
 0x94d   :  { %5933 = vmatmul.mubr.msk.bf16.gmra.mxu0 %vm2097_vm6, %v2612_v50 }
 0x94e   :  { %5942 = vmatprep.mubr.msk.bf16.mxu0 %vm2781_vm11, %v6262_v51 }
 0x9fd   :  { %v2657_v54 = vpop.f32.mrf.mxu0 }
 0x9fe   :  { %v2658_v21 = vadd.f32 %v2657_v54, %v2381_v4 }
 0x9ff   :  { %v5926_v55 = vpop.f32.mrf.mxu0 }
 0xa00   :  { %v2680_v30 = vmax.f32 %v2658_v21, 0.0  ;;  %v2716_v21 = vld [vmem:[#allocation6 + $0x108] sm:$0xff] }
 0xa01   :  { %v2660_v60 = vpop.f32.mrf.mxu0 }
 0xa02   :  { %v2661_v26 = vadd.f32 %v2660_v60, %v2382_v22 }
 0xa03   :  { %v5927_v61 = vpop.f32.mrf.mxu0 }
 0xa04   :  { %v2681_v1 = vmax.f32 %v2661_v26, 0.0  ;;  %v2720_v26 = vld [vmem:[#allocation6 + $0x128] sm:$0xff] }
 0xa05   :  { %v2665_v3 = vpop.f32.mrf.mxu0 }
 0xa06   :  { %v2666_v24 = vadd.f32 %v2665_v3, %v2383_v18  ;;  %v2686_v31 = vpack.c.bf16 %v2681_v1, %v2680_v30  ;;  %v6275_v3 = vld [vmem:[#allocation4 + $0x128] sm:$0xff]   ;;  %v2713_v1 = vld [vmem:[#allocation6 + $0xf0] sm:$0xff] }
 0xa07   :  { %v5930_v8 = vpop.f32.mrf.mxu0  ;;  %5968 = vmatprep.subr.bf16.mxu1 %v6275_v3 }
 0xa08   :  { %v2682_v28 = vmax.f32 %v2666_v24, 0.0  ;;  %5969 = vmatpush3.bf16.msra.mxu1 %v6275_v3 }
 0xa09   :  { %v2668_v9 = vpop.f32.mrf.mxu0 }
 0xa0a   :  { %v2669_v2 = vadd.f32 %v2668_v9, %v2384_v16 }
 0xa0b   :  { %v5931_v13 = vpop.f32.mrf.mxu0 }
 0xa0c   :  { %v2683_v27 = vmax.f32 %v2669_v2, 0.0 }
 0xa0d   :  { %v2673_v15 = vpop.f32.mrf.mxu0 }
 0xa0e   :  { %v2674_v17 = vadd.f32 %v2673_v15, %v2385_v14  ;;  %v2687_v7 = vpack.c.bf16 %v2683_v27, %v2682_v28  ;;  %v2719_v27 = vld [vmem:[#allocation6 + $0x120] sm:$0xff] }
 0xa0f   :  { %v5934_v19 = vpop.f32.mrf.mxu0  ;;  %v2715_v28 = vld [vmem:[#allocation6 + $0x100] sm:$0xff] }
 0xa10   :  { %v2684_v6 = vmax.f32 %v2674_v17, 0.0 }
 0xa11   :  { %v2676_v23 = vpop.f32.mrf.mxu0 }
 0xa12   :  { %v2677_v25 = vadd.f32 %v2676_v23, %v2386_v20 }
 0xa13   :  { %v5935_v10 = vpop.f32.mrf.mxu0 }
 0xa14   :  { %v2685_v12 = vmax.f32 %v2677_v25, 0.0 }
 0xa16   :  { %v2688_v29 = vpack.c.bf16 %v2685_v12, %v2684_v6  ;;  %v2718_v6 = vld [vmem:[#allocation6 + $0x118] sm:$0xff]  ;;  %v2717_v12 = vld [vmem:[#allocation6 + $0x110] sm:$0xff] }
 0xa18   :  { %5936 = vmatprep.subr.bf16.mxu0 %v2688_v29 }
 0xa19   :  { %5937 = vmatpush3.bf16.msra.mxu0 %v2688_v29  ;;  %v2714_v29 = vld [vmem:[#allocation6 + $0xf8] sm:$0xff] }
 0xa1a   :  { %5938 = vmatprep.subr.bf16.mxu0 %v2687_v7 }
 0xa1d   :  { %5939 = vmatpush3.bf16.msra.mxu0 %v2687_v7 }
 0xa1e   :  { %5940 = vmatprep.subr.bf16.mxu0 %v2686_v31 }
 0xa21   :  { %5941 = vmatpush3.bf16.msra.mxu0 %v2686_v31 }
 0xa24   :  { %5943 = vmatmul.mubr.msk.bf16.vlgmr.msra.gmra.mxu0 %vm2781_vm11, %v6263_v5 }
 0xa25   :  { %5946 = vmatprep.mubr.msk.bf16.mxu0 %vm2781_vm11, %v6264_v62 }
 0xa2c   :  { %5947 = vmatmul.mubr.msk.bf16.gmra.mxu0 %vm2781_vm11, %v6265_v11 }
 0xa2d   :  { %5950 = vmatprep.mubr.msk.bf16.mxu0 %vm2781_vm11, %v6266_v53 }
 0xa34   :  { %5951 = vmatmul.mubr.msk.bf16.gmra.mxu0 %vm2781_vm11, %v6267_v59 }
 0xa35   :  { %5954 = vmatprep.mubr.msk.bf16.mxu0 %vm2781_vm11, %v6268_v57 }
 0xa3c   :  { %5955 = vmatmul.mubr.msk.bf16.gmra.mxu0 %vm2781_vm11, %v6269_v58 }
 0xa3d   :  { %5958 = vmatprep.mubr.msk.bf16.mxu0 %vm2781_vm11, %v6270_v56 }
 0xa44   :  { %5959 = vmatmul.mubr.msk.bf16.gmra.mxu0 %vm2781_vm11, %v6271_v63 }
 0xa45   :  { %5962 = vmatprep.mubr.msk.bf16.mxu0 %vm2781_vm11, %v6272_v0 }
 0xa4c   :  { %5963 = vmatmul.mubr.msk.bf16.gmra.mxu0 %vm2781_vm11, %v6273_v32 }
 0xae4   :  { %v6872_v41 = vpop.f32.mrf.mxu0 }
 0xae6   :  { %v6874_v45 = vpop.f32.mrf.mxu0 }
 0xae8   :  { %v6876_v46 = vpop.f32.mrf.mxu0 }
 0xae9   :  { %v2948_v48 = vpack.c.bf16 %v6876_v46, %v6872_v41  ;;  %v6276_v41 = vld [vmem:[#allocation2 + $0x420] ss:$16 sps:$4 sm:$0xff]  }
 0xaea   :  { %v6880_v49 = vpop.f32.mrf.mxu0  ;;  %5986 = vmatprep.mubr.msk.bf16.mxu0 %vm135_vm0, %v6276_v41 }
 0xaeb   :  { %v2947_v52 = vpack.c.bf16 %v6880_v49, %v6874_v45 }
 0xaec   :  { %v6884_v33 = vpop.f32.mrf.mxu0 }
 0xaee   :  { %v6886_v34 = vpop.f32.mrf.mxu0 }
 0xaf0   :  { %v6888_v35 = vpop.f32.mrf.mxu0 }
 0xaf1   :  { %v2950_v36 = vpack.c.bf16 %v6888_v35, %v6884_v33 }
 0xaf2   :  { %v6892_v37 = vpop.f32.mrf.mxu0 }
 0xaf3   :  { %v2949_v39 = vpack.c.bf16 %v6892_v37, %v6886_v34 }
 0xaf4   :  { %v5952_v40 = vpop.f32.mrf.mxu0 }
 0xaf6   :  { %v2884_v50 = vpop.f32.mrf.mxu0 }
 0xaf8   :  { %v5953_v51 = vpop.f32.mrf.mxu0 }
 0xaf9   :  { %v2952_v54 = vpack.c.bf16 %v5953_v51, %v5952_v40 }
 0xafa   :  { %v2887_v55 = vpop.f32.mrf.mxu0 }
 0xafb   :  { %v2951_v60 = vpack.c.bf16 %v2887_v55, %v2884_v50  ;;  %2965 = vrot.lane.b32.xlu1 %v2952_v54, %s6424_s22 }
 0xafc   :  { %v5956_v61 = vpop.f32.mrf.mxu0 }
 0xafd   :  { %2963 = vrot.lane.b32.xlu0 %v2951_v60, %s6424_s22 }
 0xafe   :  { %v2900_v8 = vpop.f32.mrf.mxu0 }
 0xb00   :  { %v5957_v9 = vpop.f32.mrf.mxu0 }
 0xb01   :  { %v2954_v17 = vpack.c.bf16 %v5957_v9, %v5956_v61 }
 0xb02   :  { %v2903_v13 = vpop.f32.mrf.mxu0 }
 0xb03   :  { %v2953_v23 = vpack.c.bf16 %v2903_v13, %v2900_v8 }
 0xb04   :  { %v5960_v16 = vpop.f32.mrf.mxu0 }
 0xb06   :  { %v2916_v14 = vpop.f32.mrf.mxu0 }
 0xb08   :  { %v5961_v15 = vpop.f32.mrf.mxu0 }
 0xb09   :  { %v2956_v18 = vpack.c.bf16 %v5961_v15, %v5960_v16 }
 0xb0a   :  { %v2919_v19 = vpop.f32.mrf.mxu0 }
 0xb0b   :  { %v2955_v20 = vpack.c.bf16 %v2919_v19, %v2916_v14  ;;  %2977 = vrot.lane.b32.xlu1 %v2956_v18, %s6425_s3 }
 0xb0c   :  { %v5964_v2 = vpop.f32.mrf.mxu0 }
 0xb0d   :  { %2975 = vrot.lane.b32.xlu0 %v2955_v20, %s6425_s3 }
 0xb0e   :  { %v2932_v22 = vpop.f32.mrf.mxu0 }
 0xb0f   :  { %2969 = vrot.lane.b32.xlu1 %v2954_v17, %s6424_s22 }
 0xb10   :  { %v5965_v24 = vpop.f32.mrf.mxu0 }
 0xb11   :  { %v2958_v25 = vpack.c.bf16 %v5965_v24, %v5964_v2  ;;  %2967 = vrot.lane.b32.xlu0 %v2953_v23, %s6424_s22 }
 0xb12   :  { %v2935_v4 = vpop.f32.mrf.mxu0 }
 0xb13   :  { %v2957_v10 = vpack.c.bf16 %v2935_v4, %v2932_v22  ;;  %2981 = vrot.lane.b32.xlu1 %v2958_v25, %s6425_s3 }
 0xb15   :  { %2979 = vrot.lane.b32.xlu0 %v2957_v10, %s6425_s3 }
 0xb17   :  { %3044 = vperm.xlu1 %6149, %v2720_v26   ;;  %v6277_v26 = vld [vmem:[#allocation2 + $0x440] ss:$16 sps:$4 sm:$0xff]  }
 0xb19   :  { %3039 = vperm.xlu0 %6148, %v2719_v27   ;;  %v6278_v27 = vld [vmem:[#allocation2 + $0x460] ss:$16 sps:$4 sm:$0xff]  }
 0xb1b   :  { %3034 = vperm.xlu1 %6149, %v2718_v6   ;;  %v6279_v6 = vld [vmem:[#allocation2 + $0x480] ss:$16 sps:$4 sm:$0xff]  }
 0xb1d   :  { %3029 = vperm.xlu0 %6148, %v2717_v12   ;;  %v6280_v12 = vld [vmem:[#allocation2 + $0x4a0] ss:$16 sps:$4 sm:$0xff]  }
 0xb1f   :  { %3024 = vperm.xlu1 %6149, %v2716_v21   ;;  %v6281_v21 = vld [vmem:[#allocation2 + $0x4c0] ss:$16 sps:$4 sm:$0xff]  }
 0xb21   :  { %3019 = vperm.xlu0 %6148, %v2715_v28   ;;  %v6282_v28 = vld [vmem:[#allocation2 + $0x4e0] ss:$16 sps:$4 sm:$0xff]  }
 0xb23   :  { %3014 = vperm.xlu1 %6149, %v2714_v29   ;;  %v6283_v29 = vld [vmem:[#allocation2 + $0x500] ss:$16 sps:$4 sm:$0xff]  }
 0xb25   :  { %3009 = vperm.xlu0 %6148, %v2713_v1   ;;  %v6284_v1 = vld [vmem:[#allocation2 + $0x520] ss:$16 sps:$4 sm:$0xff]  }
 0xb6d   :  { %v2966_v7 = vpop.permute.xlu1 %2965 }
 0xb6e   :  { %v2988_v11 = vsel %vm2097_vm6, %v2948_v48, %v2966_v7  ;;  %v6285_v7 = vld [vmem:[#allocation2 + $0x540] ss:$16 sps:$4 sm:$0xff]  }
 0xb6f   :  { %v2964_v30 = vpop.permute.xlu0 %2963 }
 0xb70   :  { %v2985_v5 = vsel %vm2097_vm6, %v2947_v52, %v2964_v30  ;;  %v6286_v30 = vld [vmem:[#allocation2 + $0x560] ss:$16 sps:$4 sm:$0xff]  }
 0xb7d   :  { %v2978_v31 = vpop.permute.xlu1 %2977 }
 0xb7e   :  { %v2999_v59 = vsel %vm2995_vm13, %v2988_v11, %v2978_v31  ;;  %v6287_v31 = vld [vmem:[#allocation2 + $0x580] ss:$16 sps:$4 sm:$0xff]  }
 0xb7f   :  { %v2976_v62 = vpop.permute.xlu0 %2975  ;;  %v6290_v11 = vld [vmem:[#allocation2 + $0x5e0] ss:$16 sps:$4 sm:$0xff]  }
 0xb80   :  { %v2997_v53 = vsel %vm2995_vm13, %v2985_v5, %v2976_v62  ;;  %v6288_v5 = vld [vmem:[#allocation2 + $0x5a0] ss:$16 sps:$4 sm:$0xff]  }
 0xb81   :  { %v2970_v57 = vpop.permute.xlu1 %2969  ;;  %5970 = vmatprep.mubr.msk.bf16.mxu1 %vm3056_vm14, %v2997_v53  ;;  %v6289_v62 = vld [vmem:[#allocation2 + $0x5c0] ss:$16 sps:$4 sm:$0xff]  }
 0xb82   :  { %5971 = vmatmul.mubr.msk.bf16.vlgmr.msra.gmra.mxu1 %vm3056_vm14, %v2999_v59  ;;  %v2994_v32 = vsel %vm2097_vm6, %v2950_v36, %v2970_v57  ;;  %v6291_v53 = vld [vmem:[#allocation2 + $0x600] ss:$16 sps:$4 sm:$0xff]  }
 0xb83   :  { %v2968_v58 = vpop.permute.xlu0 %2967  ;;  %v6292_v59 = vld [vmem:[#allocation2 + $0x620] ss:$16 sps:$4 sm:$0xff]  }
 0xb84   :  { %v2991_v63 = vsel %vm2097_vm6, %v2949_v39, %v2968_v58  ;;  %v6293_v57 = vld [vmem:[#allocation2 + $0x640] ss:$16 sps:$4 sm:$0xff]  }
 0xb85   :  { %v2982_v56 = vpop.permute.xlu1 %2981  ;;  %v6294_v58 = vld [vmem:[#allocation2 + $0x660] ss:$16 sps:$4 sm:$0xff]  }
 0xb86   :  { %v3003_v47 = vsel %vm2995_vm13, %v2994_v32, %v2982_v56  ;;  %v6295_v56 = vld [vmem:[#allocation2 + $0x680] ss:$16 sps:$4 sm:$0xff]  }
 0xb87   :  { %v2980_v0 = vpop.permute.xlu0 %2979 }
 0xb88   :  { %v3001_v42 = vsel %vm2995_vm13, %v2991_v63, %v2980_v0 }
 0xb89   :  { %5974 = vmatprep.mubr.msk.bf16.mxu1 %vm3056_vm14, %v3001_v42 }
 0xb8a   :  { %5975 = vmatmul.mubr.msk.bf16.gmra.mxu1 %vm3056_vm14, %v3003_v47 }
 0xb92   :  { %v3045_v45 = vpop.permute.xlu1 %3044 }
 0xb94   :  { %v3040_v48 = vpop.permute.xlu0 %3039 }
 0xb96   :  { %v3035_v34 = vpop.permute.xlu1 %3034 }
 0xb98   :  { %v3030_v35 = vpop.permute.xlu0 %3029 }
 0xb9a   :  { %v3025_v40 = vpop.permute.xlu1 %3024 }
 0xb9c   :  { %v3020_v55 = vpop.permute.xlu0 %3019 }
 0xb9e   :  { %v3015_v18 = vpop.permute.xlu1 %3014 }
 0xba0   :  { %v3010_v17 = vpop.permute.xlu0 %3009 }
 0xc42   :  { %v5972_v46 = vpop.f32.mrf.mxu1 }
 0xc43   :  { %v3112_v13 = vadd.f32 %v5972_v46, %v3020_v55 }
 0xc44   :  { %v3103_v49 = vpop.f32.mrf.mxu1 }
 0xc45   :  { %v3136_v22 = vmax.f32 %v3112_v13, 0.0  ;;  %v3104_v23 = vadd.f32 %v3103_v49, %v3010_v17  ;;  %v6298_v17 = vld [vmem:[#allocation4 + $0x148] sm:$0xff]  }
 0xc46   :  { %v5973_v52 = vpop.f32.mrf.mxu1 }
 0xc47   :  { %v3115_v61 = vadd.f32 %v5973_v52, %v3025_v40  ;;  %v3134_v4 = vmax.f32 %v3104_v23, 0.0 }
 0xc48   :  { %v3106_v33 = vpop.f32.mrf.mxu1 }
 0xc49   :  { %v3137_v19 = vmax.f32 %v3115_v61, 0.0  ;;  %v3107_v20 = vadd.f32 %v3106_v33, %v3015_v18  ;;  %v6296_v18 = vld [vmem:[#allocation4 + $0x158] sm:$0xff]  }
 0xc4a   :  { %v5976_v36 = vpop.f32.mrf.mxu1  ;;  %6026 = vmatprep.subr.bf16.mxu1 %v6296_v18 }
 0xc4b   :  { %v3128_v39 = vadd.f32 %v5976_v36, %v3040_v48  ;;  %v3143_v24 = vpack.c.bf16 %v3137_v19, %v3136_v22  ;;  %v3135_v25 = vmax.f32 %v3107_v20, 0.0  ;;  %6027 = vmatpush3.bf16.msra.mxu1 %v6296_v18 }
 0xc4c   :  { %v3119_v37 = vpop.f32.mrf.mxu1 }
 0xc4d   :  { %v3120_v51 = vadd.f32 %v3119_v37, %v3030_v35  ;;  %v3140_v3 = vmax.f32 %v3128_v39, 0.0  ;;  %v3142_v10 = vpack.c.bf16 %v3135_v25, %v3134_v4  ;;  %v6299_v4 = vld [vmem:[#allocation4 + $0x140] sm:$0xff]  }
 0xc4e   :  { %v5977_v50 = vpop.f32.mrf.mxu1 }
 0xc4f   :  { %v3131_v54 = vadd.f32 %v5977_v50, %v3045_v45  ;;  %v3138_v16 = vmax.f32 %v3120_v51, 0.0 }
 0xc50   :  { %v3122_v60 = vpop.f32.mrf.mxu1 }
 0xc51   :  { %v3141_v8 = vmax.f32 %v3131_v54, 0.0  ;;  %v3123_v9 = vadd.f32 %v3122_v60, %v3035_v34 }
 0xc53   :  { %v3145_v14 = vpack.c.bf16 %v3141_v8, %v3140_v3  ;;  %v3139_v15 = vmax.f32 %v3123_v9, 0.0 }
 0xc55   :  { %v3144_v2 = vpack.c.bf16 %v3139_v15, %v3138_v16  ;;  %5978 = vmatprep.subr.bf16.mxu0 %v3145_v14 }
 0xc56   :  { %5979 = vmatpush3.bf16.msra.mxu0 %v3145_v14 }
 0xc57   :  { %5980 = vmatprep.subr.bf16.mxu0 %v3144_v2 }
 0xc5a   :  { %5981 = vmatpush3.bf16.msra.mxu0 %v3144_v2  ;;  %v6297_v2 = vld [vmem:[#allocation4 + $0x150] sm:$0xff]  }
 0xc5b   :  { %5982 = vmatprep.subr.bf16.mxu0 %v3143_v24  ;;  %6028 = vmatprep.subr.bf16.mxu1 %v6297_v2 }
 0xc5c   :  { %6029 = vmatpush3.bf16.msra.mxu1 %v6297_v2 }
 0xc5d   :  { %6030 = vmatprep.subr.bf16.mxu1 %v6298_v17 }
 0xc5e   :  { %5983 = vmatpush3.bf16.msra.mxu0 %v3143_v24 }
 0xc5f   :  { %5984 = vmatprep.subr.bf16.mxu0 %v3142_v10 }
 0xc60   :  { %6031 = vmatpush3.bf16.msra.mxu1 %v6298_v17 }
 0xc61   :  { %6032 = vmatprep.subr.bf16.mxu1 %v6299_v4 }
 0xc62   :  { %5985 = vmatpush3.bf16.msra.mxu0 %v3142_v10 }
 0xc63   :  { %4692 = vmatprep.subr.bf16.mxu0 %v6420_v38 }
 0xc64   :  { %6033 = vmatpush3.bf16.msra.mxu1 %v6299_v4 }
 0xc65   :  { %5987 = vmatmul.mubr.msk.bf16.vlgmr.msra.gmra.mxu0 %vm135_vm0, %v6277_v26 }
 0xc66   :  { %5990 = vmatprep.mubr.msk.bf16.mxu0 %vm135_vm0, %v6278_v27 }
 0xc6d   :  { %5991 = vmatmul.mubr.msk.bf16.gmra.mxu0 %vm135_vm0, %v6279_v6 }
 0xc6e   :  { %5994 = vmatprep.mubr.msk.bf16.mxu0 %vm135_vm0, %v6280_v12 }
 0xc75   :  { %5995 = vmatmul.mubr.msk.bf16.gmra.mxu0 %vm135_vm0, %v6281_v21 }
 0xc76   :  { %5998 = vmatprep.mubr.msk.bf16.mxu0 %vm135_vm0, %v6282_v28  ;;  %v6300_v28 = vld [vmem:[#allocation4 + $0x138] sm:$0xff]  }
 0xc77   :  { %6034 = vmatprep.subr.bf16.mxu1 %v6300_v28 }
 0xc78   :  { %6035 = vmatpush3.bf16.msra.mxu1 %v6300_v28 }
 0xc7d   :  { %5999 = vmatmul.mubr.msk.bf16.gmra.mxu0 %vm135_vm0, %v6283_v29 }
 0xc7e   :  { %6002 = vmatprep.mubr.msk.bf16.mxu0 %vm135_vm0, %v6284_v1 }
 0xc85   :  { %6003 = vmatmul.mubr.msk.bf16.gmra.mxu0 %vm135_vm0, %v6285_v7 }
 0xc86   :  { %6006 = vmatprep.mubr.msk.bf16.mxu0 %vm135_vm0, %v6286_v30 }
 0xc8d   :  { %6007 = vmatmul.mubr.msk.bf16.gmra.mxu0 %vm135_vm0, %v6287_v31 }
 0xc8e   :  { %6010 = vmatprep.mubr.msk.bf16.mxu0 %vm135_vm0, %v6288_v5 }
 0xc95   :  { %6011 = vmatmul.mubr.msk.bf16.gmra.mxu0 %vm135_vm0, %v6289_v62 }
 0xc96   :  { %6014 = vmatprep.mubr.msk.bf16.mxu0 %vm135_vm0, %v6290_v11 }
 0xc9d   :  { %6015 = vmatmul.mubr.msk.bf16.gmra.mxu0 %vm135_vm0, %v6291_v53 }
 0xc9e   :  { %6018 = vmatprep.mubr.msk.bf16.mxu0 %vm135_vm0, %v6292_v59 }
 0xca5   :  { %6019 = vmatmul.mubr.msk.bf16.gmra.mxu0 %vm135_vm0, %v6293_v57 }
 0xca6   :  { %6022 = vmatprep.mubr.msk.bf16.mxu0 %vm135_vm0, %v6294_v58 }
 0xcad   :  { %6023 = vmatmul.mubr.msk.bf16.gmra.mxu0 %vm135_vm0, %v6295_v56 }
 0xd25   :  { %v6941_v63 = vpop.f32.mrf.mxu0 }
 0xd27   :  { %v6943_v0 = vpop.f32.mrf.mxu0 }
 0xd29   :  { %v6945_v32 = vpop.f32.mrf.mxu0 }
 0xd2a   :  { %v3548_v42 = vpack.c.bf16 %v6945_v32, %v6941_v63 }
 0xd2b   :  { %v6949_v47 = vpop.f32.mrf.mxu0 }
 0xd2c   :  { %v3547_v41 = vpack.c.bf16 %v6949_v47, %v6943_v0 }
 0xd2d   :  { %v6953_v45 = vpop.f32.mrf.mxu0 }
 0xd2f   :  { %v6955_v46 = vpop.f32.mrf.mxu0 }
 0xd31   :  { %v6957_v48 = vpop.f32.mrf.mxu0 }
 0xd32   :  { %v3550_v49 = vpack.c.bf16 %v6957_v48, %v6953_v45  ;;  %v6301_v45 = vld [vmem:[#allocation2 + $0x6a0] ss:$16 sps:$4 sm:$0xff]  }
 0xd33   :  { %v6961_v52 = vpop.f32.mrf.mxu0 }
 0xd34   :  { %v3549_v34 = vpack.c.bf16 %v6961_v52, %v6955_v46 }
 0xd35   :  { %v5996_v33 = vpop.f32.mrf.mxu0 }
 0xd37   :  { %v3420_v35 = vpop.f32.mrf.mxu0 }
 0xd39   :  { %v5997_v36 = vpop.f32.mrf.mxu0 }
 0xd3a   :  { %v3552_v37 = vpack.c.bf16 %v5997_v36, %v5996_v33 }
 0xd3b   :  { %v3423_v39 = vpop.f32.mrf.mxu0 }
 0xd3c   :  { %v3551_v40 = vpack.c.bf16 %v3423_v39, %v3420_v35  ;;  %3573 = vrot.lane.b32.xlu1 %v3552_v37, %s6416_s29  ;;  %v3193_v39 = vld [vmem:[#allocation6 + $0x168] sm:$0xff] }
 0xd3d   :  { %v6000_v50 = vpop.f32.mrf.mxu0 }
 0xd3e   :  { %3571 = vrot.lane.b32.xlu0 %v3551_v40, %s6416_s29  ;;  %v3192_v40 = vld [vmem:[#allocation6 + $0x160] sm:$0xff] }
 0xd3f   :  { %v3436_v51 = vpop.f32.mrf.mxu0 }
 0xd41   :  { %v6001_v54 = vpop.f32.mrf.mxu0 }
 0xd42   :  { %v3554_v55 = vpack.c.bf16 %v6001_v54, %v6000_v50  ;;  %v3191_v50 = vld [vmem:[#allocation6 + $0x158] sm:$0xff]  ;;  %v3189_v54 = vld [vmem:[#allocation6 + $0x148] sm:$0xff] }
 0xd43   :  { %v3439_v60 = vpop.f32.mrf.mxu0 }
 0xd44   :  { %v3553_v61 = vpack.c.bf16 %v3439_v60, %v3436_v51  ;;  %3577 = vrot.lane.b32.xlu1 %v3554_v55, %s6416_s29  ;;  %v3190_v51 = vld [vmem:[#allocation6 + $0x150] sm:$0xff]  ;;  %v3188_v55 = vld [vmem:[#allocation6 + $0x140] sm:$0xff]  ;;  %v3187_v60 = vld [vmem:[#allocation6 + $0x138] sm:$0xff] }
 0xd45   :  { %v6004_v3 = vpop.f32.mrf.mxu0 }
 0xd46   :  { %3575 = vrot.lane.b32.xlu0 %v3553_v61, %s6416_s29  ;;  %s6427_s29 = smov 48   ;;  %v3186_v61 = vld [vmem:[#allocation6 + $0x130] sm:$0xff] }
 0xd47   :  { %v3452_v8 = vpop.f32.mrf.mxu0 }
 0xd49   :  { %v6005_v9 = vpop.f32.mrf.mxu0 }
 0xd4a   :  { %v3556_v13 = vpack.c.bf16 %v6005_v9, %v6004_v3 }
 0xd4b   :  { %v3455_v16 = vpop.f32.mrf.mxu0 }
 0xd4c   :  { %v3555_v14 = vpack.c.bf16 %v3455_v16, %v3452_v8  ;;  %3585 = vrot.lane.b32.xlu1 %v3556_v13, %s6426_s13 }
 0xd4d   :  { %v6008_v15 = vpop.f32.mrf.mxu0 }
 0xd4e   :  { %3583 = vrot.lane.b32.xlu0 %v3555_v14, %s6426_s13 }
 0xd4f   :  { %v3468_v19 = vpop.f32.mrf.mxu0 }
 0xd51   :  { %v6009_v20 = vpop.f32.mrf.mxu0 }
 0xd52   :  { %v3558_v22 = vpack.c.bf16 %v6009_v20, %v6008_v15 }
 0xd53   :  { %v3471_v23 = vpop.f32.mrf.mxu0 }
 0xd54   :  { %v3557_v24 = vpack.c.bf16 %v3471_v23, %v3468_v19  ;;  %3589 = vrot.lane.b32.xlu1 %v3558_v22, %s6426_s13 }
 0xd55   :  { %v6012_v25 = vpop.f32.mrf.mxu0 }
 0xd56   :  { %3587 = vrot.lane.b32.xlu0 %v3557_v24, %s6426_s13 }
 0xd57   :  { %v3484_v10 = vpop.f32.mrf.mxu0 }
 0xd59   :  { %v6013_v26 = vpop.f32.mrf.mxu0 }
 0xd5a   :  { %v3560_v27 = vpack.c.bf16 %v6013_v26, %v6012_v25 }
 0xd5b   :  { %v3487_v6 = vpop.f32.mrf.mxu0 }
 0xd5c   :  { %v3559_v12 = vpack.c.bf16 %v3487_v6, %v3484_v10  ;;  %3597 = vrot.lane.b32.xlu1 %v3560_v27, %s6427_s29 }
 0xd5d   :  { %v6016_v21 = vpop.f32.mrf.mxu0 }
 0xd5e   :  { %3595 = vrot.lane.b32.xlu0 %v3559_v12, %s6427_s29 }
 0xd5f   :  { %v3500_v29 = vpop.f32.mrf.mxu0 }
 0xd61   :  { %v6017_v1 = vpop.f32.mrf.mxu0 }
 0xd62   :  { %v3562_v57 = vpack.c.bf16 %v6017_v1, %v6016_v21 }
 0xd63   :  { %v3503_v7 = vpop.f32.mrf.mxu0 }
 0xd64   :  { %v3561_v56 = vpack.c.bf16 %v3503_v7, %v3500_v29 }
 0xd65   :  { %v6020_v30 = vpop.f32.mrf.mxu0 }
 0xd67   :  { %v3516_v31 = vpop.f32.mrf.mxu0 }
 0xd69   :  { %v6021_v5 = vpop.f32.mrf.mxu0 }
 0xd6a   :  { %v3564_v62 = vpack.c.bf16 %v6021_v5, %v6020_v30 }
 0xd6b   :  { %v3519_v11 = vpop.f32.mrf.mxu0 }
 0xd6c   :  { %v3563_v53 = vpack.c.bf16 %v3519_v11, %v3516_v31  ;;  %3609 = vrot.lane.b32.xlu1 %v3564_v62, %s6412_s21 }
 0xd6d   :  { %v6024_v59 = vpop.f32.mrf.mxu0 }
 0xd6e   :  { %3607 = vrot.lane.b32.xlu0 %v3563_v53, %s6412_s21 }
 0xd6f   :  { %v3532_v58 = vpop.f32.mrf.mxu0 }
 0xd70   :  { %3601 = vrot.lane.b32.xlu1 %v3562_v57, %s6427_s29 }
 0xd71   :  { %v6025_v33 = vpop.f32.mrf.mxu0 }
 0xd72   :  { %v3566_v35 = vpack.c.bf16 %v6025_v33, %v6024_v59  ;;  %3599 = vrot.lane.b32.xlu0 %v3561_v56, %s6427_s29 }
 0xd73   :  { %v3535_v36 = vpop.f32.mrf.mxu0 }
 0xd74   :  { %v3565_v37 = vpack.c.bf16 %v3535_v36, %v3532_v58  ;;  %3613 = vrot.lane.b32.xlu1 %v3566_v35, %s6412_s21 }
 0xd76   :  { %3611 = vrot.lane.b32.xlu0 %v3565_v37, %s6412_s21 }
 0xd78   :  { %3698 = vperm.xlu1 %6149, %v3193_v39  }
 0xd7a   :  { %3693 = vperm.xlu0 %6148, %v3192_v40  }
 0xd7c   :  { %3688 = vperm.xlu1 %6149, %v3191_v50  }
 0xd7e   :  { %3683 = vperm.xlu0 %6148, %v3190_v51  }
 0xd80   :  { %3678 = vperm.xlu1 %6149, %v3189_v54  }
 0xd82   :  { %3673 = vperm.xlu0 %6148, %v3188_v55  }
 0xd84   :  { %3668 = vperm.xlu1 %6149, %v3187_v60  }
 0xd86   :  { %3663 = vperm.xlu0 %6148, %v3186_v61  }
 0xdae   :  { %v3574_v3 = vpop.permute.xlu1 %3573 }
 0xdaf   :  { %v3620_v22 = vsel %vm1724_vm3, %v3548_v42, %v3574_v3 }
 0xdb0   :  { %v3572_v8 = vpop.permute.xlu0 %3571 }
 0xdb1   :  { %v3617_v2 = vsel %vm1724_vm3, %v3547_v41, %v3572_v8 }
 0xdb6   :  { %v3578_v9 = vpop.permute.xlu1 %3577 }
 0xdb7   :  { %v3626_v42 = vsel %vm1724_vm3, %v3550_v49, %v3578_v9 }
 0xdb8   :  { %v3576_v13 = vpop.permute.xlu0 %3575 }
 0xdb9   :  { %v3623_v32 = vsel %vm1724_vm3, %v3549_v34, %v3576_v13  ;;  %vm4999_vm3 = vcmask 11264  }
 0xdbe   :  { %v3586_v16 = vpop.permute.xlu1 %3585 }
 0xdbf   :  { %v3630_v24 = vsel %vm1028_vm2, %v3620_v22, %v3586_v16  ;;  %v6306_v22 = vld [vmem:[#allocation2 + $0x740] ss:$16 sps:$4 sm:$0xff]  }
 0xdc0   :  { %v3584_v14 = vpop.permute.xlu0 %3583 }
 0xdc1   :  { %v3628_v23 = vsel %vm1028_vm2, %v3617_v2, %v3584_v14  ;;  %v6304_v2 = vld [vmem:[#allocation2 + $0x700] ss:$16 sps:$4 sm:$0xff]  }
 0xdc6   :  { %v3590_v15 = vpop.permute.xlu1 %3589 }
 0xdc7   :  { %v3634_v6 = vsel %vm1028_vm2, %v3626_v42, %v3590_v15  ;;  %v6317_v42 = vld [vmem:[#allocation2 + $0x8a0] ss:$16 sps:$4 sm:$0xff]  }
 0xdc8   :  { %v3588_v18 = vpop.permute.xlu0 %3587 }
 0xdc9   :  { %v3632_v26 = vsel %vm1028_vm2, %v3623_v32, %v3588_v18  ;;  %v6316_v32 = vld [vmem:[#allocation2 + $0x880] ss:$16 sps:$4 sm:$0xff]  }
 0xdce   :  { %v3598_v19 = vpop.permute.xlu1 %3597 }
 0xdcf   :  { %v3638_v10 = vsel %vm2781_vm11, %v3630_v24, %v3598_v19  ;;  %v6302_v19 = vld [vmem:[#allocation2 + $0x6c0] ss:$16 sps:$4 sm:$0xff]  }
 0xdd0   :  { %v3596_v20 = vpop.permute.xlu0 %3595  ;;  %v6308_v24 = vld [vmem:[#allocation2 + $0x780] ss:$16 sps:$4 sm:$0xff]  }
 0xdd1   :  { %v3636_v25 = vsel %vm2781_vm11, %v3628_v23, %v3596_v20  ;;  %v6303_v20 = vld [vmem:[#allocation2 + $0x6e0] ss:$16 sps:$4 sm:$0xff]  }
 0xdd2   :  { %v6307_v23 = vld [vmem:[#allocation2 + $0x760] ss:$16 sps:$4 sm:$0xff]  }
 0xdde   :  { %v3610_v17 = vpop.permute.xlu1 %3609 }
 0xddf   :  { %v3646_v47 = vsel %vm135_vm0, %v3638_v10, %v3610_v17  ;;  %v6305_v17 = vld [vmem:[#allocation2 + $0x720] ss:$16 sps:$4 sm:$0xff]  }
 0xde0   :  { %v3608_v4 = vpop.permute.xlu0 %3607  ;;  %v6311_v10 = vld [vmem:[#allocation2 + $0x7e0] ss:$16 sps:$4 sm:$0xff]  }
 0xde1   :  { %v3644_v0 = vsel %vm135_vm0, %v3636_v25, %v3608_v4  ;;  %v6309_v25 = vld [vmem:[#allocation2 + $0x7a0] ss:$16 sps:$4 sm:$0xff]  }
 0xde2   :  { %v3602_v41 = vpop.permute.xlu1 %3601  ;;  %6036 = vmatprep.mubr.msk.bf16.mxu1 %vm3731_vm15, %v3644_v0  ;;  %v6310_v4 = vld [vmem:[#allocation2 + $0x7c0] ss:$16 sps:$4 sm:$0xff]  }
 0xde3   :  { %6037 = vmatmul.mubr.msk.bf16.vlgmr.msra.gmra.mxu1 %vm3731_vm15, %v3646_v47  ;;  %v3642_v28 = vsel %vm2781_vm11, %v3634_v6, %v3602_v41  ;;  %v6312_v0 = vld [vmem:[#allocation2 + $0x800] ss:$16 sps:$4 sm:$0xff]  }
 0xde4   :  { %v3600_v63 = vpop.permute.xlu0 %3599  ;;  %v6313_v47 = vld [vmem:[#allocation2 + $0x820] ss:$16 sps:$4 sm:$0xff]  }
 0xde5   :  { %v3640_v12 = vsel %vm2781_vm11, %v3632_v26, %v3600_v63  ;;  %v6314_v41 = vld [vmem:[#allocation2 + $0x840] ss:$16 sps:$4 sm:$0xff]  }
 0xde6   :  { %v3614_v27 = vpop.permute.xlu1 %3613  ;;  %v6315_v63 = vld [vmem:[#allocation2 + $0x860] ss:$16 sps:$4 sm:$0xff]  }
 0xde7   :  { %v3650_v46 = vsel %vm135_vm0, %v3642_v28, %v3614_v27  ;;  %v6318_v26 = vld [vmem:[#allocation2 + $0x8c0] ss:$16 sps:$4 sm:$0xff]  }
 0xde8   :  { %v3612_v21 = vpop.permute.xlu0 %3611  ;;  %v6319_v27 = vld [vmem:[#allocation2 + $0x8e0] ss:$16 sps:$4 sm:$0xff]  }
 0xde9   :  { %v3648_v29 = vsel %vm135_vm0, %v3640_v12, %v3612_v21  ;;  %v6320_v6 = vld [vmem:[#allocation2 + $0x900] ss:$16 sps:$4 sm:$0xff]  }
 0xdea   :  { %6040 = vmatprep.mubr.msk.bf16.mxu1 %vm3731_vm15, %v3648_v29  ;;  %v6321_v12 = vld [vmem:[#allocation2 + $0x920] ss:$16 sps:$4 sm:$0xff]  }
 0xdeb   :  { %6041 = vmatmul.mubr.msk.bf16.gmra.mxu1 %vm3731_vm15, %v3650_v46  ;;  %v6322_v21 = vld [vmem:[#allocation2 + $0x940] ss:$16 sps:$4 sm:$0xff]  }
 0xdec   :  { %6052 = vmatprep.mubr.msk.bf16.mxu1 %vm135_vm0, %v6301_v45  ;;  %v6323_v28 = vld [vmem:[#allocation2 + $0x960] ss:$16 sps:$4 sm:$0xff]  }
 0xded   :  { %v6324_v29 = vld [vmem:[#allocation2 + $0x980] ss:$16 sps:$4 sm:$0xff]  }
 0xdee   :  { %v6325_v46 = vld [vmem:[#allocation2 + $0x9a0] ss:$16 sps:$4 sm:$0xff]  }
 0xdef   :  { %v6326_v45 = vld [vmem:[#allocation2 + $0x9c0] ss:$16 sps:$4 sm:$0xff]  }
 0xdf3   :  { %v3699_v48 = vpop.permute.xlu1 %3698 }
 0xdf5   :  { %v3694_v52 = vpop.permute.xlu0 %3693 }
 0xdf7   :  { %v3689_v7 = vpop.permute.xlu1 %3688 }
 0xdf9   :  { %v3684_v31 = vpop.permute.xlu0 %3683 }
 0xdfb   :  { %v3679_v53 = vpop.permute.xlu1 %3678 }
 0xdfd   :  { %v3674_v56 = vpop.permute.xlu0 %3673 }
 0xdff   :  { %v3669_v55 = vpop.permute.xlu1 %3668 }
 0xe01   :  { %v3664_v8 = vpop.permute.xlu0 %3663 }
 0xea3   :  { %v6038_v49 = vpop.f32.mrf.mxu1 }
 0xea4   :  { %v3783_v40 = vadd.f32 %v6038_v49, %v3674_v56  ;;  %v6328_v49 = vld [vmem:[#allocation2 + $0xa00] ss:$16 sps:$4 sm:$0xff]  }
 0xea5   :  { %v3774_v34 = vpop.f32.mrf.mxu1 }
 0xea6   :  { %v3807_v9 = vmax.f32 %v3783_v40, 0.0  ;;  %v3775_v13 = vadd.f32 %v3774_v34, %v3664_v8  ;;  %v6330_v34 = vld [vmem:[#allocation2 + $0xa40] ss:$16 sps:$4 sm:$0xff]  }
 0xea7   :  { %v6039_v1 = vpop.f32.mrf.mxu1 }
 0xea8   :  { %v3786_v35 = vadd.f32 %v6039_v1, %v3679_v53  ;;  %v3805_v15 = vmax.f32 %v3775_v13, 0.0 }
 0xea9   :  { %v3777_v30 = vpop.f32.mrf.mxu1 }
 0xeaa   :  { %v3808_v60 = vmax.f32 %v3786_v35, 0.0  ;;  %v3778_v61 = vadd.f32 %v3777_v30, %v3669_v55  ;;  %v6332_v55 = vld [vmem:[#allocation4 + $0x190] sm:$0xff]  }
 0xeab   :  { %v6042_v5 = vpop.f32.mrf.mxu1 }
 0xeac   :  { %v3799_v11 = vadd.f32 %v6042_v5, %v3694_v52  ;;  %v3814_v16 = vpack.c.bf16 %v3808_v60, %v3807_v9  ;;  %v3806_v14 = vmax.f32 %v3778_v61, 0.0  ;;  %v6329_v52 = vld [vmem:[#allocation2 + $0xa20] ss:$16 sps:$4 sm:$0xff]  }
 0xead   :  { %v3790_v62 = vpop.f32.mrf.mxu1 }
 0xeae   :  { %v3791_v57 = vadd.f32 %v3790_v62, %v3684_v31  ;;  %v3811_v36 = vmax.f32 %v3799_v11, 0.0  ;;  %v3813_v18 = vpack.c.bf16 %v3806_v14, %v3805_v15  ;;  %v6334_v15 = vld [vmem:[#allocation4 + $0x180] sm:$0xff]  }
 0xeaf   :  { %v6043_v59 = vpop.f32.mrf.mxu1 }
 0xeb0   :  { %v3802_v58 = vadd.f32 %v6043_v59, %v3699_v48  ;;  %v3809_v50 = vmax.f32 %v3791_v57, 0.0  ;;  %v6327_v48 = vld [vmem:[#allocation2 + $0x9e0] ss:$16 sps:$4 sm:$0xff]  }
 0xeb1   :  { %v3793_v33 = vpop.f32.mrf.mxu1 }
 0xeb2   :  { %v3812_v37 = vmax.f32 %v3802_v58, 0.0  ;;  %v3794_v39 = vadd.f32 %v3793_v33, %v3689_v7 }
 0xeb4   :  { %v3816_v51 = vpack.c.bf16 %v3812_v37, %v3811_v36  ;;  %v3810_v54 = vmax.f32 %v3794_v39, 0.0  ;;  %v6331_v39 = vld [vmem:[#allocation4 + $0x198] sm:$0xff]  }
 0xeb5   :  { %4693 = vmatpush1.bf16.msra.mxu0 %v6331_v39 }
 0xeb6   :  { %v3815_v3 = vpack.c.bf16 %v3810_v54, %v3809_v50  ;;  %6044 = vmatprep.subr.bf16.mxu1 %v3816_v51  ;;  %4694 = vmatprep.subr.bf16.mxu0 %v6420_v38 }
 0xeb7   :  { %6045 = vmatpush3.bf16.msra.mxu1 %v3816_v51 }
 0xeb8   :  { %6046 = vmatprep.subr.bf16.mxu1 %v3815_v3 }
 0xeb9   :  { %4695 = vmatpush1.bf16.msra.mxu0 %v6332_v55 }
 0xeba   :  { %4696 = vmatprep.subr.bf16.mxu0 %v6420_v38 }
 0xebb   :  { %6047 = vmatpush3.bf16.msra.mxu1 %v3815_v3 }
 0xebc   :  { %6048 = vmatprep.subr.bf16.mxu1 %v3814_v16 }
 0xebf   :  { %6049 = vmatpush3.bf16.msra.mxu1 %v3814_v16  ;;  %v6333_v16 = vld [vmem:[#allocation4 + $0x188] sm:$0xff]  }
 0xec0   :  { %6050 = vmatprep.subr.bf16.mxu1 %v3813_v18  ;;  %4697 = vmatpush1.bf16.msra.mxu0 %v6333_v16 }
 0xec1   :  { %4698 = vmatprep.subr.bf16.mxu0 %v6420_v38 }
 0xec3   :  { %6051 = vmatpush3.bf16.msra.mxu1 %v3813_v18 }
 0xec4   :  { %4699 = vmatpush1.bf16.msra.mxu0 %v6334_v15 }
 0xec5   :  { %4700 = vmatprep.subr.bf16.mxu0 %v6420_v38 }
 0xec6   :  { %6053 = vmatmul.mubr.msk.bf16.vlgmr.msra.gmra.mxu1 %vm135_vm0, %v6302_v19 }
 0xec7   :  { %6056 = vmatprep.mubr.msk.bf16.mxu1 %vm135_vm0, %v6303_v20 }
 0xece   :  { %6057 = vmatmul.mubr.msk.bf16.gmra.mxu1 %vm135_vm0, %v6304_v2  ;;  %v6335_v2 = vld [vmem:[#allocation4 + $0x178] sm:$0xff]  }
 0xecf   :  { %6060 = vmatprep.mubr.msk.bf16.mxu1 %vm135_vm0, %v6305_v17  ;;  %4701 = vmatpush1.bf16.msra.mxu0 %v6335_v2 }
 0xed0   :  { %4702 = vmatprep.subr.bf16.mxu0 %v6420_v38 }
 0xed6   :  { %6061 = vmatmul.mubr.msk.bf16.gmra.mxu1 %vm135_vm0, %v6306_v22 }
 0xed7   :  { %6064 = vmatprep.mubr.msk.bf16.mxu1 %vm135_vm0, %v6307_v23  ;;  %v6336_v23 = vld [vmem:[#allocation4 + $0x170] sm:$0xff]  }
 0xed8   :  { %4703 = vmatpush1.bf16.msra.mxu0 %v6336_v23 }
 0xed9   :  { %4704 = vmatprep.subr.bf16.mxu0 %v6420_v38 }
 0xede   :  { %6065 = vmatmul.mubr.msk.bf16.gmra.mxu1 %vm135_vm0, %v6308_v24 }
 0xedf   :  { %6068 = vmatprep.mubr.msk.bf16.mxu1 %vm135_vm0, %v6309_v25  ;;  %v6337_v25 = vld [vmem:[#allocation4 + $0x168] sm:$0xff]  }
 0xee0   :  { %4705 = vmatpush1.bf16.msra.mxu0 %v6337_v25 }
 0xee1   :  { %4706 = vmatprep.subr.bf16.mxu0 %v6420_v38 }
 0xee6   :  { %6069 = vmatmul.mubr.msk.bf16.gmra.mxu1 %vm135_vm0, %v6310_v4 }
 0xee7   :  { %6072 = vmatprep.mubr.msk.bf16.mxu1 %vm135_vm0, %v6311_v10 }
 0xeee   :  { %6073 = vmatmul.mubr.msk.bf16.gmra.mxu1 %vm135_vm0, %v6312_v0  ;;  %v6338_v0 = vld [vmem:[#allocation4 + $0x160] sm:$0xff]  }
 0xeef   :  { %6076 = vmatprep.mubr.msk.bf16.mxu1 %vm135_vm0, %v6313_v47  ;;  %4707 = vmatpush1.bf16.msra.mxu0 %v6338_v0 }
 0xef0   :  { %4720 = vmatprep.subr.bf16.mxu0 %v6420_v38 }
 0xef6   :  { %6077 = vmatmul.mubr.msk.bf16.gmra.mxu1 %vm135_vm0, %v6314_v41 }
 0xef7   :  { %6080 = vmatprep.mubr.msk.bf16.mxu1 %vm135_vm0, %v6315_v63 }
 0xefe   :  { %6081 = vmatmul.mubr.msk.bf16.gmra.mxu1 %vm135_vm0, %v6316_v32  ;;  %v6339_v32 = vld [vmem:[#allocation4 + $0x1a8] sm:$0xff]  }
 0xeff   :  { %6084 = vmatprep.mubr.msk.bf16.mxu1 %vm135_vm0, %v6317_v42  ;;  %4721 = vmatpush2.bf16.msra.mxu0 %v6339_v32 }
 0xf00   :  { %4722 = vmatprep.subr.bf16.mxu0 %v6420_v38 }
 0xf06   :  { %6085 = vmatmul.mubr.msk.bf16.gmra.mxu1 %vm135_vm0, %v6318_v26 }
 0xf07   :  { %6088 = vmatprep.mubr.msk.bf16.mxu1 %vm135_vm0, %v6319_v27 }
 0xf0e   :  { %6089 = vmatmul.mubr.msk.bf16.gmra.mxu1 %vm135_vm0, %v6320_v6 }
 0xf0f   :  { %6092 = vmatprep.mubr.msk.bf16.mxu1 %vm135_vm0, %v6321_v12  ;;  %v6340_v12 = vld [vmem:[#allocation4 + $0x1a0] sm:$0xff]  }
 0xf10   :  { %4723 = vmatpush2.bf16.msra.mxu0 %v6340_v12  ;;  %v6433_v12 = vmov 5  }
 0xf16   :  { %6093 = vmatmul.mubr.msk.bf16.gmra.mxu1 %vm135_vm0, %v6322_v21 }
 0xf17   :  { %6096 = vmatprep.mubr.msk.bf16.mxu1 %vm135_vm0, %v6323_v28 }
 0xf1e   :  { %6097 = vmatmul.mubr.msk.bf16.gmra.mxu1 %vm135_vm0, %v6324_v29 }
 0xf1f   :  { %6100 = vmatprep.mubr.msk.bf16.mxu1 %vm135_vm0, %v6325_v46 }
 0xf26   :  { %6101 = vmatmul.mubr.msk.bf16.gmra.mxu1 %vm135_vm0, %v6326_v45 }
 0xf27   :  { %6104 = vmatprep.mubr.msk.bf16.mxu1 %vm135_vm0, %v6327_v48 }
 0xf2e   :  { %6105 = vmatmul.mubr.msk.bf16.gmra.mxu1 %vm135_vm0, %v6328_v49 }
 0xf2f   :  { %6108 = vmatprep.mubr.msk.bf16.mxu1 %vm135_vm0, %v6329_v52 }
 0xf36   :  { %6109 = vmatmul.mubr.msk.bf16.gmra.mxu1 %vm135_vm0, %v6330_v34 }
 0xf86   :  { %v7039_v1 = vpop.f32.mrf.mxu1 }
 0xf88   :  { %v7041_v7 = vpop.f32.mrf.mxu1 }
 0xf8a   :  { %v7043_v30 = vpop.f32.mrf.mxu1 }
 0xf8b   :  { %v4403_v31 = vpack.c.bf16 %v7043_v30, %v7039_v1 }
 0xf8c   :  { %v7047_v5 = vpop.f32.mrf.mxu1 }
 0xf8d   :  { %v4402_v62 = vpack.c.bf16 %v7047_v5, %v7041_v7 }
 0xf8e   :  { %v7051_v11 = vpop.f32.mrf.mxu1 }
 0xf90   :  { %v7053_v53 = vpop.f32.mrf.mxu1 }
 0xf92   :  { %v7055_v59 = vpop.f32.mrf.mxu1 }
 0xf93   :  { %v4405_v57 = vpack.c.bf16 %v7055_v59, %v7051_v11 }
 0xf94   :  { %v7059_v58 = vpop.f32.mrf.mxu1 }
 0xf95   :  { %v4404_v56 = vpack.c.bf16 %v7059_v58, %v7053_v53 }
 0xf96   :  { %v7063_v33 = vpop.f32.mrf.mxu1 }
 0xf98   :  { %v7065_v35 = vpop.f32.mrf.mxu1 }
 0xf9a   :  { %v7067_v36 = vpop.f32.mrf.mxu1 }
 0xf9b   :  { %v4407_v37 = vpack.c.bf16 %v7067_v36, %v7063_v33 }
 0xf9c   :  { %v7071_v40 = vpop.f32.mrf.mxu1 }
 0xf9d   :  { %v4406_v50 = vpack.c.bf16 %v7071_v40, %v7065_v35 }
 0xf9e   :  { %v6066_v51 = vpop.f32.mrf.mxu1 }
 0xfa0   :  { %v4211_v54 = vpop.f32.mrf.mxu1 }
 0xfa2   :  { %v6067_v60 = vpop.f32.mrf.mxu1 }
 0xfa3   :  { %v4409_v42 = vpack.c.bf16 %v6067_v60, %v6066_v51 }
 0xfa4   :  { %v4214_v61 = vpop.f32.mrf.mxu1 }
 0xfa5   :  { %v4408_v3 = vpack.c.bf16 %v4214_v61, %v4211_v54 }
 0xfa6   :  { %v7077_v8 = vpop.f32.mrf.mxu1 }
 0xfa7   :  { %4438 = vrot.lane.b32.xlu0 %v4408_v3, %s6426_s13 }
 0xfa8   :  { %v7080_v9 = vpop.f32.mrf.mxu1 }
 0xfaa   :  { %v7082_v13 = vpop.f32.mrf.mxu1 }
 0xfab   :  { %v4411_v61 = vpack.c.bf16 %v7082_v13, %v7077_v8 }
 0xfac   :  { %v7084_v14 = vpop.f32.mrf.mxu1 }
 0xfad   :  { %v4410_v16 = vpack.c.bf16 %v7084_v14, %v7080_v9 }
 0xfae   :  { %v7087_v18 = vpop.f32.mrf.mxu1 }
 0xfb0   :  { %v7089_v19 = vpop.f32.mrf.mxu1 }
 0xfb2   :  { %v7092_v20 = vpop.f32.mrf.mxu1 }
 0xfb3   :  { %v4413_v9 = vpack.c.bf16 %v7092_v20, %v7087_v18  ;;  %v4786_v20 = vld [vmem:[#allocation6 + $0x1d8] sm:$0x3] }
 0xfb4   :  { %v7094_v17 = vpop.f32.mrf.mxu1 }
 0xfb6   :  { %v6078_v22 = vpop.f32.mrf.mxu1 }
 0xfb8   :  { %v4259_v24 = vpop.f32.mrf.mxu1 }
 0xfba   :  { %v6079_v4 = vpop.f32.mrf.mxu1 }
 0xfbb   :  { %v4415_v55 = vpack.c.bf16 %v6079_v4, %v6078_v22 }
 0xfbc   :  { %v4262_v10 = vpop.f32.mrf.mxu1 }
 0xfbd   :  { %v4414_v47 = vpack.c.bf16 %v4262_v10, %v4259_v24  ;;  %v4412_v10 = vpack.c.bf16 %v7094_v17, %v7089_v19  ;;  %v4785_v17 = vld [vmem:[#allocation6 + $0x1d0] sm:$0xff] }
 0xfbe   :  { %v6082_v41 = vpop.f32.mrf.mxu1 }
 0xfbf   :  { %4456 = vrot.lane.b32.xlu1 %v4414_v47, %s6412_s21 }
 0xfc0   :  { %v4275_v63 = vpop.f32.mrf.mxu1 }
 0xfc2   :  { %v6083_v26 = vpop.f32.mrf.mxu1 }
 0xfc3   :  { %4440 = vrot.lane.b32.xlu1 %v4409_v42, %s6426_s13  ;;  %v4417_v13 = vpack.c.bf16 %v6083_v26, %v6082_v41  ;;  %v6429_v42 = vmov 1   ;;  %v6430_v26 = vmov 2  }
 0xfc4   :  { %v4278_v27 = vpop.f32.mrf.mxu1 }
 0xfc5   :  { %v4416_v51 = vpack.c.bf16 %v4278_v27, %v4275_v63  ;;  %v6431_v27 = vmov 3  }
 0xfc6   :  { %v6086_v6 = vpop.f32.mrf.mxu1 }
 0xfc8   :  { %v4291_v21 = vpop.f32.mrf.mxu1 }
 0xfca   :  { %v6087_v28 = vpop.f32.mrf.mxu1 }
 0xfcb   :  { %v4419_v19 = vpack.c.bf16 %v6087_v28, %v6086_v6  ;;  %v6432_v6 = vmov 4   ;;  %v6435_v28 = vmov 6  }
 0xfcc   :  { %v4294_v29 = vpop.f32.mrf.mxu1 }
 0xfcd   :  { %v4418_v25 = vpack.c.bf16 %v4294_v29, %v4291_v21  ;;  %v6434_v21 = vmov 7   ;;  %v6436_v29 = vmov 8  }
 0xfce   :  { %v6090_v46 = vpop.f32.mrf.mxu1 }
 0xfd0   :  { %v4307_v45 = vpop.f32.mrf.mxu1 }
 0xfd2   :  { %v6091_v48 = vpop.f32.mrf.mxu1 }
 0xfd3   :  { %v4421_v49 = vpack.c.bf16 %v6091_v48, %v6090_v46  ;;  %v3877_v46 = vld [vmem:[#allocation6 + $0x170] sm:$0xff]  ;;  %v3882_v48 = vld [vmem:[#allocation6 + $0x198] sm:$0xff] }
 0xfd4   :  { %v4310_v52 = vpop.f32.mrf.mxu1 }
 0xfd5   :  { %v4420_v34 = vpack.c.bf16 %v4310_v52, %v4307_v45  ;;  %4476 = vrot.lane.b32.xlu1 %v4421_v49, %s6428_s14  ;;  %v3880_v45 = vld [vmem:[#allocation6 + $0x188] sm:$0xff]  ;;  %v6437_v52 = vmov 9  }
 0xfd6   :  { %v6094_v39 = vpop.f32.mrf.mxu1  ;;  %v3884_v49 = vld [vmem:[#allocation6 + $0x1a8] sm:$0xff] }
 0xfd7   :  { %4474 = vrot.lane.b32.xlu0 %v4420_v34, %s6428_s14  ;;  %v3886_v34 = vld [vmem:[#allocation6 + $0x1b8] sm:$0xff] }
 0xfd8   :  { %v4323_v54 = vpop.f32.mrf.mxu1 }
 0xfd9   :  { %4460 = vrot.lane.b32.xlu1 %v4416_v51, %s6412_s21  ;;  %v3878_v51 = vld [vmem:[#allocation6 + $0x178] sm:$0xff] }
 0xfda   :  { %v6095_v60 = vpop.f32.mrf.mxu1 }
 0xfdb   :  { %4458 = vrot.lane.b32.xlu0 %v4415_v55, %s6412_s21  ;;  %v4423_v15 = vpack.c.bf16 %v6095_v60, %v6094_v39  ;;  %v3888_v39 = vld [vmem:[#allocation6 + $0x1c8] sm:$0xff]  ;;  %v3881_v55 = vld [vmem:[#allocation6 + $0x190] sm:$0xff]  ;;  %v3883_v60 = vld [vmem:[#allocation6 + $0x1a0] sm:$0xff] }
 0xfdc   :  { %v4326_v3 = vpop.f32.mrf.mxu1 }
 0xfdd   :  { %4444 = vrot.lane.b32.xlu1 %v4411_v61, %s6426_s13  ;;  %v4422_v22 = vpack.c.bf16 %v4326_v3, %v4323_v54  ;;  %v3879_v54 = vld [vmem:[#allocation6 + $0x180] sm:$0xff]  ;;  %v3885_v61 = vld [vmem:[#allocation6 + $0x1b0] sm:$0xff] }
 0xfde   :  { %v6098_v2 = vpop.f32.mrf.mxu1 }
 0xfdf   :  { %4442 = vrot.lane.b32.xlu0 %v4410_v16, %s6426_s13  ;;  %v3887_v16 = vld [vmem:[#allocation6 + $0x1c0] sm:$0xff] }
 0xfe0   :  { %v4339_v23 = vpop.f32.mrf.mxu1 }
 0xfe1   :  { %4480 = vrot.lane.b32.xlu1 %v4423_v15, %s6428_s14 }
 0xfe2   :  { %v6099_v24 = vpop.f32.mrf.mxu1 }
 0xfe3   :  { %4478 = vrot.lane.b32.xlu0 %v4422_v22, %s6428_s14  ;;  %v4425_v0 = vpack.c.bf16 %v6099_v24, %v6098_v2 }
 0xfe4   :  { %v4342_v8 = vpop.f32.mrf.mxu1 }
 0xfe5   :  { %4464 = vrot.lane.b32.xlu1 %v4418_v25, %s6412_s21  ;;  %v4424_v41 = vpack.c.bf16 %v4342_v8, %v4339_v23 }
 0xfe6   :  { %v7116_v4 = vpop.f32.mrf.mxu1 }
 0xfe7   :  { %4462 = vrot.lane.b32.xlu0 %v4417_v13, %s6412_s21 }
 0xfe8   :  { %v4355_v14 = vpop.f32.mrf.mxu1 }
 0xfe9   :  { %4448 = vrot.lane.b32.xlu1 %v4413_v9, %s6426_s13 }
 0xfea   :  { %v7124_v47 = vpop.f32.mrf.mxu1 }
 0xfeb   :  { %4446 = vrot.lane.b32.xlu0 %v4412_v10, %s6426_s13  ;;  %v4427_v63 = vpack.c.bf16 %v7124_v47, %v7116_v4 }
 0xfec   :  { %v4358_v32 = vpop.f32.mrf.mxu1 }
 0xfed   :  { %4484 = vrot.lane.b32.xlu1 %v4425_v0, %s6428_s14  ;;  %v4426_v18 = vpack.c.bf16 %v4358_v32, %v4355_v14 }
 0xfee   :  { %v6106_v15 = vpop.f32.mrf.mxu1 }
 0xfef   :  { %4482 = vrot.lane.b32.xlu0 %v4424_v41, %s6428_s14  ;;  %5333 = vmatprep.mubr.msk.bf16.mxu0 %vm1028_vm2, %v4426_v18 }
 0xff0   :  { %v4371_v22 = vpop.f32.mrf.mxu1 }
 0xff1   :  { %4794 = vperm.xlu1 %6149, %v4786_v20  }
 0xff2   :  { %v6107_v13 = vpop.f32.mrf.mxu1 }
 0xff3   :  { %4466 = vrot.lane.b32.xlu0 %v4419_v19, %s6412_s21 }
 0xff4   :  { %v4374_v0 = vpop.f32.mrf.mxu1 }
 0xff5   :  { %6151 = vset.pattern.permute.xlu1 %v6429_v42 }
 0xff6   :  { %4812 = vperm.xlu1 %6151, %v4786_v20   ;;  %v6110_v32 = vpop.f32.mrf.mxu1 }
 0xff7   :  { %4789 = vperm.xlu0 %6148, %v4785_v17  }
 0xff8   :  { %v4387_v47 = vpop.f32.mrf.mxu1 }
 0xffa   :  { %6152 = vset.pattern.permute.xlu1 %v6430_v26 }
 0xffb   :  { %4826 = vperm.xlu1 %6152, %v4785_v17   ;;  %6150 = vset.pattern.permute.xlu0 %v6429_v42 }
 0xffc   :  { %4808 = vperm.xlu0 %6150, %v4785_v17  }
 0xfff   :  { %6154 = vset.pattern.permute.xlu1 %v6431_v27 }
0x1000   :  { %4844 = vperm.xlu1 %6154, %v4785_v17   ;;  %6153 = vset.pattern.permute.xlu0 %v6430_v26 }
0x1001   :  { %4830 = vperm.xlu0 %6153, %v4786_v20  }
0x1004   :  { %4848 = vperm.xlu1 %6154, %v4786_v20  }
0x1005   :  { %6155 = vset.pattern.permute.xlu0 %v6432_v6 }
0x1006   :  { %4862 = vperm.xlu0 %6155, %v4785_v17  }
0x1008   :  { %6156 = vset.pattern.permute.xlu1 %v6432_v6 }
0x1009   :  { %4866 = vperm.xlu1 %6156, %v4786_v20  }
0x100a   :  { %6158 = vset.pattern.permute.xlu0 %v6433_v12 }
0x100b   :  { %4884 = vperm.xlu0 %6158, %v4786_v20  }
0x100d   :  { %6157 = vset.pattern.permute.xlu1 %v6433_v12 }
0x100e   :  { %4880 = vperm.xlu1 %6157, %v4785_v17  }
0x100f   :  { %6160 = vset.pattern.permute.xlu0 %v6434_v21 }
0x1010   :  { %4916 = vperm.xlu0 %6160, %v4785_v17  }
0x1012   :  { %6159 = vset.pattern.permute.xlu1 %v6435_v28 }
0x1013   :  { %4898 = vperm.xlu1 %6159, %v4785_v17  }
0x1014   :  { %6163 = vset.pattern.permute.xlu0 %v6436_v29 }
0x1015   :  { %4938 = vperm.xlu0 %6163, %v4786_v20  }
0x1017   :  { %4902 = vperm.xlu1 %6159, %v4786_v20  }
0x1019   :  { %6165 = vset.pattern.permute.xlu0 %v6420_v38  ;;  %v4439_v23 = vpop.permute.xlu0 %4438 }
0x101a   :  { %4556 = vperm.xlu0 %6165, %v3877_v46  }
0x101b   :  { %6161 = vset.pattern.permute.xlu1 %v6434_v21 }
0x101c   :  { %4920 = vperm.xlu1 %6161, %v4786_v20  }
0x101e   :  { %4571 = vperm.xlu0 %6165, %v3880_v45  }
0x1020   :  { %6162 = vset.pattern.permute.xlu1 %v6436_v29 }
0x1021   :  { %4934 = vperm.xlu1 %6162, %v4785_v17  }
0x1022   :  { %4581 = vperm.xlu0 %6165, %v3882_v48  }
0x1025   :  { %6164 = vset.pattern.permute.xlu1 %v6437_v52 }
0x1026   :  { %4952 = vperm.xlu1 %6164, %v4785_v17   ;;  %4591 = vperm.xlu0 %6165, %v3884_v49   ;;  %v4429_v17 = vpack.c.bf16 %v6107_v13, %v6106_v15 }
0x102a   :  { %4956 = vperm.xlu1 %6164, %v4786_v20   ;;  %4601 = vperm.xlu0 %6165, %v3886_v34   ;;  %v4797_v34 = vlaneseq }
0x102e   :  { %6166 = vset.pattern.permute.xlu1 %v6420_v38  ;;  %4611 = vperm.xlu0 %6165, %v3888_v39   ;;  %v4488_v38 = vsel %vm1028_vm2, %v4402_v62, %v4439_v23  ;;  %v4428_v62 = vpack.c.bf16 %v4374_v0, %v4371_v22 }
0x102f   :  { %4561 = vperm.xlu1 %6166, %v3878_v51  }
0x1031   :  { %v4457_v3 = vpop.permute.xlu1 %4456 }
0x1032   :  { %6167 = vset.pattern.permute.xlu0 %v6437_v52  ;;  %v4505_v25 = vsel %vm135_vm0, %v4488_v38, %v4457_v3 }
0x1033   :  { %4566 = vperm.xlu1 %6166, %v3879_v54   ;;  %v7179_v54 = vshrl.u32 %v4797_v34, 7 }
0x1035   :  { %v4441_v2 = vpop.permute.xlu1 %4440  ;;  %v4799_v33 = vsub.s32 0, %v7179_v54  ;;  %v4835_v3 = vsub.s32 2, %v7179_v54  ;;  %v4871_v13 = vsub.s32 4, %v7179_v54 }
0x1036   :  { %v4491_v7 = vsel %vm1028_vm2, %v4403_v31, %v4441_v2 }
0x1037   :  { %4576 = vperm.xlu1 %6166, %v3881_v55   ;;  %v4800_v15 = vrot.slane %v6810_v44, %v4799_v33 }
0x103b   :  { %4586 = vperm.xlu1 %6166, %v3883_v60  }
0x103f   :  { %4596 = vperm.xlu1 %6166, %v3885_v61   ;;  %v4817_v61 = vsub.s32 1, %v7179_v54 }
0x1043   :  { %4606 = vperm.xlu1 %6166, %v3887_v16  }
0x1047   :  { %v4477_v24 = vpop.permute.xlu1 %4476 }
0x1049   :  { %v4475_v8 = vpop.permute.xlu0 %4474 }
0x104a   :  { %v4517_v9 = vsel %vm833_vm1, %v4505_v25, %v4475_v8  ;;  %v4836_v25 = vrot.slane %v6810_v44, %v4835_v3 }
0x104b   :  { %4725 = vmatmul.mubr.bf16.vlgmr.msra.gmra.mxu0 %v4517_v9  ;;  %v4461_v14 = vpop.permute.xlu1 %4460 }
0x104c   :  { %5334 = vmatprep.mubr.msk.bf16.mxu0 %vm1028_vm2, %v4427_v63  ;;  %v6111_v63 = vpop.f32.mrf.mxu1 }
0x104d   :  { %v4459_v10 = vpop.permute.xlu0 %4458  ;;  %v4431_v46 = vpack.c.bf16 %v6111_v63, %v6110_v32 }
0x104e   :  { %v4507_v5 = vsel %vm135_vm0, %v4491_v7, %v4459_v10  ;;  %v4390_v26 = vpop.f32.mrf.mxu1 }
0x104f   :  { %v4445_v18 = vpop.permute.xlu1 %4444  ;;  %v4520_v20 = vsel %vm833_vm1, %v4507_v5, %v4477_v24  ;;  %v4430_v6 = vpack.c.bf16 %v4390_v26, %v4387_v47  ;;  %v4853_v24 = vsub.s32 3, %v7179_v54  ;;  %v4907_v47 = vsub.s32 6, %v7179_v54 }
0x1050   :  { %v4497_v27 = vsel %vm1028_vm2, %v4405_v57, %v4445_v18 }
0x1051   :  { %v4443_v41 = vpop.permute.xlu0 %4442  ;;  %v4854_v5 = vrot.slane %v6810_v44, %v4853_v24  ;;  %v4962_v24 = vrot.slane %v6817_v43, %v4817_v61 }
0x1052   :  { %v4494_v1 = vsel %vm1028_vm2, %v4404_v56, %v4443_v41 }
0x1053   :  { %4733 = vmatmul.mubr.bf16.gmra.mxu0 %v4520_v20  ;;  %v4481_v30 = vpop.permute.xlu1 %4480  ;;  %v4509_v31 = vsel %vm135_vm0, %v4494_v1, %v4461_v14 }
0x1054   :  { %5335 = vmatprep.mubr.msk.bf16.mxu0 %vm1028_vm2, %v4428_v62  ;;  %v4889_v62 = vsub.s32 5, %v7179_v54 }
0x1055   :  { %v4479_v4 = vpop.permute.xlu0 %4478 }
0x1056   :  { %v4523_v19 = vsel %vm833_vm1, %v4509_v31, %v4479_v4  ;;  %v4872_v4 = vrot.slane %v6810_v44, %v4871_v13 }
0x1057   :  { %v4465_v53 = vpop.permute.xlu1 %4464 }
0x1059   :  { %v4463_v42 = vpop.permute.xlu0 %4462 }
0x105a   :  { %v4511_v58 = vsel %vm135_vm0, %v4497_v27, %v4463_v42 }
0x105b   :  { %4741 = vmatmul.mubr.bf16.gmra.mxu0 %v4523_v19  ;;  %v4526_v12 = vsel %vm833_vm1, %v4511_v58, %v4481_v30  ;;  %v4449_v21 = vpop.permute.xlu1 %4448 }
0x105c   :  { %5336 = vmatprep.mubr.msk.bf16.mxu0 %vm1028_vm2, %v4429_v17  ;;  %v4503_v49 = vsel %vm1028_vm2, %v4407_v37, %v4449_v21  ;;  %v4818_v37 = vrot.slane %v6810_v44, %v4817_v61  ;;  %v4890_v17 = vrot.slane %v6810_v44, %v4889_v62 }
0x105d   :  { %v4447_v56 = vpop.permute.xlu0 %4446 }
0x105e   :  { %v4500_v28 = vsel %vm1028_vm2, %v4406_v50, %v4447_v56 }
0x105f   :  { %v4485_v11 = vpop.permute.xlu1 %4484  ;;  %v4513_v59 = vsel %vm135_vm0, %v4500_v28, %v4465_v53 }
0x1061   :  { %v4483_v29 = vpop.permute.xlu0 %4482 }
0x1062   :  { %v4529_v57 = vsel %vm833_vm1, %v4513_v59, %v4483_v29 }
0x1063   :  { %4749 = vmatmul.mubr.bf16.gmra.mxu0 %v4526_v12  ;;  %v4908_v12 = vrot.slane %v6810_v44, %v4907_v47 }
0x1064   :  { %5337 = vmatprep.mubr.msk.bf16.mxu0 %vm1028_vm2, %v4430_v6 }
0x1065   :  { %v4467_v45 = vpop.permute.xlu0 %4466 }
0x1066   :  { %v4515_v35 = vsel %vm135_vm0, %v4503_v49, %v4467_v45 }
0x1067   :  { %v4532_v50 = vsel %vm833_vm1, %v4515_v35, %v4485_v11  ;;  %v4925_v11 = vsub.s32 7, %v7179_v54  ;;  %vm4976_vm1 = vcmask 9216  }
0x106b   :  { %4757 = vmatmul.mubr.bf16.gmra.mxu0 %v4529_v57 }
0x106c   :  { %v4795_v48 = vpop.permute.xlu1 %4794  ;;  %5338 = vmatprep.mubr.msk.bf16.mxu0 %vm1028_vm2, %v4431_v46  ;;  %vm4990_vm2 = vcmask 1041408  }
0x106d   :  { %v4802_v9 = vsub.f32 %v4795_v48, %v4800_v15 }
0x106f   :  { %v4804_v1 = vmul.f32 %v4802_v9, %v4802_v9 }
0x1071   :  { %v4813_v40 = vpop.permute.xlu1 %4812 }
0x1072   :  { %v4790_v39 = vpop.permute.xlu0 %4789  ;;  %v4820_v38 = vsub.f32 %v4813_v40, %v4818_v37 }
0x1073   :  { %4765 = vmatmul.mubr.bf16.gmra.mxu0 %v4532_v50  ;;  %v4801_v22 = vsub.f32 %v4790_v39, %v4800_v15 }
0x1074   :  { %v4822_v32 = vmul.f32 %v4820_v38, %v4820_v38 }
0x1075   :  { %v4803_v0 = vmul.f32 %v4801_v22, %v4801_v22 }
0x1076   :  { %v4827_v52 = vpop.permute.xlu1 %4826  ;;  %v4824_v26 = vadd.f32 %v4822_v32, %v4804_v1 }
0x1077   :  { %v4809_v60 = vpop.permute.xlu0 %4808  ;;  %v4837_v7 = vsub.f32 %v4827_v52, %v4836_v25  ;;  %v4926_v52 = vrot.slane %v6810_v44, %v4925_v11 }
0x1078   :  { %v4819_v2 = vsub.f32 %v4809_v60, %v4818_v37 }
0x1079   :  { %v4839_v63 = vmul.f32 %v4837_v7, %v4837_v7 }
0x107a   :  { %v4821_v8 = vmul.f32 %v4819_v2, %v4819_v2 }
0x107b   :  { %v4845_v51 = vpop.permute.xlu1 %4844 }
0x107c   :  { %v4831_v16 = vpop.permute.xlu0 %4830  ;;  %v4823_v18 = vadd.f32 %v4821_v8, %v4803_v0  ;;  %v4855_v20 = vsub.f32 %v4845_v51, %v4854_v5 }
0x107d   :  { %v4838_v14 = vsub.f32 %v4831_v16, %v4836_v25 }
0x107e   :  { %v4841_v58 = vadd.f32 %v4839_v63, %v4823_v18  ;;  %v4857_v56 = vmul.f32 %v4855_v20, %v4855_v20 }
0x107f   :  { %v4849_v55 = vpop.permute.xlu1 %4848  ;;  %v4840_v30 = vmul.f32 %v4838_v14, %v4838_v14 }
0x1080   :  { %v4856_v31 = vsub.f32 %v4849_v55, %v4854_v5  ;;  %v4859_v45 = vadd.f32 %v4857_v56, %v4841_v58  ;;  %v4944_v55 = vrot.slane %v6817_v43, %v4799_v33 }
0x1081   :  { %v4863_v10 = vpop.permute.xlu0 %4862  ;;  %v4842_v21 = vadd.f32 %v4840_v30, %v4824_v26 }
0x1082   :  { %v4873_v19 = vsub.f32 %v4863_v10, %v4872_v4  ;;  %v4858_v28 = vmul.f32 %v4856_v31, %v4856_v31 }
0x1084   :  { %v4867_v36 = vpop.permute.xlu1 %4866  ;;  %v4875_v29 = vmul.f32 %v4873_v19, %v4873_v19  ;;  %v4860_v35 = vadd.f32 %v4858_v28, %v4842_v21 }
0x1085   :  { %v4874_v27 = vsub.f32 %v4867_v36, %v4872_v4 }
0x1086   :  { %v4885_v53 = vpop.permute.xlu0 %4884  ;;  %v4877_v50 = vadd.f32 %v4875_v29, %v4859_v45 }
0x1087   :  { %v4876_v57 = vmul.f32 %v4874_v27, %v4874_v27  ;;  %v4892_v48 = vsub.f32 %v4885_v53, %v4890_v17 }
0x1089   :  { %v4881_v23 = vpop.permute.xlu1 %4880  ;;  %v4878_v51 = vadd.f32 %v4876_v57, %v4860_v35  ;;  %v4894_v60 = vmul.f32 %v4892_v48, %v4892_v48 }
0x108a   :  { %v4891_v6 = vsub.f32 %v4881_v23, %v4890_v17 }
0x108b   :  { %v4917_v40 = vpop.permute.xlu0 %4916  ;;  %v4896_v38 = vadd.f32 %v4894_v60, %v4878_v51 }
0x108c   :  { %v4893_v49 = vmul.f32 %v4891_v6, %v4891_v6  ;;  %v4927_v37 = vsub.f32 %v4917_v40, %v4926_v52 }
0x108e   :  { %v4899_v41 = vpop.permute.xlu1 %4898  ;;  %v4895_v36 = vadd.f32 %v4893_v49, %v4877_v50  ;;  %v4929_v44 = vmul.f32 %v4927_v37, %v4927_v37 }
0x108f   :  { %v4909_v59 = vsub.f32 %v4899_v41, %v4908_v12 }
0x1090   :  { %v4939_v22 = vpop.permute.xlu0 %4938 }
0x1091   :  { %v4911_v34 = vmul.f32 %v4909_v59, %v4909_v59  ;;  %v4946_v9 = vsub.f32 %v4939_v22, %v4944_v55 }
0x1092   :  { %v4903_v42 = vpop.permute.xlu1 %4902 }
0x1093   :  { %v4910_v39 = vsub.f32 %v4903_v42, %v4908_v12  ;;  %v4913_v2 = vadd.f32 %v4911_v34, %v4895_v36  ;;  %v4948_v41 = vmul.f32 %v4946_v9, %v4946_v9 }
0x1095   :  { %v4912_v23 = vmul.f32 %v4910_v39, %v4910_v39  ;;  %v4931_v14 = vadd.f32 %v4929_v44, %v4913_v2  ;;  %v4557_v59 = vpop.permute.xlu0 %4556 }
0x1097   :  { %v4921_v46 = vpop.permute.xlu1 %4920  ;;  %v4914_v33 = vadd.f32 %v4912_v23, %v4896_v38 }
0x1098   :  { %v4928_v3 = vsub.f32 %v4921_v46, %v4926_v52 }
0x1099   :  { %v4572_v39 = vpop.permute.xlu0 %4571 }
0x109a   :  { %v4930_v25 = vmul.f32 %v4928_v3, %v4928_v3 }
0x109c   :  { %v4935_v16 = vpop.permute.xlu1 %4934  ;;  %v4932_v0 = vadd.f32 %v4930_v25, %v4914_v33 }
0x109d   :  { %v4945_v15 = vsub.f32 %v4935_v16, %v4944_v55 }
0x109e   :  { %v4950_v54 = vadd.f32 %v4948_v41, %v4932_v0 }
0x109f   :  { %v4947_v8 = vmul.f32 %v4945_v15, %v4945_v15  ;;  %v4582_v15 = vpop.permute.xlu0 %4581 }
0x10a1   :  { %v4953_v13 = vpop.permute.xlu1 %4952  ;;  %v4949_v7 = vadd.f32 %v4947_v8, %v4931_v14 }
0x10a2   :  { %v4963_v10 = vsub.f32 %v4953_v13, %v4962_v24 }
0x10a3   :  { %v4592_v8 = vpop.permute.xlu0 %4591 }
0x10a4   :  { %v4965_v5 = vmul.f32 %v4963_v10, %v4963_v10 }
0x10a5   :  { %v4957_v62 = vpop.permute.xlu1 %4956 }
0x10a6   :  { %v4967_v32 = vadd.f32 %v4965_v5, %v4949_v7  ;;  %v4964_v18 = vsub.f32 %v4957_v62, %v4962_v24 }
0x10a7   :  { %v4602_v5 = vpop.permute.xlu0 %4601 }
0x10a8   :  { %v4969_v20 = vadd.f32 1.0, %v4967_v32  ;;  %v4966_v4 = vmul.f32 %v4964_v18, %v4964_v18 }
0x10aa   :  { %v4968_v61 = vadd.f32 %v4966_v4, %v4950_v54  ;;  %6341 = vrcp.f32 %v4969_v20  ;;  %v4562_v46 = vpop.permute.xlu1 %4561 }
0x10ac   :  { %v4970_v47 = vadd.f32 1.0, %v4968_v61  ;;  %v4612_v61 = vpop.permute.xlu0 %4611 }
0x10ae   :  { %6343 = vrcp.f32 %v4970_v47  ;;  %v4567_v40 = vpop.permute.xlu1 %4566 }
0x10b2   :  { %v4577_v36 = vpop.permute.xlu1 %4576 }
0x10b6   :  { %v4587_v24 = vpop.permute.xlu1 %4586 }
0x10b7   :  { %v6342_v1 = vpop.eup %6341 }
0x10b8   :  { %v4975_v31 = vsel %vm2596_vm7, %v6342_v1, 0.0 }
0x10ba   :  { %v4597_v14 = vpop.permute.xlu1 %4596 }
0x10bb   :  { %v6344_v30 = vpop.eup %6343 }
0x10bc   :  { %v4977_v63 = vsel %vm4976_vm1, %v6344_v30, 0.0 }
0x10bd   :  { %v4978_v19 = vadd.f32 %v4977_v63, %v4975_v31 }
0x10be   :  { %v4607_v18 = vpop.permute.xlu1 %4606 }
0x10bf   :  { %v4979_v17 = vrot.slane %v4978_v19, 4 }
0x10c1   :  { %v4980_v42 = vadd.f32 %v4979_v17, %v4978_v19 }
0x10c3   :  { %v4981_v26 = vrot.slane %v4980_v42, 2 }
0x10c5   :  { %v4982_v27 = vadd.f32 %v4981_v26, %v4980_v42 }
0x10c7   :  { %v4983_v53 = vrot.slane %v4982_v27, 1 }
0x10c9   :  { %v4984_v58 = vadd.f32 %v4983_v53, %v4982_v27 }
0x10cb   :  { %6345 = vrcp.f32 %v4984_v58 }
0x10d8   :  { %v6346_v56 = vpop.eup %6345 }
0x10d9   :  { %v4986_v6 = vmul.f32 %v6346_v56, %v6342_v1  ;;  %v4987_v12 = vmul.f32 %v6346_v56, %v6344_v30 }
0x10db   :  { %v4991_v21 = vrot.slane %v4986_v6, 6  ;;  %v4992_v28 = vrot.slane %v4987_v12, 6 }
0x10dd   :  { %v4993_v29 = vsel %vm4990_vm2, %v4991_v21, %v4992_v28  ;;  %v4996_v11 = vsel %vm4990_vm2, %v6817_v43, %v4991_v21 }
0x10de   :  { %4998 = vst.msk [vmem:[%s7265_s5 + $0x8] sm:$0xff] %vm2596_vm7, %v4996_v11 }
0x10df   :  { %5000 = vst.msk [vmem:[%s7265_s5 + $0x10] sm:$0xf] %vm4999_vm3, %v4993_v29 }
0x110b   :  { %v4726_v57 = vpop.f32.mrf.mxu0 }
0x110c   :  { %v4727_v45 = vadd.f32 %v4726_v57, %v4557_v59 }
0x110d   :  { %v4728_v48 = vpop.f32.mrf.mxu0 }
0x110e   :  { %4773 = vst.msk [vmem:[%s7264_s4] sm:$0xff] %vm135_vm0, %v4727_v45 }
0x110f   :  { %v4729_v43 = vpop.f32.mrf.mxu0 }
0x1110   :  { %v4730_v49 = vadd.f32 %v4729_v43, %v4562_v46 }
0x1111   :  { %v4731_v35 = vpop.f32.mrf.mxu0 }
0x1112   :  { %4774 = vst.msk [vmem:[%s7264_s4 + $0x8] sm:$0xff] %vm135_vm0, %v4730_v49 }
0x1113   :  { %v4734_v50 = vpop.f32.mrf.mxu0 }
0x1114   :  { %v4735_v52 = vadd.f32 %v4734_v50, %v4567_v40 }
0x1115   :  { %v4736_v34 = vpop.f32.mrf.mxu0 }
0x1116   :  { %4775 = vst.msk [vmem:[%s7264_s4 + $0x10] sm:$0xff] %vm135_vm0, %v4735_v52 }
0x1117   :  { %v4737_v51 = vpop.f32.mrf.mxu0 }
0x1118   :  { %v4738_v55 = vadd.f32 %v4737_v51, %v4572_v39 }
0x1119   :  { %v4739_v60 = vpop.f32.mrf.mxu0 }
0x111a   :  { %4776 = vst.msk [vmem:[%s7264_s4 + $0x18] sm:$0xff] %vm135_vm0, %v4738_v55 }
0x111b   :  { %v4742_v37 = vpop.f32.mrf.mxu0 }
0x111c   :  { %v4743_v3 = vadd.f32 %v4742_v37, %v4577_v36 }
0x111d   :  { %v4744_v16 = vpop.f32.mrf.mxu0 }
0x111e   :  { %4777 = vst.msk [vmem:[%s7264_s4 + $0x20] sm:$0xff] %vm135_vm0, %v4743_v3 }
0x111f   :  { %v4745_v2 = vpop.f32.mrf.mxu0 }
0x1120   :  { %v4746_v23 = vadd.f32 %v4745_v2, %v4582_v15 }
0x1121   :  { %v4747_v22 = vpop.f32.mrf.mxu0 }
0x1122   :  { %4778 = vst.msk [vmem:[%s7264_s4 + $0x28] sm:$0xff] %vm135_vm0, %v4746_v23 }
0x1123   :  { %v4750_v38 = vpop.f32.mrf.mxu0 }
0x1124   :  { %v4751_v44 = vadd.f32 %v4750_v38, %v4587_v24 }
0x1125   :  { %v4752_v25 = vpop.f32.mrf.mxu0 }
0x1126   :  { %4779 = vst.msk [vmem:[%s7264_s4 + $0x30] sm:$0xff] %vm135_vm0, %v4751_v44 }
0x1127   :  { %v4753_v13 = vpop.f32.mrf.mxu0 }
0x1128   :  { %v4754_v9 = vadd.f32 %v4753_v13, %v4592_v8 }
0x1129   :  { %v4755_v33 = vpop.f32.mrf.mxu0 }
0x112a   :  { %4780 = vst.msk [vmem:[%s7264_s4 + $0x38] sm:$0xff] %vm135_vm0, %v4754_v9 }
0x112b   :  { %v4758_v10 = vpop.f32.mrf.mxu0 }
0x112c   :  { %v4759_v0 = vadd.f32 %v4758_v10, %v4597_v14 }
0x112d   :  { %v4760_v7 = vpop.f32.mrf.mxu0 }
0x112e   :  { %4781 = vst.msk [vmem:[%s7264_s4 + $0x40] sm:$0xff] %vm135_vm0, %v4759_v0 }
0x112f   :  { %v4761_v62 = vpop.f32.mrf.mxu0 }
0x1130   :  { %v4762_v41 = vadd.f32 %v4761_v62, %v4602_v5 }
0x1131   :  { %v4763_v32 = vpop.f32.mrf.mxu0 }
0x1132   :  { %4782 = vst.msk [vmem:[%s7264_s4 + $0x48] sm:$0xff] %vm135_vm0, %v4762_v41 }
0x1133   :  { %v4766_v20 = vpop.f32.mrf.mxu0 }
0x1134   :  { %v4767_v54 = vadd.f32 %v4766_v20, %v4607_v18 }
0x1135   :  { %v4768_v4 = vpop.f32.mrf.mxu0 }
0x1136   :  { %4783 = vst.msk [vmem:[%s7264_s4 + $0x50] sm:$0xff] %vm135_vm0, %v4767_v54 }
0x1137   :  { %v4769_v47 = vpop.f32.mrf.mxu0 }
0x1138   :  { %v4770_v1 = vadd.f32 %v4769_v47, %v4612_v61 }
0x1139   :  { %v4771_v30 = vpop.f32.mrf.mxu0 }
0x113a   :  { %4784 = vst.msk [vmem:[%s7264_s4 + $0x58] sm:$0xff] %vm135_vm0, %v4770_v1 }
0x113b   :  { %5009 = vsyncpa [#allocation3], 1 }
0x113c   :  { %5010 = vsyncpa [#allocation5], 1 }

</bundles_post_ra>
